<compile_context>
chip_gen: v5e
topology: v5e:2x2
jax: 0.10.0
libtpu: 0.0.40
codegen_flags: <defaults>
</compile_context>

<pallas_src>
import functools

import jax
import jax.numpy as jnp
from jax.experimental import pallas as pl
from jax.experimental.pallas import tpu as pltpu

LANE = 128


# ---------------------------------------------------------------------------
# Sizing helpers (generation-aware)
# ---------------------------------------------------------------------------
def _round_up(x, m):
    return (x + m - 1) // m * m


def _vmem_capacity_bytes():
    try:
        cap = getattr(pltpu.get_tpu_info(), "vmem_capacity_bytes", None)
        if cap:
            return int(cap)
    except Exception:
        pass
    return 64 * 1024 * 1024          # conservative fallback (v7x per-TC VMEM)


def _vmem_limit_bytes():
    # Scoped default is only 16-32 MiB; give the compiler most of physical.
    return int(min(100 * 1024 * 1024, 0.7 * _vmem_capacity_bytes()))


def _pick_tile_h(h, w, cin, cout, out_bytes):
    """Largest divisor of H whose per-step working set fits the VMEM budget."""
    budget = min(_vmem_capacity_bytes() // 3, 24 * 1024 * 1024)
    fixed = 9 * cin * cout * 2                       # resident bf16 weights
    per_row = (2 * (w + 2) * cin * 2                 # input block (dbl-buffered)
               + 9 * w * cin * 2                     # im2col patch (bf16)
               + 2 * w * cout * 4                    # f32 acc + epilogue temp
               + 2 * (w + 2) * cout * out_bytes)     # output block (dbl-buffered)
    best = 1
    for d in range(1, h + 1):
        if h % d == 0 and fixed + d * per_row <= budget:
            best = d
    return best


# ---------------------------------------------------------------------------
# Kernels
# ---------------------------------------------------------------------------
def _conv_bn_relu_kernel(xt_ref, xm_ref, xb_ref, w_ref, shift_ref, *out_refs,
                         pad_w_out, emit_sums):
    """3x3 conv (single K=9*Cin MXU matmul) + folded-BN shift + ReLU.

    xt_ref:    (1, 1,  W+2, Cin) bf16  one-row halo above the tile (clamped)
    xm_ref:    (1, TH, W+2, Cin) bf16  main tile rows (W-border already zero)
    xb_ref:    (1, 1,  W+2, Cin) bf16  one-row halo below the tile (clamped)
    w_ref:     (9*Cin, Cout)     bf16  conv weights, BN scale folded in
    shift_ref: (1, Cout)         f32   folded BN shift (incl. conv bias)
    out_refs:  activation tile [+ (1, 1, 8, Cout) f32 partial channel sums]
    """
    o_ref = out_refs[0]
    th, wp2, cin = xm_ref.shape[1], xm_ref.shape[2], xm_ref.shape[3]
    wo = wp2 - 2
    cout = o_ref.shape[3]

    i = pl.program_id(1)
    keep_top = jnp.logical_not(i == 0).astype(xm_ref.dtype)
    keep_bot = jnp.logical_not(i == pl.num_programs(1) - 1).astype(xm_ref.dtype)

    # Haloed (TH+2)-row slab.  Halos are (index-clamped) rows of neighbouring
    # tiles; at the image boundary they are zeroed -- this IS the conv's H
    # padding, so no padded activation copy ever round-trips through HBM.
    slab = jnp.concatenate(
        [xt_ref[0] * keep_top, xm_ref[0], xb_ref[0] * keep_bot], axis=0)

    # im2col: one lane-dense (TH*W, 9*Cin) patch -> a single fat MXU matmul
    # with a local f32 accumulator (no VMEM scratch RMW).
    cols = []
    for kh in range(3):
        for kw in range(3):
            cols.append(slab[kh:kh + th, kw:kw + wo, :].reshape(th * wo, cin))
    patch = jnp.concatenate(cols, axis=-1)                        # (TH*W, 9Cin)

    acc = jnp.dot(patch, w_ref[...], preferred_element_type=jnp.float32)
    y = jnp.maximum(acc + shift_ref[...], 0.0)                    # f32
    y3 = y.reshape(th, wo, cout).astype(o_ref.dtype)

    if pad_w_out:
        # Emit the zero W-border in place so the next conv reads this
        # activation directly (no inter-stage jnp.pad HBM round trip).
        zcol = jnp.zeros((th, 1, cout), o_ref.dtype)
        o_ref[...] = jnp.concatenate([zcol, y3, zcol], axis=1)[None]
    else:
        o_ref[...] = y3[None]

    if emit_sums:
        # Per-(batch, H-tile) partial channel sums for the SE global pool.
        # Each grid step owns a distinct block, so both grid axes stay
        # "parallel"; broadcast over 8 sublanes keeps the block (8,128)-tiled.
        s = jnp.sum(y, axis=0)                                    # (Cout,) f32
        out_refs[1][...] = jnp.broadcast_to(s.reshape(1, 1, 1, cout),
                                            out_refs[1].shape)


def _se_gate_kernel(sum_ref, w1_ref, w2_ref, gate_ref, *, inv_hw):
    """SE gate, computed once per batch: mean -> FC -> ReLU -> FC -> sigmoid."""
    pooled = jnp.sum(sum_ref[...][:, :, 0, :], axis=1) * inv_hw   # (N, Cpad)
    h1 = jnp.maximum(
        jnp.dot(pooled, w1_ref[...], preferred_element_type=jnp.float32), 0.0)
    z = jnp.dot(h1, w2_ref[...], preferred_element_type=jnp.float32)
    gate_ref[...] = (1.0 / (1.0 + jnp.exp(-z)))[:, None, :]       # (N, 1, Cpad)


def _se_apply_kernel(x_ref, gate_ref, o_ref):
    """Broadcast channel gating; writes only the real (unpadded) channels."""
    cr = o_ref.shape[-1]
    gate = gate_ref[0, 0, :cr].reshape(1, 1, 1, cr)
    o_ref[...] = x_ref[...][..., :cr].astype(jnp.float32) * gate


# ---------------------------------------------------------------------------
# Wrappers
# ---------------------------------------------------------------------------
def _conv_bn_relu(x_in, w_flat, shift, *, out_dtype, pad_w_out, emit_sums):
    """One fused conv3x3(pad=1)+BN+ReLU stage.

    x_in: (N, H, W+2, Cin_pad) bf16 with zero W-border columns (H unpadded).
    Returns activation [(N, H, W+2|W, Cout_pad)] and, if emit_sums, per-tile
    partial channel sums (N, num_h, 8, Cout_pad) f32.
    """
    n, h, wp2, cin = x_in.shape
    w = wp2 - 2
    cout = w_flat.shape[-1]
    th = _pick_tile_h(h, w, cin, cout, jnp.dtype(out_dtype).itemsize)
    assert h % th == 0, (h, th)
    num_h = h // th

    out_w = wp2 if pad_w_out else w
    out_shapes = [jax.ShapeDtypeStruct((n, h, out_w, cout), out_dtype)]
    out_specs = [pl.BlockSpec((1, th, out_w, cout), lambda b, i: (b, i, 0, 0))]
    if emit_sums:
        out_shapes.append(jax.ShapeDtypeStruct((n, num_h, 8, cout), jnp.float32))
        out_specs.append(pl.BlockSpec((1, 1, 8, cout), lambda b, i: (b, i, 0, 0)))

    # Halo views: block height 1 => index_map returns the element row directly.
    top_map = lambda b, i: (b, jnp.maximum(i * th - 1, 0), 0, 0)
    main_map = lambda b, i: (b, i, 0, 0)
    bot_map = lambda b, i: (b, jnp.minimum(i * th + th, h - 1), 0, 0)

    outs = pl.pallas_call(
        functools.partial(_conv_bn_relu_kernel,
                          pad_w_out=pad_w_out, emit_sums=emit_sums),
        grid=(n, num_h),
        in_specs=[
            pl.BlockSpec((1, 1, wp2, cin), top_map),
            pl.BlockSpec((1, th, wp2, cin), main_map),
            pl.BlockSpec((1, 1, wp2, cin), bot_map),
            pl.BlockSpec((9 * cin, cout), lambda b, i: (0, 0)),
            pl.BlockSpec((1, cout), lambda b, i: (0, 0)),
        ],
        out_specs=out_specs,
        out_shape=out_shapes,
        compiler_params=pltpu.CompilerParams(
            dimension_semantics=("parallel", "parallel"),
            vmem_limit_bytes=_vmem_limit_bytes()),
    )(x_in, x_in, x_in, w_flat, shift)

    if emit_sums:
        return outs[0], outs[1]
    return outs[0]


def _se_gate(sums, w1t, w2t, inv_hw):
    n, num_h, _, cpad = sums.shape
    cr = w1t.shape[-1]
    return pl.pallas_call(
        functools.partial(_se_gate_kernel, inv_hw=inv_hw),
        grid=(1,),
        in_specs=[pl.BlockSpec((n, num_h, 8, cpad), lambda i: (0, 0, 0, 0)),
                  pl.BlockSpec((cpad, cr), lambda i: (0, 0)),
                  pl.BlockSpec((cr, cpad), lambda i: (0, 0))],
        out_specs=pl.BlockSpec((n, 1, cpad), lambda i: (0, 0, 0)),
        out_shape=jax.ShapeDtypeStruct((n, 1, cpad), jnp.float32),
        compiler_params=pltpu.CompilerParams(
            vmem_limit_bytes=_vmem_limit_bytes()),
    )(sums, w1t, w2t)


def _se_apply(a2, gate, cout_real):
    n, h, w, cpad = a2.shape
    th = _pick_tile_h(h, w, cpad, cpad, 4)
    return pl.pallas_call(
        _se_apply_kernel,
        grid=(n, h // th),
        in_specs=[pl.BlockSpec((1, th, w, cpad), lambda b, i: (b, i, 0, 0)),
                  pl.BlockSpec((1, 1, cpad), lambda b, i: (b, 0, 0))],
        out_specs=pl.BlockSpec((1, th, w, cout_real), lambda b, i: (b, i, 0, 0)),
        out_shape=jax.ShapeDtypeStruct((n, h, w, cout_real), jnp.float32),
        compiler_params=pltpu.CompilerParams(
            dimension_semantics=("parallel", "parallel"),
            vmem_limit_bytes=_vmem_limit_bytes()),
    )(a2, gate)


def _fold_conv_bn(weight, bias, gamma, beta, mean, var, eps, cin_pad, cout_pad):
    """Fold eval-mode BN into the conv and pad channels to lane multiples."""
    cout, cin = weight.shape[0], weight.shape[1]
    scale = gamma / jnp.sqrt(var + eps)                           # (Cout,)
    w = jnp.transpose(weight, (2, 3, 1, 0)) * scale               # (3,3,Cin,Cout)
    w = jnp.pad(w, ((0, 0), (0, 0), (0, cin_pad - cin), (0, cout_pad - cout)))
    w_flat = w.reshape(9 * cin_pad, cout_pad).astype(jnp.bfloat16)
    shift = (bias - mean) * scale + beta
    shift = jnp.pad(shift, (0, cout_pad - cout)).reshape(1, -1).astype(jnp.float32)
    return w_flat, shift


@jax.jit
def vgg_block_forward(x_nchw,
                      conv1_w, conv1_b, bn1_g, bn1_b, bn1_m, bn1_v,
                      conv2_w, conv2_b, bn2_g, bn2_b, bn2_m, bn2_v,
                      se_w1, se_w2):
    """VGGBlock forward: conv1+bn1+relu -> conv2+bn2+relu -> Squeeze-Excite.

    x_nchw: (N, Cin, H, W) f32.  conv weights: (Cout, Cin, 3, 3).
    se_w1: (C//r, C), se_w2: (C, C//r) in PyTorch nn.Linear layout (no bias).
    Returns (N, Cout, H, W) f32.
    """
    eps = 1e-5
    n, cin, h, w = x_nchw.shape
    cmid, cout = conv1_w.shape[0], conv2_w.shape[0]
    cin_p, cmid_p, cout_p = (_round_up(c, LANE) for c in (cin, cmid, cout))

    # NHWC, zero W-border, zero channel padding, bf16 (single boundary copy).
    x = jnp.transpose(x_nchw, (0, 2, 3, 1))
    x = jnp.pad(x, ((0, 0), (0, 0), (1, 1), (0, cin_p - cin))).astype(jnp.bfloat16)

    w1f, s1 = _fold_conv_bn(conv1_w, conv1_b, bn1_g, bn1_b, bn1_m, bn1_v,
                            eps, cin_p, cmid_p)
    w2f, s2 = _fold_conv_bn(conv2_w, conv2_b, bn2_g, bn2_b, bn2_m, bn2_v,
                            eps, cmid_p, cout_p)

    # Stage 1: bf16 activation with the zero W-border already written in-kernel.
    a1 = _conv_bn_relu(x, w1f, s1, out_dtype=jnp.bfloat16,
                       pad_w_out=True, emit_sums=False)
    # Stage 2: bf16 activation + per-tile channel sums (fused SE avg-pool).
    a2, sums = _conv_bn_relu(a1, w2f, s2, out_dtype=jnp.bfloat16,
                             pad_w_out=False, emit_sums=True)

    # SE gate once per batch, then broadcast-multiply apply pass.
    w1t = jnp.pad(jnp.transpose(se_w1), ((0, cout_p - cout), (0, 0))).astype(jnp.float32)
    w2t = jnp.pad(jnp.transpose(se_w2), ((0, 0), (0, cout_p - cout))).astype(jnp.float32)
    gate = _se_gate(sums, w1t, w2t, 1.0 / float(h * w))
    out = _se_apply(a2, gate, cout)                               # (N,H,W,Cout) f32

    return jnp.transpose(out, (0, 3, 1, 2))                       # back to NCHW


# ---------------------------------------------------------------------------
# Pure-JAX reference (mirrors the kernel's bf16 operand / storage precision)
# ---------------------------------------------------------------------------
def _reference(x, conv1_w, conv1_b, bn1_g, bn1_b, bn1_m, bn1_v,
               conv2_w, conv2_b, bn2_g, bn2_b, bn2_m, bn2_v,
               se_w1, se_w2, eps=1e-5):
    def conv_bn_relu(x, w, b, g, beta, m, v):
        scale = g / jnp.sqrt(v + eps)
        wf = (w * scale[:, None, None, None]).astype(jnp.bfloat16)
        shift = (b - m) * scale + beta
        y = jax.lax.conv_general_dilated(
            x.astype(jnp.bfloat16), wf, window_strides=(1, 1),
            padding=((1, 1), (1, 1)),
            dimension_numbers=("NCHW", "OIHW", "NCHW"),
            preferred_element_type=jnp.float32)
        return jnp.maximum(y + shift[None, :, None, None], 0.0)

    a1 = conv_bn_relu(x, conv1_w, conv1_b, bn1_g, bn1_b, bn1_m, bn1_v)
    a2 = conv_bn_relu(a1, conv2_w, conv2_b, bn2_g, bn2_b, bn2_m, bn2_v)
    pooled = jnp.mean(a2, axis=(2, 3))                            # f32 pool
    h1 = jnp.maximum(pooled @ se_w1.T, 0.0)
    gate = jax.nn.sigmoid(h1 @ se_w2.T)
    a2_b = a2.astype(jnp.bfloat16).astype(jnp.float32)            # bf16 storage
    return a2_b * gate[:, :, None, None]


if __name__ == "__main__":
    n, cin, h, w = 2, 4, 16, 16
    cmid, cout, reduction = 8, 16, 8

    key = jax.random.PRNGKey(0)
    ks = jax.random.split(key, 11)

    x = jax.random.normal(ks[0], (n, cin, h, w), dtype=jnp.float32)
    conv1_w = 0.1 * jax.random.normal(ks[1], (cmid, cin, 3, 3), jnp.float32)
    conv1_b = 0.05 * jax.random.normal(ks[2], (cmid,), jnp.float32)
    conv2_w = 0.1 * jax.random.normal(ks[3], (cout, cmid, 3, 3), jnp.float32)
    conv2_b = 0.05 * jax.random.normal(ks[4], (cout,), jnp.float32)
    bn1_g = 1.0 + 0.1 * jax.random.normal(ks[5], (cmid,), jnp.float32)
    bn1_b = 0.05 * jax.random.normal(ks[6], (cmid,), jnp.float32)
    bn1_m = 0.1 * jax.random.normal(ks[7], (cmid,), jnp.float32)
    bn1_v = 1.0 + 0.1 * jax.random.uniform(ks[8], (cmid,), jnp.float32)
    bn2_g = jnp.full((cout,), 1.1, jnp.float32)
    bn2_b = jnp.full((cout,), 0.02, jnp.float32)
    bn2_m = jnp.full((cout,), 0.05, jnp.float32)
    bn2_v = jnp.full((cout,), 0.9, jnp.float32)
    se_w1 = 0.3 * jax.random.normal(ks[9], (cout // reduction, cout), jnp.float32)
    se_w2 = 0.3 * jax.random.normal(ks[10], (cout, cout // reduction), jnp.float32)

    args = (x, conv1_w, conv1_b, bn1_g, bn1_b, bn1_m, bn1_v,
            conv2_w, conv2_b, bn2_g, bn2_b, bn2_m, bn2_v, se_w1, se_w2)

    out = jax.block_until_ready(vgg_block_forward(*args))
    ref = _reference(*args)

    assert out.shape == (n, cout, h, w), out.shape
    max_err = float(jnp.max(jnp.abs(out - ref)))
    assert jnp.allclose(out, ref, atol=5e-3, rtol=5e-3), max_err
    print("KERNEL_OK")
</pallas_src>

<mosaic_0001>
module attributes {stable_mosaic.version = 11 : i64} {
  func.func @_conv_bn_relu_kernel(%arg0: i32, %arg1: i32, %arg2: memref<1x1x18x128xbf16, #tpu.memory_space<vmem>>, %arg3: memref<1x16x18x128xbf16, #tpu.memory_space<vmem>>, %arg4: memref<1x1x18x128xbf16, #tpu.memory_space<vmem>>, %arg5: memref<1152x128xbf16, #tpu.memory_space<vmem>>, %arg6: memref<1x128xf32, #tpu.memory_space<vmem>>, %arg7: memref<1x16x18x128xbf16, #tpu.memory_space<vmem>>) attributes {dimension_semantics = [#tpu.dimension_semantics<parallel>, #tpu.dimension_semantics<parallel>], iteration_bounds = array<i64: 2, 1>, scalar_prefetch = 0 : i64, scratch_operands = 0 : i64, tpu.core_type = #tpu.core_type<tc>, window_params = [{transform_indices = @transform_0, window_bounds = array<i64: 1, 1, 18, 128>}, {transform_indices = @transform_1, window_bounds = array<i64: 1, 16, 18, 128>}, {transform_indices = @transform_2, window_bounds = array<i64: 1, 1, 18, 128>}, {pipeline_mode = #tpu.pipeline_mode<synchronous>, transform_indices = @transform_3, window_bounds = array<i64: 1152, 128>}, {pipeline_mode = #tpu.pipeline_mode<synchronous>, transform_indices = @transform_4, window_bounds = array<i64: 1, 128>}, {transform_indices = @transform_5, window_bounds = array<i64: 1, 16, 18, 128>}]} {
    %c0_i32 = arith.constant 0 : i32
    %0 = arith.cmpi eq, %arg1, %c0_i32 : i32
    %true = arith.constant true
    %1 = arith.xori %0, %true : i1
    %2 = arith.extui %1 : i1 to i32
    %3 = arith.sitofp %2 : i32 to f32
    %4 = arith.truncf %3 : f32 to bf16
    %c0_i32_0 = arith.constant 0 : i32
    %5 = arith.cmpi eq, %arg1, %c0_i32_0 : i32
    %true_1 = arith.constant true
    %6 = arith.xori %5, %true_1 : i1
    %7 = arith.extui %6 : i1 to i32
    %8 = arith.sitofp %7 : i32 to f32
    %9 = arith.truncf %8 : f32 to bf16
    %c0 = arith.constant 0 : index
    %c0_2 = arith.constant 0 : index
    %c0_3 = arith.constant 0 : index
    %c0_4 = arith.constant 0 : index
    %10 = vector.load %arg2[%c0, %c0_2, %c0_3, %c0_4] : memref<1x1x18x128xbf16, #tpu.memory_space<vmem>>, vector<1x1x18x128xbf16>
    %11 = vector.shape_cast %10 : vector<1x1x18x128xbf16> to vector<1x18x128xbf16>
    %12 = vector.broadcast %4 : bf16 to vector<1x18x128xbf16>
    %13 = arith.mulf %11, %12 : vector<1x18x128xbf16>
    %c0_5 = arith.constant 0 : index
    %c0_6 = arith.constant 0 : index
    %c0_7 = arith.constant 0 : index
    %c0_8 = arith.constant 0 : index
    %14 = vector.load %arg3[%c0_5, %c0_6, %c0_7, %c0_8] : memref<1x16x18x128xbf16, #tpu.memory_space<vmem>>, vector<1x16x18x128xbf16>
    %15 = vector.shape_cast %14 : vector<1x16x18x128xbf16> to vector<16x18x128xbf16>
    %c0_9 = arith.constant 0 : index
    %c0_10 = arith.constant 0 : index
    %c0_11 = arith.constant 0 : index
    %c0_12 = arith.constant 0 : index
    %16 = vector.load %arg4[%c0_9, %c0_10, %c0_11, %c0_12] : memref<1x1x18x128xbf16, #tpu.memory_space<vmem>>, vector<1x1x18x128xbf16>
    %17 = vector.shape_cast %16 : vector<1x1x18x128xbf16> to vector<1x18x128xbf16>
    %18 = vector.broadcast %9 : bf16 to vector<1x18x128xbf16>
    %19 = arith.mulf %17, %18 : vector<1x18x128xbf16>
    %20 = tpu.concatenate %13, %15, %19 in 0 : vector<1x18x128xbf16>, vector<16x18x128xbf16>, vector<1x18x128xbf16> -> vector<18x18x128xbf16>
    %21 = vector.extract_strided_slice %20 {offsets = [0, 0, 0], sizes = [16, 16, 128], strides = [1, 1, 1]} : vector<18x18x128xbf16> to vector<16x16x128xbf16>
    %22 = vector.shape_cast %21 : vector<16x16x128xbf16> to vector<256x128xbf16>
    %23 = vector.extract_strided_slice %20 {offsets = [0, 1, 0], sizes = [16, 16, 128], strides = [1, 1, 1]} : vector<18x18x128xbf16> to vector<16x16x128xbf16>
    %24 = vector.shape_cast %23 : vector<16x16x128xbf16> to vector<256x128xbf16>
    %25 = vector.extract_strided_slice %20 {offsets = [0, 2, 0], sizes = [16, 16, 128], strides = [1, 1, 1]} : vector<18x18x128xbf16> to vector<16x16x128xbf16>
    %26 = vector.shape_cast %25 : vector<16x16x128xbf16> to vector<256x128xbf16>
    %27 = vector.extract_strided_slice %20 {offsets = [1, 0, 0], sizes = [16, 16, 128], strides = [1, 1, 1]} : vector<18x18x128xbf16> to vector<16x16x128xbf16>
    %28 = vector.shape_cast %27 : vector<16x16x128xbf16> to vector<256x128xbf16>
    %29 = vector.extract_strided_slice %20 {offsets = [1, 1, 0], sizes = [16, 16, 128], strides = [1, 1, 1]} : vector<18x18x128xbf16> to vector<16x16x128xbf16>
    %30 = vector.shape_cast %29 : vector<16x16x128xbf16> to vector<256x128xbf16>
    %31 = vector.extract_strided_slice %20 {offsets = [1, 2, 0], sizes = [16, 16, 128], strides = [1, 1, 1]} : vector<18x18x128xbf16> to vector<16x16x128xbf16>
    %32 = vector.shape_cast %31 : vector<16x16x128xbf16> to vector<256x128xbf16>
    %33 = vector.extract_strided_slice %20 {offsets = [2, 0, 0], sizes = [16, 16, 128], strides = [1, 1, 1]} : vector<18x18x128xbf16> to vector<16x16x128xbf16>
    %34 = vector.shape_cast %33 : vector<16x16x128xbf16> to vector<256x128xbf16>
    %35 = vector.extract_strided_slice %20 {offsets = [2, 1, 0], sizes = [16, 16, 128], strides = [1, 1, 1]} : vector<18x18x128xbf16> to vector<16x16x128xbf16>
    %36 = vector.shape_cast %35 : vector<16x16x128xbf16> to vector<256x128xbf16>
    %37 = vector.extract_strided_slice %20 {offsets = [2, 2, 0], sizes = [16, 16, 128], strides = [1, 1, 1]} : vector<18x18x128xbf16> to vector<16x16x128xbf16>
    %38 = vector.shape_cast %37 : vector<16x16x128xbf16> to vector<256x128xbf16>
    %39 = tpu.concatenate %22, %24, %26, %28, %30, %32, %34, %36, %38 in 1 : vector<256x128xbf16>, vector<256x128xbf16>, vector<256x128xbf16>, vector<256x128xbf16>, vector<256x128xbf16>, vector<256x128xbf16>, vector<256x128xbf16>, vector<256x128xbf16>, vector<256x128xbf16> -> vector<256x1152xbf16>
    %c0_13 = arith.constant 0 : index
    %c0_14 = arith.constant 0 : index
    %40 = vector.load %arg5[%c0_13, %c0_14] : memref<1152x128xbf16, #tpu.memory_space<vmem>>, vector<1152x128xbf16>
    %cst = arith.constant dense<0.000000e+00> : vector<256x128xf32>
    %41 = tpu.matmul %39, %40, %cst {dimension_numbers = #tpu.dot_dimension_numbers<[1], [0], [0], [1], [0, 0, 1, 1], [], []>} : vector<256x1152xbf16>, vector<1152x128xbf16>, vector<256x128xf32> -> vector<256x128xf32>
    %c0_15 = arith.constant 0 : index
    %c0_16 = arith.constant 0 : index
    %42 = vector.load %arg6[%c0_15, %c0_16] : memref<1x128xf32, #tpu.memory_space<vmem>>, vector<1x128xf32>
    %43 = vector.broadcast %42 : vector<1x128xf32> to vector<256x128xf32>
    %44 = arith.addf %41, %43 : vector<256x128xf32>
    %cst_17 = arith.constant 0.000000e+00 : f32
    %45 = vector.broadcast %cst_17 : f32 to vector<256x128xf32>
    %46 = arith.maximumf %44, %45 : vector<256x128xf32>
    %47 = vector.shape_cast %46 : vector<256x128xf32> to vector<16x16x128xf32>
    %48 = arith.truncf %47 : vector<16x16x128xf32> to vector<16x16x128xbf16>
    %cst_18 = arith.constant 0.000000e+00 : bf16
    %49 = vector.broadcast %cst_18 : bf16 to vector<16x1x128xbf16>
    %50 = tpu.concatenate %49, %48, %49 in 1 : vector<16x1x128xbf16>, vector<16x16x128xbf16>, vector<16x1x128xbf16> -> vector<16x18x128xbf16>
    %51 = vector.shape_cast %50 : vector<16x18x128xbf16> to vector<1x16x18x128xbf16>
    %c0_19 = arith.constant 0 : index
    %c0_20 = arith.constant 0 : index
    %c0_21 = arith.constant 0 : index
    %c0_22 = arith.constant 0 : index
    %52 = vector.load %arg7[%c0_19, %c0_20, %c0_21, %c0_22] : memref<1x16x18x128xbf16, #tpu.memory_space<vmem>>, vector<1x16x18x128xbf16>
    tpu.vector_store %arg7[%c0_19, %c0_20, %c0_21, %c0_22], %51 {strides = array<i32>} : memref<1x16x18x128xbf16, #tpu.memory_space<vmem>>, vector<1x16x18x128xbf16>,
    return
  }
  func.func @transform_0(%arg0: i32, %arg1: i32) -> (i32, i32, i32, i32) {
    %c16_i32 = arith.constant 16 : i32
    %0 = arith.muli %arg1, %c16_i32 : i32
    %c1_i32 = arith.constant 1 : i32
    %1 = arith.subi %0, %c1_i32 : i32
    %c0_i32 = arith.constant 0 : i32
    %2 = arith.maxsi %1, %c0_i32 : i32
    %c0_i32_0 = arith.constant 0 : i32
    %c0_i32_1 = arith.constant 0 : i32
    %c0_i32_2 = arith.constant 0 : i32
    return %arg0, %2, %c0_i32_0, %c0_i32_1 : i32, i32, i32, i32
  }
  func.func @transform_1(%arg0: i32, %arg1: i32) -> (i32, i32, i32, i32) {
    %c0_i32 = arith.constant 0 : i32
    %c0_i32_0 = arith.constant 0 : i32
    %c0_i32_1 = arith.constant 0 : i32
    return %arg0, %arg1, %c0_i32, %c0_i32_0 : i32, i32, i32, i32
  }
  func.func @transform_2(%arg0: i32, %arg1: i32) -> (i32, i32, i32, i32) {
    %c16_i32 = arith.constant 16 : i32
    %0 = arith.muli %arg1, %c16_i32 : i32
    %c16_i32_0 = arith.constant 16 : i32
    %1 = arith.addi %0, %c16_i32_0 : i32
    %c15_i32 = arith.constant 15 : i32
    %2 = arith.minsi %1, %c15_i32 : i32
    %c0_i32 = arith.constant 0 : i32
    %c0_i32_1 = arith.constant 0 : i32
    %c0_i32_2 = arith.constant 0 : i32
    return %arg0, %2, %c0_i32, %c0_i32_1 : i32, i32, i32, i32
  }
  func.func @transform_3(%arg0: i32, %arg1: i32) -> (i32, i32) {
    %c0_i32 = arith.constant 0 : i32
    %c0_i32_0 = arith.constant 0 : i32
    %c0_i32_1 = arith.constant 0 : i32
    return %c0_i32, %c0_i32_0 : i32, i32
  }
  func.func @transform_4(%arg0: i32, %arg1: i32) -> (i32, i32) {
    %c0_i32 = arith.constant 0 : i32
    %c0_i32_0 = arith.constant 0 : i32
    %c0_i32_1 = arith.constant 0 : i32
    return %c0_i32, %c0_i32_0 : i32, i32
  }
  func.func @transform_5(%arg0: i32, %arg1: i32) -> (i32, i32, i32, i32) {
    %c0_i32 = arith.constant 0 : i32
    %c0_i32_0 = arith.constant 0 : i32
    %c0_i32_1 = arith.constant 0 : i32
    return %arg0, %arg1, %c0_i32, %c0_i32_0 : i32, i32, i32, i32
  }
}

module attributes {stable_mosaic.version = 11 : i64} {
  func.func @_conv_bn_relu_kernel(%arg0: i32, %arg1: i32, %arg2: memref<1x1x18x128xbf16, #tpu.memory_space<vmem>>, %arg3: memref<1x16x18x128xbf16, #tpu.memory_space<vmem>>, %arg4: memref<1x1x18x128xbf16, #tpu.memory_space<vmem>>, %arg5: memref<1152x128xbf16, #tpu.memory_space<vmem>>, %arg6: memref<1x128xf32, #tpu.memory_space<vmem>>, %arg7: memref<1x16x16x128xbf16, #tpu.memory_space<vmem>>, %arg8: memref<1x1x8x128xf32, #tpu.memory_space<vmem>>) attributes {dimension_semantics = [#tpu.dimension_semantics<parallel>, #tpu.dimension_semantics<parallel>], iteration_bounds = array<i64: 2, 1>, scalar_prefetch = 0 : i64, scratch_operands = 0 : i64, tpu.core_type = #tpu.core_type<tc>, window_params = [{transform_indices = @transform_0, window_bounds = array<i64: 1, 1, 18, 128>}, {transform_indices = @transform_1, window_bounds = array<i64: 1, 16, 18, 128>}, {transform_indices = @transform_2, window_bounds = array<i64: 1, 1, 18, 128>}, {pipeline_mode = #tpu.pipeline_mode<synchronous>, transform_indices = @transform_3, window_bounds = array<i64: 1152, 128>}, {pipeline_mode = #tpu.pipeline_mode<synchronous>, transform_indices = @transform_4, window_bounds = array<i64: 1, 128>}, {transform_indices = @transform_5, window_bounds = array<i64: 1, 16, 16, 128>}, {transform_indices = @transform_6, window_bounds = array<i64: 1, 1, 8, 128>}]} {
    %c0_i32 = arith.constant 0 : i32
    %0 = arith.cmpi eq, %arg1, %c0_i32 : i32
    %true = arith.constant true
    %1 = arith.xori %0, %true : i1
    %2 = arith.extui %1 : i1 to i32
    %3 = arith.sitofp %2 : i32 to f32
    %4 = arith.truncf %3 : f32 to bf16
    %c0_i32_0 = arith.constant 0 : i32
    %5 = arith.cmpi eq, %arg1, %c0_i32_0 : i32
    %true_1 = arith.constant true
    %6 = arith.xori %5, %true_1 : i1
    %7 = arith.extui %6 : i1 to i32
    %8 = arith.sitofp %7 : i32 to f32
    %9 = arith.truncf %8 : f32 to bf16
    %c0 = arith.constant 0 : index
    %c0_2 = arith.constant 0 : index
    %c0_3 = arith.constant 0 : index
    %c0_4 = arith.constant 0 : index
    %10 = vector.load %arg2[%c0, %c0_2, %c0_3, %c0_4] : memref<1x1x18x128xbf16, #tpu.memory_space<vmem>>, vector<1x1x18x128xbf16>
    %11 = vector.shape_cast %10 : vector<1x1x18x128xbf16> to vector<1x18x128xbf16>
    %12 = vector.broadcast %4 : bf16 to vector<1x18x128xbf16>
    %13 = arith.mulf %11, %12 : vector<1x18x128xbf16>
    %c0_5 = arith.constant 0 : index
    %c0_6 = arith.constant 0 : index
    %c0_7 = arith.constant 0 : index
    %c0_8 = arith.constant 0 : index
    %14 = vector.load %arg3[%c0_5, %c0_6, %c0_7, %c0_8] : memref<1x16x18x128xbf16, #tpu.memory_space<vmem>>, vector<1x16x18x128xbf16>
    %15 = vector.shape_cast %14 : vector<1x16x18x128xbf16> to vector<16x18x128xbf16>
    %c0_9 = arith.constant 0 : index
    %c0_10 = arith.constant 0 : index
    %c0_11 = arith.constant 0 : index
    %c0_12 = arith.constant 0 : index
    %16 = vector.load %arg4[%c0_9, %c0_10, %c0_11, %c0_12] : memref<1x1x18x128xbf16, #tpu.memory_space<vmem>>, vector<1x1x18x128xbf16>
    %17 = vector.shape_cast %16 : vector<1x1x18x128xbf16> to vector<1x18x128xbf16>
    %18 = vector.broadcast %9 : bf16 to vector<1x18x128xbf16>
    %19 = arith.mulf %17, %18 : vector<1x18x128xbf16>
    %20 = tpu.concatenate %13, %15, %19 in 0 : vector<1x18x128xbf16>, vector<16x18x128xbf16>, vector<1x18x128xbf16> -> vector<18x18x128xbf16>
    %21 = vector.extract_strided_slice %20 {offsets = [0, 0, 0], sizes = [16, 16, 128], strides = [1, 1, 1]} : vector<18x18x128xbf16> to vector<16x16x128xbf16>
    %22 = vector.shape_cast %21 : vector<16x16x128xbf16> to vector<256x128xbf16>
    %23 = vector.extract_strided_slice %20 {offsets = [0, 1, 0], sizes = [16, 16, 128], strides = [1, 1, 1]} : vector<18x18x128xbf16> to vector<16x16x128xbf16>
    %24 = vector.shape_cast %23 : vector<16x16x128xbf16> to vector<256x128xbf16>
    %25 = vector.extract_strided_slice %20 {offsets = [0, 2, 0], sizes = [16, 16, 128], strides = [1, 1, 1]} : vector<18x18x128xbf16> to vector<16x16x128xbf16>
    %26 = vector.shape_cast %25 : vector<16x16x128xbf16> to vector<256x128xbf16>
    %27 = vector.extract_strided_slice %20 {offsets = [1, 0, 0], sizes = [16, 16, 128], strides = [1, 1, 1]} : vector<18x18x128xbf16> to vector<16x16x128xbf16>
    %28 = vector.shape_cast %27 : vector<16x16x128xbf16> to vector<256x128xbf16>
    %29 = vector.extract_strided_slice %20 {offsets = [1, 1, 0], sizes = [16, 16, 128], strides = [1, 1, 1]} : vector<18x18x128xbf16> to vector<16x16x128xbf16>
    %30 = vector.shape_cast %29 : vector<16x16x128xbf16> to vector<256x128xbf16>
    %31 = vector.extract_strided_slice %20 {offsets = [1, 2, 0], sizes = [16, 16, 128], strides = [1, 1, 1]} : vector<18x18x128xbf16> to vector<16x16x128xbf16>
    %32 = vector.shape_cast %31 : vector<16x16x128xbf16> to vector<256x128xbf16>
    %33 = vector.extract_strided_slice %20 {offsets = [2, 0, 0], sizes = [16, 16, 128], strides = [1, 1, 1]} : vector<18x18x128xbf16> to vector<16x16x128xbf16>
    %34 = vector.shape_cast %33 : vector<16x16x128xbf16> to vector<256x128xbf16>
    %35 = vector.extract_strided_slice %20 {offsets = [2, 1, 0], sizes = [16, 16, 128], strides = [1, 1, 1]} : vector<18x18x128xbf16> to vector<16x16x128xbf16>
    %36 = vector.shape_cast %35 : vector<16x16x128xbf16> to vector<256x128xbf16>
    %37 = vector.extract_strided_slice %20 {offsets = [2, 2, 0], sizes = [16, 16, 128], strides = [1, 1, 1]} : vector<18x18x128xbf16> to vector<16x16x128xbf16>
    %38 = vector.shape_cast %37 : vector<16x16x128xbf16> to vector<256x128xbf16>
    %39 = tpu.concatenate %22, %24, %26, %28, %30, %32, %34, %36, %38 in 1 : vector<256x128xbf16>, vector<256x128xbf16>, vector<256x128xbf16>, vector<256x128xbf16>, vector<256x128xbf16>, vector<256x128xbf16>, vector<256x128xbf16>, vector<256x128xbf16>, vector<256x128xbf16> -> vector<256x1152xbf16>
    %c0_13 = arith.constant 0 : index
    %c0_14 = arith.constant 0 : index
    %40 = vector.load %arg5[%c0_13, %c0_14] : memref<1152x128xbf16, #tpu.memory_space<vmem>>, vector<1152x128xbf16>
    %cst = arith.constant dense<0.000000e+00> : vector<256x128xf32>
    %41 = tpu.matmul %39, %40, %cst {dimension_numbers = #tpu.dot_dimension_numbers<[1], [0], [0], [1], [0, 0, 1, 1], [], []>} : vector<256x1152xbf16>, vector<1152x128xbf16>, vector<256x128xf32> -> vector<256x128xf32>
    %c0_15 = arith.constant 0 : index
    %c0_16 = arith.constant 0 : index
    %42 = vector.load %arg6[%c0_15, %c0_16] : memref<1x128xf32, #tpu.memory_space<vmem>>, vector<1x128xf32>
    %43 = vector.broadcast %42 : vector<1x128xf32> to vector<256x128xf32>
    %44 = arith.addf %41, %43 : vector<256x128xf32>
    %cst_17 = arith.constant 0.000000e+00 : f32
    %45 = vector.broadcast %cst_17 : f32 to vector<256x128xf32>
    %46 = arith.maximumf %44, %45 : vector<256x128xf32>
    %47 = vector.shape_cast %46 : vector<256x128xf32> to vector<16x16x128xf32>
    %48 = arith.truncf %47 : vector<16x16x128xf32> to vector<16x16x128xbf16>
    %49 = vector.shape_cast %48 : vector<16x16x128xbf16> to vector<1x16x16x128xbf16>
    %c0_18 = arith.constant 0 : index
    %c0_19 = arith.constant 0 : index
    %c0_20 = arith.constant 0 : index
    %c0_21 = arith.constant 0 : index
    %50 = vector.load %arg7[%c0_18, %c0_19, %c0_20, %c0_21] : memref<1x16x16x128xbf16, #tpu.memory_space<vmem>>, vector<1x16x16x128xbf16>
    tpu.vector_store %arg7[%c0_18, %c0_19, %c0_20, %c0_21], %49 {strides = array<i32>} : memref<1x16x16x128xbf16, #tpu.memory_space<vmem>>, vector<1x16x16x128xbf16>,
    %cst_22 = arith.constant dense<0.000000e+00> : vector<128xf32>
    %51 = vector.multi_reduction <add>, %46, %cst_22 [0] : vector<256x128xf32> to vector<128xf32>
    %52 = vector.shape_cast %51 : vector<128xf32> to vector<1x1x1x128xf32>
    %53 = vector.shape_cast %52 : vector<1x1x1x128xf32> to vector<1x1x1x128xf32>
    %54 = vector.broadcast %53 : vector<1x1x1x128xf32> to vector<1x1x8x128xf32>
    %c0_23 = arith.constant 0 : index
    %c0_24 = arith.constant 0 : index
    %c0_25 = arith.constant 0 : index
    %c0_26 = arith.constant 0 : index
    %55 = vector.load %arg8[%c0_23, %c0_24, %c0_25, %c0_26] : memref<1x1x8x128xf32, #tpu.memory_space<vmem>>, vector<1x1x8x128xf32>
    tpu.vector_store %arg8[%c0_23, %c0_24, %c0_25, %c0_26], %54 {strides = array<i32>} : memref<1x1x8x128xf32, #tpu.memory_space<vmem>>, vector<1x1x8x128xf32>,
    return
  }
  func.func @transform_0(%arg0: i32, %arg1: i32) -> (i32, i32, i32, i32) {
    %c16_i32 = arith.constant 16 : i32
    %0 = arith.muli %arg1, %c16_i32 : i32
    %c1_i32 = arith.constant 1 : i32
    %1 = arith.subi %0, %c1_i32 : i32
    %c0_i32 = arith.constant 0 : i32
    %2 = arith.maxsi %1, %c0_i32 : i32
    %c0_i32_0 = arith.constant 0 : i32
    %c0_i32_1 = arith.constant 0 : i32
    %c0_i32_2 = arith.constant 0 : i32
    return %arg0, %2, %c0_i32_0, %c0_i32_1 : i32, i32, i32, i32
  }
  func.func @transform_1(%arg0: i32, %arg1: i32) -> (i32, i32, i32, i32) {
    %c0_i32 = arith.constant 0 : i32
    %c0_i32_0 = arith.constant 0 : i32
    %c0_i32_1 = arith.constant 0 : i32
    return %arg0, %arg1, %c0_i32, %c0_i32_0 : i32, i32, i32, i32
  }
  func.func @transform_2(%arg0: i32, %arg1: i32) -> (i32, i32, i32, i32) {
    %c16_i32 = arith.constant 16 : i32
    %0 = arith.muli %arg1, %c16_i32 : i32
    %c16_i32_0 = arith.constant 16 : i32
    %1 = arith.addi %0, %c16_i32_0 : i32
    %c15_i32 = arith.constant 15 : i32
    %2 = arith.minsi %1, %c15_i32 : i32
    %c0_i32 = arith.constant 0 : i32
    %c0_i32_1 = arith.constant 0 : i32
    %c0_i32_2 = arith.constant 0 : i32
    return %arg0, %2, %c0_i32, %c0_i32_1 : i32, i32, i32, i32
  }
  func.func @transform_3(%arg0: i32, %arg1: i32) -> (i32, i32) {
    %c0_i32 = arith.constant 0 : i32
    %c0_i32_0 = arith.constant 0 : i32
    %c0_i32_1 = arith.constant 0 : i32
    return %c0_i32, %c0_i32_0 : i32, i32
  }
  func.func @transform_4(%arg0: i32, %arg1: i32) -> (i32, i32) {
    %c0_i32 = arith.constant 0 : i32
    %c0_i32_0 = arith.constant 0 : i32
    %c0_i32_1 = arith.constant 0 : i32
    return %c0_i32, %c0_i32_0 : i32, i32
  }
  func.func @transform_5(%arg0: i32, %arg1: i32) -> (i32, i32, i32, i32) {
    %c0_i32 = arith.constant 0 : i32
    %c0_i32_0 = arith.constant 0 : i32
    %c0_i32_1 = arith.constant 0 : i32
    return %arg0, %arg1, %c0_i32, %c0_i32_0 : i32, i32, i32, i32
  }
  func.func @transform_6(%arg0: i32, %arg1: i32) -> (i32, i32, i32, i32) {
    %c0_i32 = arith.constant 0 : i32
    %c0_i32_0 = arith.constant 0 : i32
    %c0_i32_1 = arith.constant 0 : i32
    return %arg0, %arg1, %c0_i32, %c0_i32_0 : i32, i32, i32, i32
  }
}

module attributes {stable_mosaic.version = 11 : i64} {
  func.func @_se_apply_kernel(%arg0: i32, %arg1: i32, %arg2: memref<1x16x16x128xbf16, #tpu.memory_space<vmem>>, %arg3: memref<1x1x128xf32, #tpu.memory_space<vmem>>, %arg4: memref<1x16x16x16xf32, #tpu.memory_space<vmem>>) attributes {dimension_semantics = [#tpu.dimension_semantics<parallel>, #tpu.dimension_semantics<parallel>], iteration_bounds = array<i64: 2, 1>, scalar_prefetch = 0 : i64, scratch_operands = 0 : i64, tpu.core_type = #tpu.core_type<tc>, window_params = [{transform_indices = @transform_0, window_bounds = array<i64: 1, 16, 16, 128>}, {transform_indices = @transform_1, window_bounds = array<i64: 1, 1, 128>}, {transform_indices = @transform_2, window_bounds = array<i64: 1, 16, 16, 16>}]} {
    %c0 = arith.constant 0 : index
    %c0_0 = arith.constant 0 : index
    %c0_1 = arith.constant 0 : index
    %0 = vector.load %arg3[%c0, %c0_0, %c0_1] : memref<1x1x128xf32, #tpu.memory_space<vmem>>, vector<1x1x16xf32>
    %1 = vector.shape_cast %0 : vector<1x1x16xf32> to vector<16xf32>
    %2 = vector.shape_cast %1 : vector<16xf32> to vector<1x1x1x16xf32>
    %c0_2 = arith.constant 0 : index
    %c0_3 = arith.constant 0 : index
    %c0_4 = arith.constant 0 : index
    %c0_5 = arith.constant 0 : index
    %3 = vector.load %arg2[%c0_2, %c0_3, %c0_4, %c0_5] : memref<1x16x16x128xbf16, #tpu.memory_space<vmem>>, vector<1x16x16x128xbf16>
    %4 = vector.extract_strided_slice %3 {offsets = [0, 0, 0, 0], sizes = [1, 16, 16, 16], strides = [1, 1, 1, 1]} : vector<1x16x16x128xbf16> to vector<1x16x16x16xbf16>
    %5 = arith.extf %4 : vector<1x16x16x16xbf16> to vector<1x16x16x16xf32>
    %6 = vector.broadcast %2 : vector<1x1x1x16xf32> to vector<1x16x16x16xf32>
    %7 = arith.mulf %5, %6 : vector<1x16x16x16xf32>
    %c0_6 = arith.constant 0 : index
    %c0_7 = arith.constant 0 : index
    %c0_8 = arith.constant 0 : index
    %c0_9 = arith.constant 0 : index
    %8 = vector.load %arg4[%c0_6, %c0_7, %c0_8, %c0_9] : memref<1x16x16x16xf32, #tpu.memory_space<vmem>>, vector<1x16x16x16xf32>
    tpu.vector_store %arg4[%c0_6, %c0_7, %c0_8, %c0_9], %7 {strides = array<i32>} : memref<1x16x16x16xf32, #tpu.memory_space<vmem>>, vector<1x16x16x16xf32>,
    return
  }
  func.func @transform_0(%arg0: i32, %arg1: i32) -> (i32, i32, i32, i32) {
    %c0_i32 = arith.constant 0 : i32
    %c0_i32_0 = arith.constant 0 : i32
    %c0_i32_1 = arith.constant 0 : i32
    return %arg0, %arg1, %c0_i32, %c0_i32_0 : i32, i32, i32, i32
  }
  func.func @transform_1(%arg0: i32, %arg1: i32) -> (i32, i32, i32) {
    %c0_i32 = arith.constant 0 : i32
    %c0_i32_0 = arith.constant 0 : i32
    %c0_i32_1 = arith.constant 0 : i32
    return %arg0, %c0_i32, %c0_i32_0 : i32, i32, i32
  }
  func.func @transform_2(%arg0: i32, %arg1: i32) -> (i32, i32, i32, i32) {
    %c0_i32 = arith.constant 0 : i32
    %c0_i32_0 = arith.constant 0 : i32
    %c0_i32_1 = arith.constant 0 : i32
    return %arg0, %arg1, %c0_i32, %c0_i32_0 : i32, i32, i32, i32
  }
}

module attributes {stable_mosaic.version = 11 : i64} {
  func.func @_se_gate_kernel(%arg0: i32, %arg1: memref<2x1x8x128xf32, #tpu.memory_space<vmem>>, %arg2: memref<128x2xf32, #tpu.memory_space<vmem>>, %arg3: memref<2x128xf32, #tpu.memory_space<vmem>>, %arg4: memref<2x1x128xf32, #tpu.memory_space<vmem>>) attributes {dimension_semantics = [#tpu.dimension_semantics<arbitrary>], iteration_bounds = array<i64: 1>, scalar_prefetch = 0 : i64, scratch_operands = 0 : i64, tpu.core_type = #tpu.core_type<tc>, window_params = [{pipeline_mode = #tpu.pipeline_mode<synchronous>, transform_indices = @transform_0, window_bounds = array<i64: 2, 1, 8, 128>}, {pipeline_mode = #tpu.pipeline_mode<synchronous>, transform_indices = @transform_1, window_bounds = array<i64: 128, 2>}, {pipeline_mode = #tpu.pipeline_mode<synchronous>, transform_indices = @transform_2, window_bounds = array<i64: 2, 128>}, {pipeline_mode = #tpu.pipeline_mode<synchronous>, transform_indices = @transform_3, window_bounds = array<i64: 2, 1, 128>}]} {
    %c0 = arith.constant 0 : index
    %c0_0 = arith.constant 0 : index
    %c0_1 = arith.constant 0 : index
    %c0_2 = arith.constant 0 : index
    %0 = vector.load %arg1[%c0, %c0_0, %c0_1, %c0_2] : memref<2x1x8x128xf32, #tpu.memory_space<vmem>>, vector<2x1x8x128xf32>
    %1 = vector.extract_strided_slice %0 {offsets = [0, 0, 0, 0], sizes = [2, 1, 1, 128], strides = [1, 1, 1, 1]} : vector<2x1x8x128xf32> to vector<2x1x1x128xf32>
    %2 = vector.shape_cast %1 : vector<2x1x1x128xf32> to vector<2x1x128xf32>
    %cst = arith.constant dense<0.000000e+00> : vector<2x128xf32>
    %3 = vector.multi_reduction <add>, %2, %cst [1] : vector<2x1x128xf32> to vector<2x128xf32>
    %cst_3 = arith.constant 3.906250e-03 : f32
    %4 = vector.broadcast %cst_3 : f32 to vector<2x128xf32>
    %5 = arith.mulf %3, %4 : vector<2x128xf32>
    %c0_4 = arith.constant 0 : index
    %c0_5 = arith.constant 0 : index
    %6 = vector.load %arg2[%c0_4, %c0_5] : memref<128x2xf32, #tpu.memory_space<vmem>>, vector<128x2xf32>
    %cst_6 = arith.constant dense<0.000000e+00> : vector<2x2xf32>
    %7 = tpu.matmul %5, %6, %cst_6 {dimension_numbers = #tpu.dot_dimension_numbers<[1], [0], [0], [1], [0, 0, 1, 1], [], []>} : vector<2x128xf32>, vector<128x2xf32>, vector<2x2xf32> -> vector<2x2xf32>
    %cst_7 = arith.constant 0.000000e+00 : f32
    %8 = vector.broadcast %cst_7 : f32 to vector<2x2xf32>
    %9 = arith.maximumf %7, %8 : vector<2x2xf32>
    %c0_8 = arith.constant 0 : index
    %c0_9 = arith.constant 0 : index
    %10 = vector.load %arg3[%c0_8, %c0_9] : memref<2x128xf32, #tpu.memory_space<vmem>>, vector<2x128xf32>
    %cst_10 = arith.constant dense<0.000000e+00> : vector<2x128xf32>
    %11 = tpu.matmul %9, %10, %cst_10 {dimension_numbers = #tpu.dot_dimension_numbers<[1], [0], [0], [1], [0, 0, 1, 1], [], []>} : vector<2x2xf32>, vector<2x128xf32>, vector<2x128xf32> -> vector<2x128xf32>
    %cst_11 = arith.constant 0.000000e+00 : f32
    %12 = vector.broadcast %cst_11 : f32 to vector<2x128xf32>
    %13 = arith.subf %12, %11 : vector<2x128xf32>
    %14 = math.exp %13 : vector<2x128xf32>
    %cst_12 = arith.constant 1.000000e+00 : f32
    %15 = vector.broadcast %cst_12 : f32 to vector<2x128xf32>
    %16 = arith.addf %15, %14 : vector<2x128xf32>
    %cst_13 = arith.constant 1.000000e+00 : f32
    %17 = vector.broadcast %cst_13 : f32 to vector<2x128xf32>
    %18 = arith.divf %17, %16 : vector<2x128xf32>
    %19 = vector.shape_cast %18 : vector<2x128xf32> to vector<2x1x128xf32>
    %c0_14 = arith.constant 0 : index
    %c0_15 = arith.constant 0 : index
    %c0_16 = arith.constant 0 : index
    %20 = vector.load %arg4[%c0_14, %c0_15, %c0_16] : memref<2x1x128xf32, #tpu.memory_space<vmem>>, vector<2x1x128xf32>
    tpu.vector_store %arg4[%c0_14, %c0_15, %c0_16], %19 {strides = array<i32>} : memref<2x1x128xf32, #tpu.memory_space<vmem>>, vector<2x1x128xf32>,
    return
  }
  func.func @transform_0(%arg0: i32) -> (i32, i32, i32, i32) {
    %c0_i32 = arith.constant 0 : i32
    %c0_i32_0 = arith.constant 0 : i32
    %c0_i32_1 = arith.constant 0 : i32
    %c0_i32_2 = arith.constant 0 : i32
    %c0_i32_3 = arith.constant 0 : i32
    return %c0_i32, %c0_i32_0, %c0_i32_1, %c0_i32_2 : i32, i32, i32, i32
  }
  func.func @transform_1(%arg0: i32) -> (i32, i32) {
    %c0_i32 = arith.constant 0 : i32
    %c0_i32_0 = arith.constant 0 : i32
    %c0_i32_1 = arith.constant 0 : i32
    return %c0_i32, %c0_i32_0 : i32, i32
  }
  func.func @transform_2(%arg0: i32) -> (i32, i32) {
    %c0_i32 = arith.constant 0 : i32
    %c0_i32_0 = arith.constant 0 : i32
    %c0_i32_1 = arith.constant 0 : i32
    return %c0_i32, %c0_i32_0 : i32, i32
  }
  func.func @transform_3(%arg0: i32) -> (i32, i32, i32) {
    %c0_i32 = arith.constant 0 : i32
    %c0_i32_0 = arith.constant 0 : i32
    %c0_i32_1 = arith.constant 0 : i32
    %c0_i32_2 = arith.constant 0 : i32
    return %c0_i32, %c0_i32_0, %c0_i32_1 : i32, i32, i32
  }
}

</mosaic_0001>

<bundles_post_ra>
// kernel: vgg_block_forward.7
= control target key start
LH: loop header
LB: loop body
LE: loop exit
PB: predicated region body
PF: predicated region fallthrough
CT: control target
= control target key end

     0   :  { %s596_s9 = smov 0   ;;  %s598_s10 = smov 0   ;;  %s750_s0 = inlined_call_operand.vmem [shape: bf16[2,16,16,128], index: 0, kind: input, shape index: {}]   ;;  %s751_s1 = inlined_call_operand.vmem [shape: f32[2,1,128], index: 1, kind: input, shape index: {}]   ;;  %s752_s2 = inlined_call_operand.vmem [shape: f32[2,16,16,16], index: 2, kind: output, shape index: {}]  }
   0x1   :  { %s600_s11 = smov 0  }
   0x2 LB: > { %s24_s12 = sadd.s32 1, %s575_s10  ;;  %p444_p0 = scmp.ge.s32.totalorder %s579_s11, 1  ;;  %s579_s11 = sphi %s600_s11, %s12_s11   ;;  %s575_s10 = sphi %s598_s10, %s754_s10   ;;  %s571_s9 = sphi %s596_s9, %s753_s9  }
   0x3   : > { %p26_p1 = scmp.ge.s32.totalorder %s24_s12, 2  ;;  %p142_p2 = scmp.lt.s32.totalorder %s579_s11, 3 }
   0x5   : > { %s756_s12 = smov (%p26_p1, %s24_s12), 0  ;;  %p143_p3 = pnand %p444_p0, %p142_p2 }
   0x6   : > { %p178_p4 = scmp.lt.s32.totalorder (!%p143_p3), %s571_s9, 1 }
   0x7   : > { %146 = sbr.rel (%p143_p3) target bundleno = 52 (0x34), region = 28 }
   0xc   : > { %s758_s9 = smov (!%p178_p4, %s571_s9), 1  ;;  %vm302_vm0 = vcmask 130048  }
   0xd   : > { %s451_s13 = sshll.u32 %s758_s9, 7  ;;  %s190_s16 = scalar_lea.vmem %s751_s1, %s758_s9 }
   0xe   : > { %s620_s19 = scalar_lea.vmem %s750_s0, %s451_s13  ;;  %s452_s20 = sshll.u32 %s758_s9, 8  ;;  %v622_v0 = vld [vmem:[%s190_s16] ss:$0 sm:$0xff] }
   0xf   : > { %v454_v1 = vld [vmem:[%s620_s19] sm:$0xff]   ;;  %v517_v2 = vld [vmem:[%s620_s19 + $0x8] sm:$0xff]   ;;  %v518_v3 = vld [vmem:[%s620_s19 + $0x10] sm:$0xff]   ;;  %s631_s23 = scalar_lea.vmem %s752_s2, %s452_s20 }
  0x10   : > { %v455_v4 = vunpack.c.l.bf16 %v454_v1  ;;  %v456_v5 = vunpack.c.h.bf16 %v454_v1  ;;  %v459_v6 = vunpack.c.l.bf16 %v517_v2  ;;  %v460_v7 = vunpack.c.h.bf16 %v517_v2  ;;  %v519_v8 = vld [vmem:[%s620_s19 + $0x18] sm:$0xff]   ;;  %v520_v11 = vld [vmem:[%s620_s19 + $0x20] sm:$0xff]   ;;  %v521_v18 = vld [vmem:[%s620_s19 + $0x28] sm:$0xff]  }
  0x11   : > { %v463_v9 = vunpack.c.l.bf16 %v518_v3  ;;  %v464_v10 = vunpack.c.h.bf16 %v518_v3  ;;  %v467_v15 = vunpack.c.l.bf16 %v519_v8  ;;  %v468_v17 = vunpack.c.h.bf16 %v519_v8  ;;  %v522_v23 = vld [vmem:[%s620_s19 + $0x30] sm:$0xff]   ;;  %v523_v28 = vld [vmem:[%s620_s19 + $0x38] sm:$0xff]   ;;  %v524_v33 = vld [vmem:[%s620_s19 + $0x40] sm:$0xff]  }
  0x12   : > { %v270_v12 = vmul.f32 %v622_v0, %v455_v4  ;;  %v271_v13 = vmul.f32 %v622_v0, %v456_v5  ;;  %v272_v14 = vmul.f32 %v622_v0, %v459_v6  ;;  %v273_v16 = vmul.f32 %v622_v0, %v460_v7  ;;  %v525_v38 = vld [vmem:[%s620_s19 + $0x48] sm:$0xff]   ;;  %v526_v43 = vld [vmem:[%s620_s19 + $0x50] sm:$0xff]   ;;  %v527_v48 = vld [vmem:[%s620_s19 + $0x58] sm:$0xff]  }
  0x13   : > { %v274_v19 = vmul.f32 %v622_v0, %v463_v9  ;;  %v471_v20 = vunpack.c.l.bf16 %v520_v11  ;;  %v275_v21 = vmul.f32 %v622_v0, %v464_v10  ;;  %v472_v22 = vunpack.c.h.bf16 %v520_v11  ;;  %v528_v53 = vld [vmem:[%s620_s19 + $0x60] sm:$0xff]   ;;  %v529_v58 = vld [vmem:[%s620_s19 + $0x68] sm:$0xff]   ;;  %v530_v63 = vld [vmem:[%s620_s19 + $0x70] sm:$0xff]  }
  0x14   : > { %303 = vst.msk [vmem:[%s631_s23] sm:$0xff] %vm302_vm0, %v270_v12  ;;  %v276_v24 = vmul.f32 %v622_v0, %v467_v15  ;;  %v475_v25 = vunpack.c.l.bf16 %v521_v18  ;;  %v277_v26 = vmul.f32 %v622_v0, %v468_v17  ;;  %v476_v27 = vunpack.c.h.bf16 %v521_v18  ;;  %v531_v5 = vld [vmem:[%s620_s19 + $0x78] sm:$0xff]  }
  0x15   : > { %304 = vst.msk [vmem:[%s631_s23 + $0x8] sm:$0xff] %vm302_vm0, %v271_v13  ;;  %v278_v29 = vmul.f32 %v622_v0, %v471_v20  ;;  %v479_v30 = vunpack.c.l.bf16 %v522_v23  ;;  %v279_v31 = vmul.f32 %v622_v0, %v472_v22  ;;  %v480_v32 = vunpack.c.h.bf16 %v522_v23 }
  0x16   : > { %305 = vst.msk [vmem:[%s631_s23 + $0x10] sm:$0xff] %vm302_vm0, %v272_v14  ;;  %v280_v34 = vmul.f32 %v622_v0, %v475_v25  ;;  %v483_v35 = vunpack.c.l.bf16 %v523_v28  ;;  %v281_v36 = vmul.f32 %v622_v0, %v476_v27  ;;  %v484_v37 = vunpack.c.h.bf16 %v523_v28 }
  0x17   : > { %306 = vst.msk [vmem:[%s631_s23 + $0x18] sm:$0xff] %vm302_vm0, %v273_v16  ;;  %v282_v39 = vmul.f32 %v622_v0, %v479_v30  ;;  %v487_v40 = vunpack.c.l.bf16 %v524_v33  ;;  %v283_v41 = vmul.f32 %v622_v0, %v480_v32  ;;  %v488_v42 = vunpack.c.h.bf16 %v524_v33 }
  0x18   : > { %307 = vst.msk [vmem:[%s631_s23 + $0x20] sm:$0xff] %vm302_vm0, %v274_v19  ;;  %v284_v44 = vmul.f32 %v622_v0, %v483_v35  ;;  %v491_v45 = vunpack.c.l.bf16 %v525_v38  ;;  %v285_v46 = vmul.f32 %v622_v0, %v484_v37  ;;  %v492_v47 = vunpack.c.h.bf16 %v525_v38 }
  0x19   : > { %308 = vst.msk [vmem:[%s631_s23 + $0x28] sm:$0xff] %vm302_vm0, %v275_v21  ;;  %v286_v49 = vmul.f32 %v622_v0, %v487_v40  ;;  %v495_v50 = vunpack.c.l.bf16 %v526_v43  ;;  %v287_v51 = vmul.f32 %v622_v0, %v488_v42  ;;  %v496_v52 = vunpack.c.h.bf16 %v526_v43 }
  0x1a   : > { %309 = vst.msk [vmem:[%s631_s23 + $0x30] sm:$0xff] %vm302_vm0, %v276_v24  ;;  %v288_v54 = vmul.f32 %v622_v0, %v491_v45  ;;  %v499_v55 = vunpack.c.l.bf16 %v527_v48  ;;  %v289_v56 = vmul.f32 %v622_v0, %v492_v47  ;;  %v500_v57 = vunpack.c.h.bf16 %v527_v48 }
  0x1b   : > { %310 = vst.msk [vmem:[%s631_s23 + $0x38] sm:$0xff] %vm302_vm0, %v277_v26  ;;  %v290_v59 = vmul.f32 %v622_v0, %v495_v50  ;;  %v503_v60 = vunpack.c.l.bf16 %v528_v53  ;;  %v291_v61 = vmul.f32 %v622_v0, %v496_v52  ;;  %v504_v62 = vunpack.c.h.bf16 %v528_v53 }
  0x1c   : > { %311 = vst.msk [vmem:[%s631_s23 + $0x40] sm:$0xff] %vm302_vm0, %v278_v29  ;;  %v292_v1 = vmul.f32 %v622_v0, %v499_v55  ;;  %v507_v2 = vunpack.c.l.bf16 %v529_v58  ;;  %v293_v3 = vmul.f32 %v622_v0, %v500_v57  ;;  %v508_v4 = vunpack.c.h.bf16 %v529_v58 }
  0x1d   : > { %312 = vst.msk [vmem:[%s631_s23 + $0x48] sm:$0xff] %vm302_vm0, %v279_v31  ;;  %v294_v6 = vmul.f32 %v622_v0, %v503_v60  ;;  %v511_v7 = vunpack.c.l.bf16 %v530_v63  ;;  %v295_v8 = vmul.f32 %v622_v0, %v504_v62  ;;  %v512_v9 = vunpack.c.h.bf16 %v530_v63 }
  0x1e   : > { %313 = vst.msk [vmem:[%s631_s23 + $0x50] sm:$0xff] %vm302_vm0, %v280_v34  ;;  %v296_v10 = vmul.f32 %v622_v0, %v507_v2  ;;  %v515_v11 = vunpack.c.l.bf16 %v531_v5  ;;  %v297_v12 = vmul.f32 %v622_v0, %v508_v4  ;;  %v516_v13 = vunpack.c.h.bf16 %v531_v5 }
  0x1f   : > { %314 = vst.msk [vmem:[%s631_s23 + $0x58] sm:$0xff] %vm302_vm0, %v281_v36  ;;  %v298_v14 = vmul.f32 %v622_v0, %v511_v7  ;;  %v299_v15 = vmul.f32 %v622_v0, %v512_v9 }
  0x20   : > { %315 = vst.msk [vmem:[%s631_s23 + $0x60] sm:$0xff] %vm302_vm0, %v282_v39  ;;  %v300_v16 = vmul.f32 %v622_v0, %v515_v11  ;;  %v301_v17 = vmul.f32 %v622_v0, %v516_v13 }
  0x21   : > { %316 = vst.msk [vmem:[%s631_s23 + $0x68] sm:$0xff] %vm302_vm0, %v283_v41 }
  0x22   : > { %317 = vst.msk [vmem:[%s631_s23 + $0x70] sm:$0xff] %vm302_vm0, %v284_v44 }
  0x23   : > { %318 = vst.msk [vmem:[%s631_s23 + $0x78] sm:$0xff] %vm302_vm0, %v285_v46 }
  0x24   : > { %319 = vst.msk [vmem:[%s631_s23 + $0x80] sm:$0xff] %vm302_vm0, %v286_v49 }
  0x25   : > { %320 = vst.msk [vmem:[%s631_s23 + $0x88] sm:$0xff] %vm302_vm0, %v287_v51 }
  0x26   : > { %321 = vst.msk [vmem:[%s631_s23 + $0x90] sm:$0xff] %vm302_vm0, %v288_v54 }
  0x27   : > { %322 = vst.msk [vmem:[%s631_s23 + $0x98] sm:$0xff] %vm302_vm0, %v289_v56 }
  0x28   : > { %323 = vst.msk [vmem:[%s631_s23 + $0xa0] sm:$0xff] %vm302_vm0, %v290_v59 }
  0x29   : > { %324 = vst.msk [vmem:[%s631_s23 + $0xa8] sm:$0xff] %vm302_vm0, %v291_v61 }
  0x2a   : > { %325 = vst.msk [vmem:[%s631_s23 + $0xb0] sm:$0xff] %vm302_vm0, %v292_v1 }
  0x2b   : > { %326 = vst.msk [vmem:[%s631_s23 + $0xb8] sm:$0xff] %vm302_vm0, %v293_v3 }
  0x2c   : > { %327 = vst.msk [vmem:[%s631_s23 + $0xc0] sm:$0xff] %vm302_vm0, %v294_v6 }
  0x2d   : > { %328 = vst.msk [vmem:[%s631_s23 + $0xc8] sm:$0xff] %vm302_vm0, %v295_v8 }
  0x2e   : > { %329 = vst.msk [vmem:[%s631_s23 + $0xd0] sm:$0xff] %vm302_vm0, %v296_v10 }
  0x2f   : > { %330 = vst.msk [vmem:[%s631_s23 + $0xd8] sm:$0xff] %vm302_vm0, %v297_v12 }
  0x30   : > { %331 = vst.msk [vmem:[%s631_s23 + $0xe0] sm:$0xff] %vm302_vm0, %v298_v14 }
  0x31   : > { %332 = vst.msk [vmem:[%s631_s23 + $0xe8] sm:$0xff] %vm302_vm0, %v299_v15 }
  0x32   : > { %333 = vst.msk [vmem:[%s631_s23 + $0xf0] sm:$0xff] %vm302_vm0, %v300_v16 }
  0x33   : > { %334 = vst.msk [vmem:[%s631_s23 + $0xf8] sm:$0xff] %vm302_vm0, %v301_v17 }
  0x34 PF: > { %s12_s11 = sadd.s32 1, %s579_s11   ;;  %s753_s9 = smov %s575_s10 }
  0x35   : > { %p9_p5 = scmp.ge.s32.totalorder %s12_s11, 4   ;;  %s754_s10 = smov %s756_s12 }
  0x37   :  { %11 = sbr.rel (!%p9_p5) target bundleno = 2 (0x2), region = 61 }

// kernel: vgg_block_forward.6
= control target key start
LH: loop header
LB: loop body
LE: loop exit
PB: predicated region body
PF: predicated region fallthrough
CT: control target
= control target key end

     0   :  { %vm39_vm0 = vcmask 1041409   ;;  %vm68_vm1 = vcmask 1041408   ;;  %vm64_vm2 = vcmask 15360   ;;  %s209_s1 = inlined_call_operand.vmem [shape: f32[128,2], index: 1, kind: input, shape index: {}]   ;;  %s210_s0 = inlined_call_operand.vmem [shape: f32[2,1,8,128], index: 0, kind: input, shape index: {}]   ;;  %s211_s2 = inlined_call_operand.vmem [shape: f32[2,128], index: 2, kind: input, shape index: {}]   ;;  %s212_s3 = inlined_call_operand.vmem [shape: f32[2,1,128], index: 3, kind: output, shape index: {}]  }
   0x1   :  { %v35_v0 = vld [vmem:[%s209_s1 + $0x78] sm:$0xff]  ;;  %v34_v1 = vld [vmem:[%s209_s1 + $0x70] sm:$0xff]  ;;  %v33_v2 = vld [vmem:[%s209_s1 + $0x68] sm:$0xff] }
   0x2   :  { %42 = vmatpush.msra.mxu0 %v35_v0  ;;  %v32_v3 = vld [vmem:[%s209_s1 + $0x60] sm:$0xff]  ;;  %v31_v4 = vld [vmem:[%s209_s1 + $0x58] sm:$0xff]  ;;  %v30_v5 = vld [vmem:[%s209_s1 + $0x50] sm:$0xff] }
   0x3   :  { %v29_v6 = vld [vmem:[%s209_s1 + $0x48] sm:$0xff]  ;;  %v28_v7 = vld [vmem:[%s209_s1 + $0x40] sm:$0xff]  ;;  %v27_v8 = vld [vmem:[%s209_s1 + $0x38] sm:$0xff] }
   0x4   :  { %43 = vmatpush.msra.mxu0 %v34_v1  ;;  %v26_v9 = vld [vmem:[%s209_s1 + $0x30] sm:$0xff]  ;;  %v25_v10 = vld [vmem:[%s209_s1 + $0x28] sm:$0xff]  ;;  %v24_v12 = vld [vmem:[%s209_s1 + $0x20] sm:$0xff] }
   0x5   :  { %v15_v11 = vld [vmem:[%s210_s0 + $0x8] sm:$0xff]  ;;  %v23_v14 = vld [vmem:[%s209_s1 + $0x18] sm:$0xff]  ;;  %v14_v15 = vld [vmem:[%s210_s0] sm:$0xff] }
   0x6   :  { %44 = vmatpush.msra.mxu0 %v33_v2  ;;  %v19_v13 = vmul.f32 0.00390625, %v15_v11  ;;  %v22_v16 = vld [vmem:[%s209_s1 + $0x10] sm:$0xff]  ;;  %v18_v17 = vmul.f32 0.00390625, %v14_v15  ;;  %v21_v19 = vld [vmem:[%s209_s1 + $0x8] sm:$0xff]  ;;  %v20_v20 = vld [vmem:[%s209_s1] sm:$0xff] }
   0x7   :  { %v63_v22 = vld [vmem:[%s211_s2] sm:$0x3] }
   0x8   :  { %45 = vmatpush.msra.mxu0 %v32_v3  ;;  %v38_v18 = vrot.slane %v19_v13, 7  ;;  %120 = vmatpush.msk.msra.mxu1 %vm68_vm1, %v63_v22 }
   0xa   :  { %46 = vmatpush.msra.mxu0 %v31_v4  ;;  %v40_v21 = vsel %vm39_vm0, %v38_v18, %v18_v17 }
   0xc   :  { %47 = vmatpush.msra.mxu0 %v30_v5 }
   0xe   :  { %48 = vmatpush.msra.mxu0 %v29_v6 }
  0x10   :  { %49 = vmatpush.msra.mxu0 %v28_v7 }
  0x12   :  { %50 = vmatpush.msra.mxu0 %v27_v8 }
  0x14   :  { %51 = vmatpush.msra.mxu0 %v26_v9 }
  0x16   :  { %52 = vmatpush.msra.mxu0 %v25_v10 }
  0x18   :  { %53 = vmatpush.msra.mxu0 %v24_v12 }
  0x1a   :  { %54 = vmatpush.msra.mxu0 %v23_v14 }
  0x1c   :  { %55 = vmatpush.msra.mxu0 %v22_v16 }
  0x1e   :  { %56 = vmatpush.msra.mxu0 %v21_v19 }
  0x20   :  { %57 = vmatpush.msra.mxu0 %v20_v20 }
  0x21   :  { %58 = vmatmul.f32.vlgmr.msra.gmra.mxu0 %v40_v21 }
  0x9e   :  { %v59_v23 = vpop.f32.mrf.mxu0 }
  0x9f   :  { %v62_v24 = vmax.f32 %v59_v23, 0.0 }
  0xa1   :  { %121 = vmatmul.msk.f32.vlgmr.msra.gmra.mxu1 %vm64_vm2, %v62_v24 }
 0x11e   :  { %v89_v25 = vpop.f32.mrf.mxu1 }
 0x11f   :  { %v92_v26 = vsub.f32 0.0, %v89_v25 }
 0x121   :  { %v93_v27 = vmul.f32 1.442695, %v92_v26 }
 0x123   :  { %122 = vpow2.f32 %v93_v27 }
 0x129   :  { %v123_v28 = vpop.eup %122 }
 0x12a   :  { %v95_v29 = vadd.f32 1.0, %v123_v28 }
 0x12c   :  { %124 = vrcp.f32 %v95_v29  ;;  %v107_v33 = vand.u32 2147483648, %v95_v29  ;;  %v105_v35 = vand.u32 2147483647, %v95_v29  ;;  %vm101_vm4 = vweird.f32 %v95_v29 }
 0x12e   :  { %v108_v37 = vor.u32 1.1754944e-38, %v107_v33  ;;  %vm106_vm6 = vcmp.eq.f32.partialorder %v105_v35, 8.507059e+37 }
 0x132   :  { %v125_v30 = vpop.eup %124 }
 0x133   :  { %v97_v31 = vmul.f32 %v125_v30, %v95_v29  ;;  %vm102_vm3 = vweird.f32 %v125_v30 }
 0x134   :  { %vm103_vm5 = vmor %vm101_vm4, %vm102_vm3 }
 0x135   :  { %v98_v32 = vsub.f32 1.0, %v97_v31 }
 0x137   :  { %v99_v34 = vmul.f32 %v125_v30, %v98_v32 }
 0x139   :  { %v100_v36 = vadd.f32 %v125_v30, %v99_v34 }
 0x13b   :  { %v104_v38 = vsel %vm103_vm5, %v125_v30, %v100_v36 }
 0x13c   :  { %v109_v39 = vsel %vm106_vm6, %v108_v37, %v104_v38 }
 0x13d   :  { %v112_v40 = vrot.slane %v109_v39, 1  ;;  %114 = vst [vmem:[%s212_s3] sm:$0x1] %v109_v39 }
 0x13f   :  { %115 = vst [vmem:[%s212_s3 + $0x1] sm:$0x1] %v112_v40 }

// kernel: vgg_block_forward.5
= control target key start
LH: loop header
LB: loop body
LE: loop exit
PB: predicated region body
PF: predicated region fallthrough
CT: control target
= control target key end

     0   :  { %s3762_s21 = smov 0   ;;  %s3764_s22 = smov 0   ;;  %s4974_s0 = inlined_call_operand.vmem [shape: bf16[2,16,18,128], index: 0, kind: input, shape index: {}, may-alias: {0,1,2}]   ;;  %s4975_s1 = inlined_call_operand.vmem [shape: bf16[2,16,18,128], index: 1, kind: input, shape index: {}, may-alias: {0,1,2}]   ;;  %s4976_s2 = inlined_call_operand.vmem [shape: bf16[2,16,18,128], index: 2, kind: input, shape index: {}, may-alias: {0,1,2}]   ;;  %s4977_s3 = inlined_call_operand.vmem [shape: bf16[1152,128], index: 3, kind: input, shape index: {}]   ;;  %s4978_s4 = inlined_call_operand.vmem [shape: f32[1,128], index: 4, kind: input, shape index: {}]   ;;  %s4979_s5 = inlined_call_operand.vmem [shape: bf16[2,16,16,128], index: 5, kind: output, shape index: {0}]   ;;  %s4980_s6 = inlined_call_operand.vmem [shape: f32[2,1,8,128], index: 6, kind: output, shape index: {1}]  }
   0x1   :  { %s3766_s23 = smov 0  }
   0x2 LB: > { %s29_s24 = sadd.s32 1, %s3720_s22  ;;  %p3061_p0 = scmp.ge.s32.totalorder %s3724_s23, 1  ;;  %s3724_s23 = sphi %s3766_s23, %s17_s23   ;;  %s3720_s22 = sphi %s3764_s22, %s5077_s22   ;;  %s3716_s21 = sphi %s3762_s21, %s5076_s21  }
   0x3   : > { %p31_p1 = scmp.ge.s32.totalorder %s29_s24, 2  ;;  %p303_p2 = scmp.lt.s32.totalorder %s3724_s23, 3 }
   0x5   : > { %s5079_s24 = smov (%p31_p1, %s29_s24), 0  ;;  %p304_p3 = pnand %p3061_p0, %p303_p2 }
   0x7   : > { %307 = sbr.rel (%p304_p3) target bundleno = 767 (0x2ff), region = 40 }
   0xc   : > { %v3466_v0 = vld [vmem:[%s4977_s3 + $0x38] sm:$0xff]  ;;  %p380_p4 = scmp.lt.s32.totalorder %s3716_s21, 1  ;;  %v3465_v1 = vld [vmem:[%s4977_s3 + $0x30] sm:$0xff]  ;;  %v3464_v2 = vld [vmem:[%s4977_s3 + $0x28] sm:$0xff]  ;;  %v3726_v8 = vmov 0.0   ;;  %vm964_vm2 = vcmask 1042432  }
   0xd   : > { %3634 = vmatpush.bf16.msra.mxu1 %v3466_v0  ;;  %3635 = vmatpush.bf16.msra.mxu2 %v3466_v0  ;;  %v3463_v3 = vld [vmem:[%s4977_s3 + $0x20] sm:$0xff]  ;;  %v3462_v5 = vld [vmem:[%s4977_s3 + $0x18] sm:$0xff]  ;;  %v3807_v9 = vunpack.c.l.bf16 %v3726_v8  ;;  %v3461_v10 = vld [vmem:[%s4977_s3 + $0x10] sm:$0xff]  ;;  %vm529_vm0 = vsmask.f32 3328  ;;  %vm965_vm3 = vcmask 1046532  }
   0xe   : > { %s5081_s21 = smov (!%p380_p4, %s3716_s21), 1  ;;  %3636 = vmatpush.bf16.msra.mxu3 %v3466_v0  ;;  %1943 = vmatpush.bf16.msra.mxu0 %v3466_v0  ;;  %v3460_v13 = vld [vmem:[%s4977_s3 + $0x8] sm:$0xff]  ;;  %v3459_v16 = vld [vmem:[%s4977_s3] sm:$0xff]  ;;  %v3482_v19 = vld [vmem:[%s4977_s3 + $0xb8] sm:$0xff]  ;;  %vm530_vm1 = vsmask.f32 7440 }
   0xf   : > { %s3789_s29 = smul.u32 192, %s5081_s21  ;;  %5004 = vst [vmem:[#allocation2_spill] sm:$0xff] %v3807_v9  ;;  %v3490_v20 = vld [vmem:[%s4977_s3 + $0xf8] sm:$0xff]  ;;  %v3481_v27 = vld [vmem:[%s4977_s3 + $0xb0] sm:$0xff]  ;;  %v3480_v31 = vld [vmem:[%s4977_s3 + $0xa8] sm:$0xff] }
  0x10   : > { %v3474_v25 = vld [vmem:[%s4977_s3 + $0x78] sm:$0xff]  ;;  %v3489_v28 = vld [vmem:[%s4977_s3 + $0xf0] sm:$0xff]  ;;  %v3488_v32 = vld [vmem:[%s4977_s3 + $0xe8] sm:$0xff] }
  0x11   : > { %3637 = vmatpush.bf16.msra.mxu1 %v3465_v1  ;;  %3638 = vmatpush.bf16.msra.mxu2 %v3465_v1  ;;  %s3798_s10 = scalar_lea.vmem %s4974_s0, %s3789_s29  ;;  %s3828_s27 = scalar_lea.vmem %s4975_s1, %s3789_s29  ;;  %v3498_v26 = vld [vmem:[%s4977_s3 + $0x138] sm:$0xff]  ;;  %v3473_v29 = vld [vmem:[%s4977_s3 + $0x70] sm:$0xff]  ;;  %v3472_v33 = vld [vmem:[%s4977_s3 + $0x68] sm:$0xff] }
  0x12   : > { %3639 = vmatpush.bf16.msra.mxu3 %v3465_v1  ;;  %1944 = vmatpush.bf16.msra.mxu0 %v3465_v1  ;;  %v3532_v4 = vld [vmem:[%s3798_s10] sm:$0xff]   ;;  %v3842_v22 = vld [vmem:[%s3828_s27 + $0x54] sm:$0xff]  ;;  %v3496_v34 = vld [vmem:[%s4977_s3 + $0x128] sm:$0xff]  ;;  %s3441_s16 = sadd.s32 180, %s3789_s29  ;;  %s3067_s29 = sshll.u32 %s5081_s21, 3 }
  0x13   : > { %v3533_v6 = vunpack.c.l.bf16 %v3532_v4  ;;  %v3534_v7 = vunpack.c.h.bf16 %v3532_v4  ;;  %v3839_v21 = vld [vmem:[%s3828_s27 + $0x24] sm:$0xff]  ;;  %v3497_v30 = vld [vmem:[%s4977_s3 + $0x130] sm:$0xff]  ;;  %v3478_v39 = vld [vmem:[%s4977_s3 + $0x98] sm:$0xff]  ;;  %s438_s25 = scalar_lea.vmem %s4980_s6, %s3067_s29 }
  0x14   : > { %v3454_v23 = vld [vmem:[%s3828_s27 + $0x84] sm:$0xff]  ;;  %v3486_v40 = vld [vmem:[%s4977_s3 + $0xd8] sm:$0xff]  ;;  %v3896_v41 = vld [vmem:[%s3828_s27 + $0x30] sm:$0xff] }
  0x15   : > { %3640 = vmatpush.bf16.msra.mxu1 %v3464_v2  ;;  %3641 = vmatpush.bf16.msra.mxu2 %v3464_v2  ;;  %v463_v11 = vmul.f32 %v3533_v6, %v3807_v9  ;;  %v464_v12 = vmul.f32 %v3534_v7, %v3807_v9  ;;  %v3479_v35 = vld [vmem:[%s4977_s3 + $0xa0] sm:$0xff]  ;;  %v3455_v43 = vld [vmem:[%s3828_s27 + $0x90] sm:$0xff]  ;;  %v3470_v45 = vld [vmem:[%s4977_s3 + $0x58] sm:$0xff] }
  0x16   : > { %3642 = vmatpush.bf16.msra.mxu3 %v3464_v2  ;;  %1945 = vmatpush.bf16.msra.mxu0 %v3464_v2  ;;  %v3487_v36 = vld [vmem:[%s4977_s3 + $0xe0] sm:$0xff]  ;;  %v3494_v46 = vld [vmem:[%s4977_s3 + $0x118] sm:$0xff]  ;;  %v3477_v47 = vld [vmem:[%s4977_s3 + $0x90] sm:$0xff] }
  0x17   : > { %v3817_v14 = vpack.c.bf16 %v463_v11, %v463_v11  ;;  %v3819_v15 = vpack.c.bf16 %v464_v12, %v464_v12  ;;  %v3471_v37 = vld [vmem:[%s4977_s3 + $0x60] sm:$0xff]  ;;  %v3485_v48 = vld [vmem:[%s4977_s3 + $0xd0] sm:$0xff]  ;;  %v3476_v51 = vld [vmem:[%s4977_s3 + $0x88] sm:$0xff] }
  0x18   : > { %v3495_v38 = vld [vmem:[%s4977_s3 + $0x120] sm:$0xff]  ;;  %v3469_v49 = vld [vmem:[%s4977_s3 + $0x50] sm:$0xff]  ;;  %v3484_v52 = vld [vmem:[%s4977_s3 + $0xc8] sm:$0xff] }
  0x19   : > { %3643 = vmatpush.bf16.msra.mxu1 %v3463_v3  ;;  %3644 = vmatpush.bf16.msra.mxu2 %v3463_v3  ;;  %v1147_v17 = vunpack.c.l.b16 %v3817_v14  ;;  %v1148_v18 = vunpack.c.l.b16 %v3819_v15  ;;  %v3451_v42 = vld [vmem:[%s3828_s27 + $0x60] sm:$0xff]  ;;  %v3493_v50 = vld [vmem:[%s4977_s3 + $0x110] sm:$0xff]  ;;  %v3468_v53 = vld [vmem:[%s4977_s3 + $0x48] sm:$0xff]  ;;  %v533_v1 = vshrl.u32 %v3817_v14, 16  ;;  %v536_v2 = vshll.u32 %v3817_v14, 16 }
  0x1a   : > { %3645 = vmatpush.bf16.msra.mxu3 %v3463_v3  ;;  %1946 = vmatpush.bf16.msra.mxu0 %v3463_v3  ;;  %v3901_v44 = vld [vmem:[%s3828_s27] sm:$0xff]  ;;  %v3492_v54 = vld [vmem:[%s4977_s3 + $0x108] sm:$0xff]  ;;  %v542_v3 = vshll.u32 %v3819_v15, 16  ;;  %v546_v4 = vshrl.u32 %v3819_v15, 16  ;;  %v3522_v6 = vld [vmem:[%s4977_s3 + $0x1f8] sm:$0xff] }
  0x1b   : > { %v1179_v24 = vpack.c.b16 %v1148_v18, %v1147_v17  ;;  %v3475_v55 = vld [vmem:[%s4977_s3 + $0x80] sm:$0xff]  ;;  %v3452_v60 = vld [vmem:[%s3828_s27 + $0x6c] sm:$0xff]  ;;  %v454_v61 = vld [vmem:[%s3798_s10 + $0x8] sm:$0x1]  ;;  %s416_s10 = scalar_lea.vmem %s4976_s2, %s3441_s16 }
  0x1c   : > { %v3483_v56 = vld [vmem:[%s4977_s3 + $0xc0] sm:$0xff]  ;;  %v3954_v63 = vld [vmem:[%s3828_s27 + $0xc] sm:$0xff]  ;;  %v461_v0 = vunpack.c.l.bf16 %v454_v61  ;;  %v3506_v7 = vld [vmem:[%s4977_s3 + $0x178] sm:$0xff]  ;;  %v544_v17 = vrot.slane %v542_v3, 5  ;;  %v548_v18 = vrot.slane %v546_v4, 4 }
  0x1d   : > { %3646 = vmatpush.bf16.msra.mxu1 %v3462_v5  ;;  %3647 = vmatpush.bf16.msra.mxu2 %v3462_v5  ;;  %v3467_v57 = vld [vmem:[%s4977_s3 + $0x40] sm:$0xff]  ;;  %v3530_v8 = vld [vmem:[%s4977_s3 + $0x238] sm:$0xff]  ;;  %vm3998_vm4 = vmor %vm529_vm0, %vm530_vm1 }
  0x1e   : > { %3648 = vmatpush.bf16.msra.mxu3 %v3462_v5  ;;  %1947 = vmatpush.bf16.msra.mxu0 %v3462_v5  ;;  %v3491_v58 = vld [vmem:[%s4977_s3 + $0x100] sm:$0xff]  ;;  %v3514_v5 = vld [vmem:[%s4977_s3 + $0x1b8] sm:$0xff]  ;;  %vm4004_vm5 = vmor %vm964_vm2, %vm965_vm3 }
  0x1f   : > { %v3948_v59 = vld [vmem:[%s3828_s27 + $0x3c] sm:$0xff]  ;;  %v3979_v12 = vld [vmem:[%s3828_s27 + $0x4] sm:$0xf] }
  0x20   : > { %v3456_v62 = vld [vmem:[%s3828_s27 + $0x9c] sm:$0xff] }
  0x21   : > { %3649 = vmatpush.bf16.msra.mxu1 %v3461_v10  ;;  %3650 = vmatpush.bf16.msra.mxu2 %v3461_v10  ;;  %v3976_v11 = vld [vmem:[%s3828_s27] sm:$0xf] }
  0x22   : > { %3651 = vmatpush.bf16.msra.mxu3 %v3461_v10  ;;  %1948 = vmatpush.bf16.msra.mxu0 %v3461_v10  ;;  %v465_v10 = vmul.f32 %v3807_v9, %v461_v0 }
  0x25   : > { %3652 = vmatpush.bf16.msra.mxu1 %v3460_v13  ;;  %3653 = vmatpush.bf16.msra.mxu2 %v3460_v13 }
  0x26   : > { %3654 = vmatpush.bf16.msra.mxu3 %v3460_v13  ;;  %1949 = vmatpush.bf16.msra.mxu0 %v3460_v13  ;;  %v535_v13 = vrot.slane %v533_v1, 4 }
  0x29   : > { %3655 = vmatpush.bf16.msra.mxu1 %v3459_v16  ;;  %3656 = vmatpush.bf16.msra.mxu2 %v3459_v16 }
  0x2a   : > { %3657 = vmatpush.bf16.msra.mxu3 %v3459_v16  ;;  %1950 = vmatpush.bf16.msra.mxu0 %v3459_v16  ;;  %v538_v16 = vrot.slane %v536_v2, 5 }
  0x2c   : > { %1971 = vmatmul.bf16.vlgmr.msra.gmra.mxu1 %v3839_v21  ;;  %1991 = vmatmul.bf16.vlgmr.msra.gmra.mxu2 %v3842_v22 }
  0x2d   : > { %2121 = vmatpush.bf16.msrb.mxu2 %v3482_v19  ;;  %2011 = vmatmul.bf16.vlgmr.msra.gmra.mxu3 %v3454_v23  ;;  %v557_v19 = vshrl.u32 %v3976_v11, 16  ;;  %v566_v23 = vshll.u32 %v3979_v12, 16 }
  0x2e   : > { %2210 = vmatpush.bf16.msrb.mxu3 %v3490_v20  ;;  %1951 = vmatmul.bf16.vlgmr.msra.gmra.mxu0 %v1179_v24  ;;  %v560_v20 = vshll.u32 %v3976_v11, 16  ;;  %v570_v24 = vshrl.u32 %v3979_v12, 16 }
  0x2f   : > { %2032 = vmatpush.bf16.msrb.mxu1 %v3474_v25  ;;  %2299 = vmatpush.bf16.msrb.mxu0 %v3498_v26  ;;  %v468_v25 = vpack.c.bf16 %v465_v10, %v465_v10  ;;  %v539_v26 = vor.u32 %v538_v16, %v535_v13 }
  0x31   : > { %2122 = vmatpush.bf16.msrb.mxu2 %v3481_v27  ;;  %v549_v27 = vor.u32 %v548_v18, %v544_v17  ;;  %v4032_v18 = vld [vmem:[%s3828_s27 + $0x14] sm:$0x1] }
  0x32   : > { %2211 = vmatpush.bf16.msrb.mxu3 %v3489_v28  ;;  %v559_v28 = vrot.slane %v557_v19, 4 }
  0x33   : > { %2033 = vmatpush.bf16.msrb.mxu1 %v3473_v29  ;;  %2300 = vmatpush.bf16.msrb.mxu0 %v3497_v30  ;;  %v562_v29 = vrot.slane %v560_v20, 5  ;;  %v568_v30 = vrot.slane %v566_v23, 5  ;;  %v976_v20 = vrot.slane %v3979_v12, 5  ;;  %v3513_v12 = vld [vmem:[%s4977_s3 + $0x1b0] sm:$0xff] }
  0x35   : > { %2123 = vmatpush.bf16.msrb.mxu2 %v3480_v31  ;;  %v572_v31 = vrot.slane %v570_v24, 4 }
  0x36   : > { %2212 = vmatpush.bf16.msrb.mxu3 %v3488_v32  ;;  %v552_v32 = vshll.u32 %v468_v25, 16 }
  0x37   : > { %2034 = vmatpush.bf16.msrb.mxu1 %v3472_v33  ;;  %2301 = vmatpush.bf16.msrb.mxu0 %v3496_v34  ;;  %v969_v33 = vrot.slane %v3819_v15, 5  ;;  %v3987_v34 = vld [vmem:[%s3828_s27 + $0x8] sm:$0x1] }
  0x38   : > { %v576_v15 = vshll.u32 %v3987_v34, 16 }
  0x39   : > { %2124 = vmatpush.bf16.msrb.mxu2 %v3479_v35  ;;  %v3990_v35 = vld [vmem:[%s3828_s27 + $0x48] sm:$0xff] }
  0x3a   : > { %2213 = vmatpush.bf16.msrb.mxu3 %v3487_v36  ;;  %v3453_v36 = vld [vmem:[%s3828_s27 + $0x78] sm:$0xff] }
  0x3b   : > { %2035 = vmatpush.bf16.msrb.mxu1 %v3471_v37  ;;  %2302 = vmatpush.bf16.msrb.mxu0 %v3495_v38  ;;  %v3457_v37 = vld [vmem:[%s3828_s27 + $0xa8] sm:$0xff]  ;;  %v3995_v38 = vld [vmem:[%s3828_s27 + $0x18] sm:$0xff] }
  0x3c   : > { %1976 = vmatmul.bf16.gmra.mxu1 %v3896_v41  ;;  %1996 = vmatmul.bf16.gmra.mxu2 %v3451_v42  ;;  %v563_v42 = vor.u32 %v562_v29, %v559_v28  ;;  %v3069_v28 = vrot.slane %v3976_v11, 9  ;;  %v978_v29 = vrot.slane %v976_v20, 4  ;;  %v3505_v11 = vld [vmem:[%s4977_s3 + $0x170] sm:$0xff] }
  0x3d   : > { %2125 = vmatpush.bf16.msrb.mxu2 %v3478_v39  ;;  %2016 = vmatmul.bf16.gmra.mxu3 %v3455_v43  ;;  %v540_v39 = vrot.slane %v539_v26, 4  ;;  %v573_v43 = vor.u32 %v572_v31, %v568_v30  ;;  %v600_v26 = vshll.u32 %v4032_v18, 16 }
  0x3e   : > { %2214 = vmatpush.bf16.msrb.mxu3 %v3486_v40  ;;  %1956 = vmatmul.bf16.gmra.mxu0 %v3901_v44  ;;  %v550_v40 = vrot.slane %v549_v27, 4 }
  0x3f   : > { %2036 = vmatpush.bf16.msrb.mxu1 %v3470_v45  ;;  %2303 = vmatpush.bf16.msrb.mxu0 %v3494_v46  ;;  %v554_v46 = vrot.slane %v552_v32, 5 }
  0x41   : > { %2126 = vmatpush.bf16.msrb.mxu2 %v3477_v47  ;;  %v3068_v47 = vrot.slane %v3817_v14, 9  ;;  %v545_v14 = vsel %vm3998_vm4, %v540_v39, %v544_v17  ;;  %v977_v39 = vsel %vm4004_vm5, %v3069_v28, %v976_v20 }
  0x42   : > { %2215 = vmatpush.bf16.msrb.mxu3 %v3485_v48  ;;  %v971_v48 = vrot.slane %v969_v33, 4  ;;  %v1211_v3 = vunpack.c.l.b16 %v545_v14 }
  0x43   : > { %2037 = vmatpush.bf16.msrb.mxu1 %v3469_v49  ;;  %2304 = vmatpush.bf16.msrb.mxu0 %v3493_v50  ;;  %v972_v49 = vrot.slane %v468_v25, 5 }
  0x45   : > { %2127 = vmatpush.bf16.msrb.mxu2 %v3476_v51  ;;  %v4010_v51 = vld [vmem:[%s3828_s27 + $0xc] sm:$0xf] }
  0x46   : > { %2216 = vmatpush.bf16.msrb.mxu3 %v3484_v52  ;;  %v4013_v52 = vld [vmem:[%s3828_s27 + $0x10] sm:$0xf]  ;;  %v584_v61 = vshll.u32 %v4010_v51, 16 }
  0x47   : > { %2038 = vmatpush.bf16.msrb.mxu1 %v3468_v53  ;;  %2305 = vmatpush.bf16.msrb.mxu0 %v3492_v54  ;;  %v564_v53 = vrot.slane %v563_v42, 4  ;;  %v574_v54 = vrot.slane %v573_v43, 4  ;;  %v594_v0 = vshrl.u32 %v4013_v52, 16 }
  0x49   : > { %2128 = vmatpush.bf16.msrb.mxu2 %v3475_v55  ;;  %v578_v55 = vrot.slane %v576_v15, 5  ;;  %v569_v1 = vsel %vm3998_vm4, %v564_v53, %v568_v30  ;;  %v596_v13 = vrot.slane %v594_v0, 4  ;;  %v979_v30 = vrot.slane %v3987_v34, 5  ;;  %v4052_v34 = vld [vmem:[%s3828_s27 + $0x1c] sm:$0xf] }
  0x4a   : > { %2217 = vmatpush.bf16.msrb.mxu3 %v3483_v56  ;;  %v555_v56 = vsel %vm3998_vm4, %v550_v40, %v554_v46  ;;  %v1213_v16 = vunpack.c.l.b16 %v569_v1 }
  0x4b   : > { %2039 = vmatpush.bf16.msrb.mxu1 %v3467_v57  ;;  %2306 = vmatpush.bf16.msrb.mxu0 %v3491_v58  ;;  %v970_v57 = vsel %vm4004_vm5, %v3068_v47, %v969_v33  ;;  %v973_v58 = vsel %vm4004_vm5, %v971_v48, %v972_v49  ;;  %v579_v2 = vsel %vm3998_vm4, %v574_v54, %v578_v55  ;;  %v1212_v4 = vunpack.c.l.b16 %v555_v56 }
  0x4c   : > { %1981 = vmatmul.bf16.gmra.mxu1 %v3948_v59  ;;  %2001 = vmatmul.bf16.gmra.mxu2 %v3452_v60  ;;  %v581_v60 = vshrl.u32 %v4010_v51, 16  ;;  %v1214_v17 = vunpack.c.l.b16 %v579_v2  ;;  %v602_v33 = vrot.slane %v600_v26, 5  ;;  %v980_v40 = vsel %vm4004_vm5, %v978_v29, %v979_v30 }
  0x4d   : > { %2021 = vmatmul.bf16.gmra.mxu3 %v3456_v62  ;;  %2477 = vmatpush.bf16.msra.mxu2 %v3514_v5  ;;  %v590_v62 = vshll.u32 %v4013_v52, 16  ;;  %v1275_v5 = vunpack.c.l.b16 %v970_v57  ;;  %v1243_v23 = vpack.c.b16 %v1212_v4, %v1211_v3  ;;  %v614_v47 = vshll.u32 %v4052_v34, 16 }
  0x4e   : > { %1961 = vmatmul.bf16.gmra.mxu0 %v3954_v63  ;;  %2566 = vmatpush.bf16.msra.mxu3 %v3522_v6  ;;  %v1276_v6 = vunpack.c.l.b16 %v973_v58  ;;  %v1244_v27 = vpack.c.b16 %v1214_v17, %v1213_v16  ;;  %v618_v48 = vshrl.u32 %v4052_v34, 16  ;;  %v1277_v49 = vunpack.c.l.b16 %v977_v39 }
  0x4f   : > { %2388 = vmatpush.bf16.msra.mxu1 %v3506_v7  ;;  %2655 = vmatpush.bf16.msra.mxu0 %v3530_v8  ;;  %v583_v7 = vrot.slane %v581_v60, 4  ;;  %v586_v8 = vrot.slane %v584_v61, 5  ;;  %v592_v10 = vrot.slane %v590_v62, 5  ;;  %v1278_v53 = vunpack.c.l.b16 %v980_v40  ;;  %v477_v60 = vld [vmem:[%s3828_s27 + $0x20] sm:$0x1] }
  0x50   : > { %v1307_v19 = vpack.c.b16 %v1276_v6, %v1275_v5  ;;  %v616_v57 = vrot.slane %v614_v47, 5  ;;  %v620_v58 = vrot.slane %v618_v48, 4  ;;  %v983_v62 = vrot.slane %v4013_v52, 5 }
  0x51   : > { %v587_v24 = vor.u32 %v586_v8, %v583_v7  ;;  %v597_v25 = vor.u32 %v596_v13, %v592_v10  ;;  %2478 = vmatpush.bf16.msra.mxu2 %v3513_v12  ;;  %v4070_v61 = vpack.c.b16 %v1278_v53, %v1277_v49  ;;  %v624_v3 = vshll.u32 %v477_v60, 16  ;;  %v4084_v13 = vld [vmem:[%s3828_s27 + $0x28] sm:$0xf] }
  0x52   : > { %v621_v2 = vor.u32 %v620_v58, %v616_v57  ;;  %v3070_v4 = vrot.slane %v4010_v51, 9  ;;  %v985_v5 = vrot.slane %v983_v62, 4  ;;  %v986_v6 = vrot.slane %v4032_v18, 5 }
  0x53   : > { %v588_v31 = vrot.slane %v587_v24, 4  ;;  %v598_v32 = vrot.slane %v597_v25, 4  ;;  %2389 = vmatpush.bf16.msra.mxu1 %v3505_v11  ;;  %v626_v8 = vrot.slane %v624_v3, 5  ;;  %v638_v20 = vshll.u32 %v4084_v13, 16 }
  0x54   : > { %v622_v52 = vrot.slane %v621_v2, 4  ;;  %v984_v16 = vsel %vm4004_vm5, %v3070_v4, %v983_v62  ;;  %v987_v51 = vsel %vm4004_vm5, %v985_v5, %v986_v6  ;;  %v3528_v2 = vld [vmem:[%s4977_s3 + $0x228] sm:$0xff] }
  0x55   : > { %v593_v42 = vsel %vm3998_vm4, %v588_v31, %v592_v10  ;;  %v603_v43 = vsel %vm3998_vm4, %v598_v32, %v602_v33  ;;  %v4081_v10 = vld [vmem:[%s3828_s27 + $0x24] sm:$0xf]  ;;  %v1279_v24 = vunpack.c.l.b16 %v984_v16  ;;  %v1280_v25 = vunpack.c.l.b16 %v987_v51  ;;  %v4100_v33 = vld [vmem:[%s3828_s27 + $0x2c] sm:$0x1] }
  0x56   : > { %v1215_v54 = vunpack.c.l.b16 %v593_v42  ;;  %v1216_v55 = vunpack.c.l.b16 %v603_v43  ;;  %v627_v17 = vsel %vm3998_vm4, %v622_v52, %v626_v8  ;;  %v629_v18 = vshrl.u32 %v4081_v10, 16  ;;  %v4143_v8 = vld [vmem:[%s3828_s27 + $0x38] sm:$0x1] }
  0x57   : > { %v640_v30 = vrot.slane %v638_v20, 5  ;;  %v990_v32 = vrot.slane %v4052_v34, 5  ;;  %v4102_v12 = vpack.c.b16 %v1280_v25, %v1279_v24  ;;  %v648_v39 = vshll.u32 %v4100_v33, 16  ;;  %v4111_v34 = vld [vmem:[%s3828_s27 + $0x30] sm:$0xf] }
  0x58   : > { %v4073_v0 = vpack.c.b16 %v1216_v55, %v1215_v54  ;;  %v631_v28 = vrot.slane %v629_v18, 4  ;;  %v993_v43 = vrot.slane %v477_v60, 5  ;;  %v653_v54 = vshrl.u32 %v4111_v34, 16 }
  0x59   : > { %v992_v42 = vrot.slane %v990_v32, 4  ;;  %v650_v49 = vrot.slane %v648_v39, 5  ;;  %v656_v55 = vshll.u32 %v4111_v34, 16  ;;  %v997_v16 = vrot.slane %v4084_v13, 5 }
  0x5a   : > { %v655_v3 = vrot.slane %v653_v54, 4  ;;  %v672_v18 = vshll.u32 %v4143_v8, 16  ;;  %v3072_v20 = vrot.slane %v4081_v10, 9  ;;  %v1000_v24 = vrot.slane %v4100_v33, 5 }
  0x5b   : > { %v658_v4 = vrot.slane %v656_v55, 5 }
  0x5c   : > { %1986 = vmatmul.bf16.gmra.mxu1 %v3990_v35  ;;  %2006 = vmatmul.bf16.gmra.mxu2 %v3453_v36  ;;  %v3521_v36 = vld [vmem:[%s4977_s3 + $0x1f0] sm:$0xff] }
  0x5d   : > { %2026 = vmatmul.bf16.gmra.mxu3 %v3457_v37  ;;  %v4049_v37 = vld [vmem:[%s3828_s27 + $0x18] sm:$0xf] }
  0x5e   : > { %1966 = vmatmul.bf16.gmra.mxu0 %v3995_v38  ;;  %2567 = vmatpush.bf16.msra.mxu3 %v3521_v36  ;;  %v605_v15 = vshrl.u32 %v4049_v37, 16  ;;  %v608_v46 = vshll.u32 %v4049_v37, 16  ;;  %v3071_v40 = vrot.slane %v4049_v37, 9  ;;  %v3520_v37 = vld [vmem:[%s4977_s3 + $0x1e8] sm:$0xff] }
  0x60   : > { %v607_v14 = vrot.slane %v605_v15, 4  ;;  %v610_v56 = vrot.slane %v608_v46, 5  ;;  %v3512_v15 = vld [vmem:[%s4977_s3 + $0x1a8] sm:$0xff]  ;;  %v4119_v46 = vld [vmem:[%s3828_s27 + $0x34] sm:$0xf]  ;;  %v991_v53 = vsel %vm4004_vm5, %v3071_v40, %v990_v32 }
  0x61   : > { %2479 = vmatpush.bf16.msra.mxu2 %v3512_v15  ;;  %v1281_v62 = vunpack.c.l.b16 %v991_v53 }
  0x62   : > { %v611_v1 = vor.u32 %v610_v56, %v607_v14  ;;  %2568 = vmatpush.bf16.msra.mxu3 %v3520_v37  ;;  %v662_v14 = vshll.u32 %v4119_v46, 16  ;;  %v666_v56 = vshrl.u32 %v4119_v46, 16 }
  0x64   : > { %v612_v7 = vrot.slane %v611_v1, 4  ;;  %v664_v5 = vrot.slane %v662_v14, 5  ;;  %v668_v6 = vrot.slane %v666_v56, 4 }
  0x6c   : > { %2040 = vmatmul.bf16.vlgmr.msrb.gmra.mxu1 %v1243_v23  ;;  %2129 = vmatmul.bf16.vlgmr.msrb.gmra.mxu2 %v1307_v19  ;;  %v632_v19 = vshll.u32 %v4081_v10, 16  ;;  %v642_v23 = vshrl.u32 %v4084_v13, 16  ;;  %v998_v10 = vsel %vm4004_vm5, %v3072_v20, %v997_v16 }
  0x6d   : > { %2218 = vmatmul.bf16.vlgmr.msrb.gmra.mxu3 %v3901_v44  ;;  %v3529_v44 = vld [vmem:[%s4977_s3 + $0x230] sm:$0xff] }
  0x6e   : > { %2307 = vmatmul.bf16.vlgmr.msrb.gmra.mxu0 %v1244_v27  ;;  %v634_v29 = vrot.slane %v632_v19, 5  ;;  %v644_v31 = vrot.slane %v642_v23, 4  ;;  %v999_v23 = vrot.slane %v997_v16, 4 }
  0x6f   : > { %2656 = vmatpush.bf16.msra.mxu0 %v3529_v44 }
  0x70   : > { %v635_v11 = vor.u32 %v634_v29, %v631_v28  ;;  %v645_v44 = vor.u32 %v644_v31, %v640_v30  ;;  %v4161_v28 = vld [vmem:[%s3828_s27 + $0x40] sm:$0xf]  ;;  %v1001_v29 = vsel %vm4004_vm5, %v999_v23, %v1000_v24 }
  0x71   : > { %v686_v33 = vshll.u32 %v4161_v28, 16  ;;  %v1284_v39 = vunpack.c.l.b16 %v1001_v29 }
  0x72   : > { %v636_v47 = vrot.slane %v635_v11, 4  ;;  %v646_v48 = vrot.slane %v645_v44, 4  ;;  %v690_v11 = vshrl.u32 %v4161_v28, 16  ;;  %v1283_v44 = vunpack.c.l.b16 %v998_v10 }
  0x73   : > { %2657 = vmatpush.bf16.msra.mxu0 %v3528_v2  ;;  %v688_v37 = vrot.slane %v686_v33, 5 }
  0x74   : > { %v641_v58 = vsel %vm3998_vm4, %v636_v47, %v640_v30  ;;  %v651_v60 = vsel %vm3998_vm4, %v646_v48, %v650_v49  ;;  %v692_v47 = vrot.slane %v690_v11, 4  ;;  %v4178_v48 = vld [vmem:[%s4978_s4] ss:$0 sm:$0xff]  ;;  %v4181_v49 = vld [vmem:[%s3828_s27 + $0x44] sm:$0x1]  ;;  %v4183_v53 = vpack.c.b16 %v1284_v39, %v1283_v44 }
  0x75   : > { %v1220_v52 = vunpack.c.l.b16 %v651_v60 }
  0x76   : > { %v693_v56 = vor.u32 %v692_v47, %v688_v37 }
  0x7c   : > { %2045 = vmatmul.bf16.gmra.mxu1 %v1244_v27  ;;  %2134 = vmatmul.bf16.gmra.mxu2 %v4070_v61  ;;  %v1218_v27 = vunpack.c.l.b16 %v627_v17  ;;  %v669_v17 = vor.u32 %v668_v6, %v664_v5  ;;  %v3519_v6 = vld [vmem:[%s4977_s3 + $0x1e0] sm:$0xff] }
  0x7d   : > { %2223 = vmatmul.bf16.gmra.mxu3 %v3954_v63  ;;  %v617_v63 = vsel %vm3998_vm4, %v612_v7, %v616_v57  ;;  %v3504_v57 = vld [vmem:[%s4977_s3 + $0x168] sm:$0xff]  ;;  %v1219_v7 = vunpack.c.l.b16 %v641_v58 }
  0x7e   : > { %2312 = vmatmul.bf16.gmra.mxu0 %v4073_v0  ;;  %v1217_v26 = vunpack.c.l.b16 %v617_v63  ;;  %2390 = vmatpush.bf16.msra.mxu1 %v3504_v57  ;;  %v659_v63 = vor.u32 %v658_v4, %v655_v3  ;;  %v670_v25 = vrot.slane %v669_v17, 4  ;;  %v696_v57 = vshll.u32 %v4181_v49, 16 }
  0x7f   : > { %v4149_v19 = vpack.c.b16 %v1220_v52, %v1219_v7  ;;  %v694_v3 = vrot.slane %v693_v56, 4  ;;  %v4207_v7 = vld [vmem:[%s3828_s27 + $0x48] sm:$0xf]  ;;  %v4210_v52 = vld [vmem:[%s3828_s27 + $0x4c] sm:$0xf]  ;;  %2569 = vmatpush.bf16.msra.mxu3 %v3519_v6 }
  0x80   : > { %v4104_v36 = vpack.c.b16 %v1218_v27, %v1217_v26  ;;  %v660_v13 = vrot.slane %v659_v63, 4  ;;  %v674_v26 = vrot.slane %v672_v18, 5  ;;  %v4158_v27 = vld [vmem:[%s3828_s27 + $0x3c] sm:$0xf]  ;;  %v698_v4 = vrot.slane %v696_v57, 5 }
  0x81   : > { %v680_v32 = vshll.u32 %v4158_v27, 16  ;;  %v701_v24 = vshrl.u32 %v4207_v7, 16  ;;  %v704_v10 = vshll.u32 %v4207_v7, 16  ;;  %v710_v29 = vshll.u32 %v4210_v52, 16  ;;  %v4266_v6 = vld [vmem:[%s3828_s27 + $0x54] sm:$0xf] }
  0x82   : > { %v665_v30 = vsel %vm3998_vm4, %v660_v13, %v664_v5  ;;  %v675_v31 = vsel %vm3998_vm4, %v670_v25, %v674_v26  ;;  %v3511_v5 = vld [vmem:[%s4977_s3 + $0x1a0] sm:$0xff]  ;;  %v699_v23 = vsel %vm3998_vm4, %v694_v3, %v698_v4  ;;  %v3074_v3 = vrot.slane %v4158_v27, 9 }
  0x83   : > { %v1221_v40 = vunpack.c.l.b16 %v665_v30  ;;  %v682_v15 = vrot.slane %v680_v32, 5  ;;  %2480 = vmatpush.bf16.msra.mxu2 %v3511_v5  ;;  %v3503_v13 = vld [vmem:[%s4977_s3 + $0x160] sm:$0xff]  ;;  %v714_v30 = vshrl.u32 %v4210_v52, 16  ;;  %v1224_v11 = vunpack.c.l.b16 %v699_v23 }
  0x84   : > { %2391 = vmatpush.bf16.msra.mxu1 %v3503_v13  ;;  %v703_v44 = vrot.slane %v701_v24, 4  ;;  %v706_v39 = vrot.slane %v704_v10, 5  ;;  %v1014_v5 = vrot.slane %v4181_v49, 5  ;;  %v728_v24 = vshll.u32 %v4266_v6, 16 }
  0x8c   : > { %2050 = vmatmul.bf16.gmra.mxu1 %v4073_v0  ;;  %2139 = vmatmul.bf16.gmra.mxu2 %v4102_v12 }
  0x8d   : > { %2228 = vmatmul.bf16.gmra.mxu3 %v3995_v38  ;;  %v994_v38 = vsel %vm4004_vm5, %v992_v42, %v993_v43  ;;  %v1222_v42 = vunpack.c.l.b16 %v675_v31  ;;  %v3527_v31 = vld [vmem:[%s4977_s3 + $0x220] sm:$0xff] }
  0x8e   : > { %2317 = vmatmul.bf16.gmra.mxu0 %v4104_v36  ;;  %v1282_v1 = vunpack.c.l.b16 %v994_v38  ;;  %v1004_v38 = vrot.slane %v4119_v46, 5  ;;  %v3073_v46 = vrot.slane %v4111_v34, 9 }
  0x8f   : > { %v4186_v55 = vpack.c.b16 %v1222_v42, %v1221_v40  ;;  %2658 = vmatpush.bf16.msra.mxu0 %v3527_v31  ;;  %v712_v40 = vrot.slane %v710_v29, 5  ;;  %v716_v42 = vrot.slane %v714_v30, 4 }
  0x90   : > { %v4146_v51 = vpack.c.b16 %v1282_v1, %v1281_v62  ;;  %v1006_v62 = vrot.slane %v1004_v38, 4  ;;  %v1007_v1 = vrot.slane %v4143_v8, 5  ;;  %v1005_v16 = vsel %vm4004_vm5, %v3073_v46, %v1004_v38 }
  0x91   : > { %5009 = vst [vmem:[#allocation3_spill] sm:$0xff] %v4186_v55 }
  0x92   : > { %v1008_v63 = vsel %vm4004_vm5, %v1006_v62, %v1007_v1  ;;  %v707_v62 = vor.u32 %v706_v39, %v703_v44  ;;  %v717_v1 = vor.u32 %v716_v42, %v712_v40  ;;  %v730_v42 = vrot.slane %v728_v24, 5 }
  0x93   : > { %v1286_v32 = vunpack.c.l.b16 %v1008_v63 }
  0x9c   : > { %2055 = vmatmul.bf16.gmra.mxu1 %v4104_v36  ;;  %2144 = vmatmul.bf16.gmra.mxu2 %v4146_v51 }
  0x9d   : > { %2233 = vmatmul.bf16.gmra.mxu3 %v3839_v21  ;;  %v677_v21 = vshrl.u32 %v4158_v27, 16 }
  0x9e   : > { %2322 = vmatmul.bf16.gmra.mxu0 %v4149_v19 }
  0x9f   : > { %v679_v43 = vrot.slane %v677_v21, 4  ;;  %v1285_v21 = vunpack.c.l.b16 %v1005_v16  ;;  %v718_v16 = vrot.slane %v717_v1, 4 }
  0xa1   : > { %v683_v14 = vor.u32 %v682_v15, %v679_v43  ;;  %v1011_v15 = vrot.slane %v4161_v28, 5 }
  0xa3   : > { %v684_v2 = vrot.slane %v683_v14, 4  ;;  %v1013_v4 = vrot.slane %v1011_v15, 4  ;;  %v1012_v27 = vsel %vm4004_vm5, %v3074_v3, %v1011_v15  ;;  %v1018_v3 = vrot.slane %v4210_v52, 5 }
  0xa5   : > { %v689_v20 = vsel %vm3998_vm4, %v684_v2, %v688_v37  ;;  %v4243_v37 = vld [vmem:[%s3828_s27 + $0x50] sm:$0x1]  ;;  %v1015_v49 = vsel %vm4004_vm5, %v1013_v4, %v1014_v5 }
  0xa6   : > { %v1223_v33 = vunpack.c.l.b16 %v689_v20  ;;  %v720_v2 = vshll.u32 %v4243_v37, 16  ;;  %v725_v20 = vshrl.u32 %v4266_v6, 16  ;;  %v1288_v44 = vunpack.c.l.b16 %v1015_v49 }
  0xa7   : > { %v1021_v24 = vrot.slane %v4243_v37, 5  ;;  %v4332_v37 = vld [vmem:[%s3828_s27 + $0x64] sm:$0xf] }
  0xa8   : > { %v4253_v57 = vpack.c.b16 %v1224_v11, %v1223_v33  ;;  %v722_v63 = vrot.slane %v720_v2, 5  ;;  %v1287_v11 = vunpack.c.l.b16 %v1012_v27  ;;  %v727_v39 = vrot.slane %v725_v20, 4 }
  0xa9   : > { %v1972_v54 = vpop.f32.mrf.mxu1  ;;  %v3075_v20 = vrot.slane %v4207_v7, 9  ;;  %v3518_v7 = vld [vmem:[%s4977_s3 + $0x1d8] sm:$0xff] }
  0xaa   : > { %v4190_v58 = vadd.f32 %v4178_v48, %v1972_v54  ;;  %v4248_v54 = vpack.c.b16 %v1286_v32, %v1285_v21  ;;  %5013 = vst [vmem:[#allocation7_spill] sm:$0xff] %v4253_v57  ;;  %v723_v33 = vsel %vm3998_vm4, %v718_v16, %v722_v63  ;;  %v4299_v2 = vpack.c.b16 %v1288_v44, %v1287_v11 }
  0xab   : > { %v4192_v60 = vpop.f32.mrf.mxu0  ;;  %v731_v5 = vor.u32 %v730_v42, %v727_v39  ;;  %v1019_v44 = vsel %vm4004_vm5, %v3075_v20, %v1018_v3  ;;  %2570 = vmatpush.bf16.msra.mxu3 %v3518_v7  ;;  %v3526_v20 = vld [vmem:[%s4977_s3 + $0x218] sm:$0xff] }
  0xac   : > { %2060 = vmatmul.bf16.gmra.mxu1 %v4149_v19  ;;  %2149 = vmatmul.bf16.gmra.mxu2 %v4183_v53  ;;  %5011 = vst [vmem:[#allocation5_spill] sm:$0xff] %v4248_v54 }
  0xad   : > { %2238 = vmatmul.bf16.gmra.mxu3 %v3896_v41  ;;  %5015 = vst [vmem:[#allocation9_spill] sm:$0xff] %v4299_v2  ;;  %2659 = vmatpush.bf16.msra.mxu0 %v3526_v20 }
  0xae   : > { %2327 = vmatmul.bf16.gmra.mxu0 %v4186_v55 }
  0xaf   : > { %v1992_v34 = vpop.f32.mrf.mxu2 }
  0xb0   : > { %v4213_v41 = vadd.f32 %v4178_v48, %v1992_v34  ;;  %v2012_v8 = vpop.f32.mrf.mxu3  ;;  %v4271_v34 = vld [vmem:[%s3828_s27 + $0x58] sm:$0xf] }
  0xb1   : > { %v4220_v17 = vadd.f32 %v4178_v48, %v2012_v8  ;;  %v1974_v18 = vpop.f32.mrf.mxu1  ;;  %v708_v8 = vrot.slane %v707_v62, 4  ;;  %v734_v13 = vshll.u32 %v4271_v34, 16  ;;  %v738_v10 = vshrl.u32 %v4271_v34, 16  ;;  %v4297_v62 = vld [vmem:[%s3828_s27 + $0x5c] sm:$0x1] }
  0xb2   : > { %v4231_v25 = vadd.f32 %v4178_v48, %v1974_v18  ;;  %v744_v16 = vshll.u32 %v4297_v62, 16 }
  0xb3   : > { %5010 = vst [vmem:[#allocation4_spill] sm:$0xff] %v4220_v17  ;;  %v4233_v26 = vpop.f32.mrf.mxu0  ;;  %v713_v32 = vsel %vm3998_vm4, %v708_v8, %v712_v40  ;;  %v740_v15 = vrot.slane %v738_v10, 4 }
  0xb7   : > { %v1994_v43 = vpop.f32.mrf.mxu2 }
  0xb8   : > { %v4246_v47 = vadd.f32 %v4178_v48, %v1994_v43  ;;  %v2014_v38 = vpop.f32.mrf.mxu3  ;;  %v736_v43 = vrot.slane %v734_v13, 5  ;;  %v732_v13 = vrot.slane %v731_v5, 4  ;;  %v758_v5 = vshll.u32 %v4332_v37, 16 }
  0xb9   : > { %v4251_v14 = vadd.f32 %v4178_v48, %v2014_v38  ;;  %v1977_v56 = vpop.f32.mrf.mxu1  ;;  %v1225_v38 = vunpack.c.l.b16 %v713_v32  ;;  %v3510_v32 = vld [vmem:[%s4977_s3 + $0x198] sm:$0xff] }
  0xba   : > { %v4256_v46 = vadd.f32 %v4178_v48, %v1977_v56  ;;  %v1226_v56 = vunpack.c.l.b16 %v723_v33  ;;  %v741_v8 = vor.u32 %v740_v15, %v736_v43  ;;  %v4326_v33 = vld [vmem:[%s3828_s27 + $0x60] sm:$0xf]  ;;  %2481 = vmatpush.bf16.msra.mxu2 %v3510_v32  ;;  %v737_v15 = vsel %vm3998_vm4, %v732_v13, %v736_v43 }
  0xbb   : > { %5012 = vst [vmem:[#allocation6_spill] sm:$0xff] %v4251_v14  ;;  %v4258_v28 = vpop.f32.mrf.mxu0  ;;  %v1227_v13 = vunpack.c.l.b16 %v737_v15  ;;  %v760_v7 = vrot.slane %v758_v5, 5  ;;  %v1953_v14 = vadd.f32 %v4178_v48, %v4192_v60 }
  0xbc   : > { %2065 = vmatmul.bf16.gmra.mxu1 %v4186_v55  ;;  %2154 = vmatmul.bf16.gmra.mxu2 %v4248_v54  ;;  %v4309_v27 = vpack.c.b16 %v1226_v56, %v1225_v38  ;;  %v742_v10 = vrot.slane %v741_v8, 4  ;;  %v749_v56 = vshrl.u32 %v4326_v33, 16  ;;  %v762_v8 = vshrl.u32 %v4332_v37, 16 }
  0xbd   : > { %2243 = vmatmul.bf16.gmra.mxu3 %v3948_v59 }
  0xbe   : > { %2332 = vmatmul.bf16.gmra.mxu0 %v4253_v57  ;;  %5017 = vst [vmem:[#allocation11_spill] sm:$0xff] %v4309_v27 }
  0xbf   : > { %v1997_v18 = vpop.f32.mrf.mxu2 }
  0xc0   : > { %v4279_v23 = vadd.f32 %v4178_v48, %v1997_v18  ;;  %v2017_v59 = vpop.f32.mrf.mxu3 }
  0xc1   : > { %v4285_v29 = vadd.f32 %v4178_v48, %v2017_v59  ;;  %v1979_v30 = vpop.f32.mrf.mxu1  ;;  %v1020_v59 = vrot.slane %v1018_v3, 4 }
  0xc2   : > { %v4288_v31 = vadd.f32 %v4178_v48, %v1979_v30  ;;  %v746_v30 = vrot.slane %v744_v16, 5 }
  0xc3   : > { %5014 = vst [vmem:[#allocation8_spill] sm:$0xff] %v4285_v29  ;;  %v4290_v21 = vpop.f32.mrf.mxu0 }
  0xc4   : > { %v747_v38 = vsel %vm3998_vm4, %v742_v10, %v746_v30  ;;  %v751_v30 = vrot.slane %v749_v56, 4 }
  0xc5   : > { %v1228_v10 = vunpack.c.l.b16 %v747_v38 }
  0xc7   : > { %v1999_v1 = vpop.f32.mrf.mxu2  ;;  %v4371_v29 = vpack.c.b16 %v1228_v10, %v1227_v13  ;;  %v4390_v13 = vld [vmem:[%s3828_s27 + $0x6c] sm:$0xf] }
  0xc8   : > { %v4303_v40 = vadd.f32 %v4178_v48, %v1999_v1  ;;  %v2019_v4 = vpop.f32.mrf.mxu3 }
  0xc9   : > { %v4307_v63 = vadd.f32 %v4178_v48, %v2019_v4  ;;  %v1982_v18 = vpop.f32.mrf.mxu1  ;;  %v752_v4 = vshll.u32 %v4326_v33, 16  ;;  %5020 = vst [vmem:[#allocation14_spill] sm:$0xff] %v4371_v29 }
  0xca   : > { %v4312_v49 = vadd.f32 %v4178_v48, %v1982_v18  ;;  %v3502_v18 = vld [vmem:[%s4977_s3 + $0x158] sm:$0xff] }
  0xcb   : > { %5016 = vst [vmem:[#allocation10_spill] sm:$0xff] %v4307_v63  ;;  %v4314_v52 = vpop.f32.mrf.mxu0  ;;  %2392 = vmatpush.bf16.msra.mxu1 %v3502_v18  ;;  %v754_v32 = vrot.slane %v752_v4, 5  ;;  %v1028_v18 = vrot.slane %v4297_v62, 5 }
  0xcc   : > { %2070 = vmatmul.bf16.gmra.mxu1 %v4253_v57  ;;  %2159 = vmatmul.bf16.gmra.mxu2 %v4299_v2 }
  0xcd   : > { %2248 = vmatmul.bf16.gmra.mxu3 %v3990_v35  ;;  %v1022_v35 = vsel %vm4004_vm5, %v1020_v59, %v1021_v24  ;;  %v1289_v59 = vunpack.c.l.b16 %v1019_v44  ;;  %v1025_v44 = vrot.slane %v4271_v34, 5  ;;  %v755_v38 = vor.u32 %v754_v32, %v751_v30  ;;  %v4393_v30 = vld [vmem:[%s3828_s27 + $0x70] sm:$0xf] }
  0xce   : > { %2337 = vmatmul.bf16.gmra.mxu0 %v4309_v27  ;;  %v1290_v24 = vunpack.c.l.b16 %v1022_v35  ;;  %v3076_v34 = vrot.slane %v4266_v6, 9 }
  0xcf   : > { %v2002_v11 = vpop.f32.mrf.mxu2  ;;  %v756_v20 = vrot.slane %v755_v38, 4 }
  0xd0   : > { %v4339_v39 = vadd.f32 %v4178_v48, %v2002_v11  ;;  %v2022_v42 = vpop.f32.mrf.mxu3  ;;  %v764_v11 = vrot.slane %v762_v8, 4  ;;  %v4369_v63 = vpack.c.b16 %v1290_v24, %v1289_v59  ;;  %v1026_v6 = vsel %vm4004_vm5, %v3076_v34, %v1025_v44 }
  0xd1   : > { %v4347_v1 = vadd.f32 %v4178_v48, %v2022_v42  ;;  %v1984_v3 = vpop.f32.mrf.mxu1  ;;  %v4364_v42 = vld [vmem:[%s3828_s27 + $0x68] sm:$0x1]  ;;  %v776_v34 = vshll.u32 %v4390_v13, 16 }
  0xd2   : > { %v4353_v16 = vadd.f32 %v4178_v48, %v1984_v3  ;;  %5019 = vst [vmem:[#allocation13_spill] sm:$0xff] %v4369_v63  ;;  %v765_v56 = vor.u32 %v764_v11, %v760_v7  ;;  %v768_v4 = vshll.u32 %v4364_v42, 16  ;;  %v1035_v17 = vrot.slane %v4364_v42, 5 }
  0xd3   : > { %5018 = vst [vmem:[#allocation12_spill] sm:$0xff] %v4347_v1  ;;  %v4355_v43 = vpop.f32.mrf.mxu0 }
  0xd4   : > { %v766_v59 = vrot.slane %v765_v56, 4  ;;  %v770_v24 = vrot.slane %v768_v4, 5  ;;  %v773_v56 = vshrl.u32 %v4390_v13, 16 }
  0xd6   : > { %v771_v38 = vsel %vm3998_vm4, %v766_v59, %v770_v24  ;;  %v778_v59 = vrot.slane %v776_v34, 5 }
  0xd7   : > { %v2004_v3 = vpop.f32.mrf.mxu2 }
  0xd8   : > { %v4367_v9 = vadd.f32 %v4178_v48, %v2004_v3  ;;  %v2024_v1 = vpop.f32.mrf.mxu3 }
  0xd9   : > { %v4375_v35 = vadd.f32 %v4178_v48, %v2024_v1  ;;  %v1987_v15 = vpop.f32.mrf.mxu1  ;;  %v1027_v1 = vrot.slane %v1025_v44, 4 }
  0xda   : > { %v4379_v5 = vadd.f32 %v4178_v48, %v1987_v15  ;;  %v761_v15 = vsel %vm3998_vm4, %v756_v20, %v760_v7  ;;  %v1230_v20 = vunpack.c.l.b16 %v771_v38 }
  0xdb   : > { %5021 = vst [vmem:[#allocation15_spill] sm:$0xff] %v4375_v35  ;;  %v4381_v8 = vpop.f32.mrf.mxu0  ;;  %v1229_v7 = vunpack.c.l.b16 %v761_v15 }
  0xdc   : > { %2075 = vmatmul.bf16.gmra.mxu1 %v4309_v27  ;;  %2164 = vmatmul.bf16.gmra.mxu2 %v4369_v63  ;;  %v4420_v27 = vld [vmem:[%s3828_s27 + $0x74] sm:$0x1] }
  0xdd   : > { %2253 = vmatmul.bf16.gmra.mxu3 %v3842_v22  ;;  %v1029_v22 = vsel %vm4004_vm5, %v1027_v1, %v1028_v18  ;;  %v782_v1 = vshll.u32 %v4393_v30, 16  ;;  %v786_v18 = vshrl.u32 %v4393_v30, 16  ;;  %v792_v60 = vshll.u32 %v4420_v27, 16 }
  0xde   : > { %2342 = vmatmul.bf16.gmra.mxu0 %v4371_v29 }
  0xdf   : > { %v2007_v10 = vpop.f32.mrf.mxu2  ;;  %v784_v24 = vrot.slane %v782_v1, 5  ;;  %v788_v35 = vrot.slane %v786_v18, 4 }
  0xe0   : > { %v4396_v32 = vadd.f32 %v4178_v48, %v2007_v10  ;;  %v2027_v11 = vpop.f32.mrf.mxu3  ;;  %v1291_v10 = vunpack.c.l.b16 %v1026_v6 }
  0xe1   : > { %v4403_v62 = vadd.f32 %v4178_v48, %v2027_v11  ;;  %v1989_v3 = vpop.f32.mrf.mxu1  ;;  %v1292_v11 = vunpack.c.l.b16 %v1029_v22  ;;  %v789_v18 = vor.u32 %v788_v35, %v784_v24  ;;  %v4448_v35 = vld [vmem:[%s3828_s27 + $0x7c] sm:$0xf] }
  0xe2   : > { %v4411_v4 = vadd.f32 %v4178_v48, %v1989_v3  ;;  %v1032_v3 = vrot.slane %v4332_v37, 5 }
  0xe3   : > { %5022 = vst [vmem:[#allocation16_spill] sm:$0xff] %v4403_v62  ;;  %v4413_v44 = vpop.f32.mrf.mxu0  ;;  %v775_v62 = vrot.slane %v773_v56, 4  ;;  %v4427_v22 = vpack.c.b16 %v1292_v11, %v1291_v10  ;;  %v4432_v56 = vpack.c.b16 %v1230_v20, %v1229_v7  ;;  %v4440_v10 = vld [vmem:[%s3828_s27 + $0x78] sm:$0xf]  ;;  %v3687_v11 = vld [vmem:[%s3828_s27 + $0x60] sm:$0xff]  ;;  %v794_v7 = vrot.slane %v792_v60, 5 }
  0xe4   : > { %v1034_v57 = vrot.slane %v1032_v3, 4  ;;  %v1955_v20 = vadd.f32 %v4178_v48, %v4233_v26  ;;  %v810_v60 = vshrl.u32 %v4448_v35, 16 }
  0xe5   : > { %5024 = vst [vmem:[#allocation18_spill] sm:$0xff] %v4427_v22  ;;  %v779_v1 = vor.u32 %v778_v59, %v775_v62  ;;  %v790_v62 = vrot.slane %v789_v18, 4  ;;  %v806_v18 = vshll.u32 %v4448_v35, 16 }
  0xe6   : > { %5026 = vst [vmem:[#allocation20_spill] sm:$0xff] %v4432_v56 }
  0xe7   : > { %v2009_v63 = vpop.f32.mrf.mxu2  ;;  %v780_v42 = vrot.slane %v779_v1, 4  ;;  %v800_v1 = vshll.u32 %v4440_v10, 16 }
  0xe8   : > { %v4425_v2 = vadd.f32 %v4178_v48, %v2009_v63  ;;  %v2029_v6 = vpop.f32.mrf.mxu3  ;;  %v3077_v63 = vrot.slane %v4326_v33, 9  ;;  %v3517_v33 = vld [vmem:[%s4977_s3 + $0x1d0] sm:$0xff] }
  0xe9   : > { %v4430_v15 = vadd.f32 %v4178_v48, %v2029_v6  ;;  %v2041_v38 = vpop.f32.mrf.mxu1  ;;  %2571 = vmatpush.bf16.msra.mxu3 %v3517_v33  ;;  %v808_v33 = vrot.slane %v806_v18, 5 }
  0xea   : > { %5023 = vst [vmem:[#allocation17_spill] sm:$0xff] %v4425_v2  ;;  %v2042_v37 = vadd.f32 %v2041_v38, %v1953_v14  ;;  %v3509_v14 = vld [vmem:[%s4977_s3 + $0x190] sm:$0xff]  ;;  %v1033_v6 = vsel %vm4004_vm5, %v3077_v63, %v1032_v3  ;;  %v1036_v38 = vsel %vm4004_vm5, %v1034_v57, %v1035_v17  ;;  %v785_v17 = vsel %vm3998_vm4, %v780_v42, %v784_v24 }
  0xeb   : > { %5025 = vst [vmem:[#allocation19_spill] sm:$0xff] %v4430_v15  ;;  %v2308_v34 = vpop.f32.mrf.mxu0  ;;  %2482 = vmatpush.bf16.msra.mxu2 %v3509_v14  ;;  %v795_v57 = vsel %vm3998_vm4, %v790_v62, %v794_v7  ;;  %v3501_v3 = vld [vmem:[%s4977_s3 + $0x150] sm:$0xff]  ;;  %v1293_v63 = vunpack.c.l.b16 %v1033_v6  ;;  %v1294_v14 = vunpack.c.l.b16 %v1036_v38  ;;  %v1231_v42 = vunpack.c.l.b16 %v785_v17  ;;  %v4476_v7 = vld [vmem:[%s3828_s27 + $0x80] sm:$0x1] }
  0xec   : > { %2080 = vmatmul.bf16.gmra.mxu1 %v4371_v29  ;;  %2169 = vmatmul.bf16.gmra.mxu2 %v4427_v22  ;;  %v1232_v62 = vunpack.c.l.b16 %v795_v57  ;;  %v1039_v6 = vrot.slane %v4393_v30, 5  ;;  %v1042_v30 = vrot.slane %v4420_v27, 5  ;;  %v1960_v27 = vadd.f32 %v4178_v48, %v4290_v21 }
  0xed   : > { %2258 = vmatmul.bf16.gmra.mxu3 %v3687_v11  ;;  %v797_v11 = vshrl.u32 %v4440_v10, 16  ;;  %2393 = vmatpush.bf16.msra.mxu1 %v3501_v3  ;;  %v4480_v55 = vpack.c.b16 %v1294_v14, %v1293_v63  ;;  %v3078_v3 = vrot.slane %v4390_v13, 9  ;;  %v4501_v13 = vld [vmem:[%s3828_s27 + $0x88] sm:$0xf] }
  0xee   : > { %2347 = vmatmul.bf16.gmra.mxu0 %v4432_v56 }
  0xef   : > { %v2130_v59 = vpop.f32.mrf.mxu2  ;;  %5028 = vst [vmem:[#allocation22_spill] sm:$0xff] %v4480_v55 }
  0xf0   : > { %v2131_v15 = vadd.f32 %v2130_v59, %v2042_v37  ;;  %v2219_v22 = vpop.f32.mrf.mxu3  ;;  %v3525_v37 = vld [vmem:[%s4977_s3 + $0x210] sm:$0xff]  ;;  %v1958_v59 = vadd.f32 %v4178_v48, %v4258_v28 }
  0xf1   : > { %v2043_v26 = vpop.f32.mrf.mxu1  ;;  %2660 = vmatpush.bf16.msra.mxu0 %v3525_v37  ;;  %v1041_v37 = vrot.slane %v1039_v6, 4 }
  0xf2   : > { %v2220_v29 = vadd.f32 %v2219_v22, %v2131_v15  ;;  %v2044_v2 = vadd.f32 %v2043_v26, %v1955_v20  ;;  %v799_v22 = vrot.slane %v797_v11, 4  ;;  %v802_v15 = vrot.slane %v800_v1, 5 }
  0xf3   : > { %v2310_v54 = vpop.f32.mrf.mxu0  ;;  %v812_v20 = vrot.slane %v810_v60, 4  ;;  %v4484_v60 = vpack.c.b16 %v1232_v62, %v1231_v42  ;;  %v1040_v62 = vsel %vm4004_vm5, %v3078_v3, %v1039_v6  ;;  %v834_v6 = vshrl.u32 %v4501_v13, 16 }
  0xf4   : > { %v4473_v24 = vadd.f32 %v2308_v34, %v2220_v29  ;;  %v803_v1 = vor.u32 %v802_v15, %v799_v22  ;;  %v816_v29 = vshll.u32 %v4476_v7, 16  ;;  %v4493_v15 = vld [vmem:[%s3828_s27 + $0x6c] sm:$0xff]  ;;  %v1295_v3 = vunpack.c.l.b16 %v1040_v62 }
  0xf5   : > { %v813_v18 = vor.u32 %v812_v20, %v808_v33  ;;  %5030 = vst [vmem:[#allocation24_spill] sm:$0xff] %v4493_v15  ;;  %v4498_v20 = vld [vmem:[%s3828_s27 + $0x84] sm:$0xf]  ;;  %v1046_v62 = vrot.slane %v4448_v35, 5  ;;  %v1049_v35 = vrot.slane %v4476_v7, 5 }
  0xf6   : > { %5027 = vst [vmem:[#allocation21_spill] sm:$0xff] %v4473_v24  ;;  %v818_v14 = vrot.slane %v816_v29, 5  ;;  %v824_v21 = vshll.u32 %v4498_v20, 16  ;;  %v830_v29 = vshll.u32 %v4501_v13, 16  ;;  %v4520_v24 = vld [vmem:[%s3828_s27 + $0x8c] sm:$0x1] }
  0xf7   : > { %v2132_v26 = vpop.f32.mrf.mxu2  ;;  %v814_v63 = vrot.slane %v813_v18, 4  ;;  %v821_v18 = vshrl.u32 %v4498_v20, 16  ;;  %v4548_v7 = vld [vmem:[%s3828_s27 + $0x90] sm:$0xf] }
  0xf8   : > { %v2133_v38 = vadd.f32 %v2132_v26, %v2044_v2  ;;  %v2221_v11 = vpop.f32.mrf.mxu3  ;;  %v804_v2 = vrot.slane %v803_v1, 4  ;;  %v1043_v26 = vsel %vm4004_vm5, %v1041_v37, %v1042_v30 }
  0xf9   : > { %v2046_v34 = vpop.f32.mrf.mxu1  ;;  %v1296_v37 = vunpack.c.l.b16 %v1043_v26 }
  0xfa   : > { %v2222_v17 = vadd.f32 %v2221_v11, %v2133_v38  ;;  %v2047_v57 = vadd.f32 %v2046_v34, %v1958_v59  ;;  %v809_v38 = vsel %vm3998_vm4, %v804_v2, %v808_v33  ;;  %v819_v11 = vsel %vm3998_vm4, %v814_v63, %v818_v14 }
  0xfb   : > { %v2313_v28 = vpop.f32.mrf.mxu0  ;;  %v1233_v30 = vunpack.c.l.b16 %v809_v38  ;;  %v1234_v33 = vunpack.c.l.b16 %v819_v11  ;;  %v823_v63 = vrot.slane %v821_v18, 4  ;;  %v826_v14 = vrot.slane %v824_v21, 5 }
  0xfc   : > { %2085 = vmatmul.bf16.gmra.mxu1 %v4432_v56  ;;  %2174 = vmatmul.bf16.gmra.mxu2 %v4480_v55  ;;  %v4490_v22 = vadd.f32 %v2310_v54, %v2222_v17  ;;  %v1963_v55 = vadd.f32 %v4178_v48, %v4314_v52  ;;  %v840_v11 = vshll.u32 %v4520_v24, 16  ;;  %v3079_v52 = vrot.slane %v4440_v10, 9  ;;  %v3516_v10 = vld [vmem:[%s4977_s3 + $0x1c8] sm:$0xff] }
  0xfd   : > { %2263 = vmatmul.bf16.gmra.mxu3 %v4493_v15  ;;  %v827_v26 = vor.u32 %v826_v14, %v823_v63 }
  0xfe   : > { %5029 = vst [vmem:[#allocation23_spill] sm:$0xff] %v4490_v22  ;;  %2352 = vmatmul.bf16.gmra.mxu0 %v4484_v60  ;;  %v836_v22 = vrot.slane %v834_v6, 4  ;;  %v4537_v6 = vld [vmem:[%s3828_s27 + $0x78] sm:$0xff]  ;;  %2572 = vmatpush.bf16.msra.mxu3 %v3516_v10 }
  0xff   : > { %v2135_v42 = vpop.f32.mrf.mxu2 }
 0x100   : > { %v2136_v59 = vadd.f32 %v2135_v42, %v2047_v57  ;;  %v2224_v54 = vpop.f32.mrf.mxu3  ;;  %v832_v42 = vrot.slane %v830_v29, 5 }
 0x101   : > { %v2048_v1 = vpop.f32.mrf.mxu1 }
 0x102   : > { %v2225_v34 = vadd.f32 %v2224_v54, %v2136_v59  ;;  %v2049_v17 = vadd.f32 %v2048_v1, %v1960_v27  ;;  %v4524_v27 = vpack.c.b16 %v1296_v37, %v1295_v3  ;;  %v837_v38 = vor.u32 %v836_v22, %v832_v42 }
 0x103   : > { %v2315_v57 = vpop.f32.mrf.mxu0  ;;  %v842_v22 = vrot.slane %v840_v11, 5  ;;  %v1965_v3 = vadd.f32 %v4178_v48, %v4355_v43 }
 0x104   : > { %v4517_v2 = vadd.f32 %v2313_v28, %v2225_v34  ;;  %v4527_v28 = vpack.c.b16 %v1234_v33, %v1233_v30  ;;  %v3508_v34 = vld [vmem:[%s4977_s3 + $0x188] sm:$0xff]  ;;  %v1047_v33 = vsel %vm4004_vm5, %v3079_v52, %v1046_v62 }
 0x105   : > { %2483 = vmatpush.bf16.msra.mxu2 %v3508_v34  ;;  %v3500_v52 = vld [vmem:[%s4977_s3 + $0x148] sm:$0xff] }
 0x106   : > { %5031 = vst [vmem:[#allocation25_spill] sm:$0xff] %v4517_v2  ;;  %2394 = vmatpush.bf16.msra.mxu1 %v3500_v52 }
 0x107   : > { %v2137_v15 = vpop.f32.mrf.mxu2 }
 0x108   : > { %v2138_v56 = vadd.f32 %v2137_v15, %v2049_v17  ;;  %v2226_v59 = vpop.f32.mrf.mxu3  ;;  %v1048_v15 = vrot.slane %v1046_v62, 4 }
 0x109   : > { %v2051_v54 = vpop.f32.mrf.mxu1 }
 0x10a   : > { %v2227_v1 = vadd.f32 %v2226_v59, %v2138_v56  ;;  %v2052_v18 = vadd.f32 %v2051_v54, %v1963_v55  ;;  %v828_v55 = vrot.slane %v827_v26, 4  ;;  %v838_v56 = vrot.slane %v837_v38, 4 }
 0x10b   : > { %v2318_v21 = vpop.f32.mrf.mxu0  ;;  %v1050_v63 = vsel %vm4004_vm5, %v1048_v15, %v1049_v35  ;;  %v845_v26 = vshrl.u32 %v4548_v7, 16  ;;  %v848_v38 = vshll.u32 %v4548_v7, 16  ;;  %v1297_v15 = vunpack.c.l.b16 %v1047_v33 }
 0x10c   : > { %2090 = vmatmul.bf16.gmra.mxu1 %v4484_v60  ;;  %2179 = vmatmul.bf16.gmra.mxu2 %v4524_v27  ;;  %v4534_v29 = vadd.f32 %v2315_v57, %v2227_v1  ;;  %v4551_v57 = vld [vmem:[%s3828_s27 + $0x94] sm:$0xf]  ;;  %v833_v59 = vsel %vm3998_vm4, %v828_v55, %v832_v42  ;;  %v843_v54 = vsel %vm3998_vm4, %v838_v56, %v842_v22  ;;  %v3524_v42 = vld [vmem:[%s4977_s3 + $0x208] sm:$0xff]  ;;  %v1298_v35 = vunpack.c.l.b16 %v1050_v63 }
 0x10d   : > { %2268 = vmatmul.bf16.gmra.mxu3 %v4537_v6  ;;  %v858_v62 = vshrl.u32 %v4551_v57, 16  ;;  %2661 = vmatpush.bf16.msra.mxu0 %v3524_v42  ;;  %v1235_v56 = vunpack.c.l.b16 %v833_v59  ;;  %v1236_v22 = vunpack.c.l.b16 %v843_v54  ;;  %v847_v34 = vrot.slane %v845_v26, 4  ;;  %v4591_v42 = vld [vmem:[%s3828_s27 + $0x9c] sm:$0xf] }
 0x10e   : > { %5032 = vst [vmem:[#allocation26_spill] sm:$0xff] %v4534_v29  ;;  %2357 = vmatmul.bf16.gmra.mxu0 %v4527_v28  ;;  %v850_v10 = vrot.slane %v848_v38, 5  ;;  %v1968_v29 = vadd.f32 %v4178_v48, %v4381_v8  ;;  %v4581_v52 = vpack.c.b16 %v1298_v35, %v1297_v15  ;;  %v4596_v35 = vld [vmem:[%s3828_s27 + $0x84] sm:$0xff] }
 0x10f   : > { %v2140_v17 = vpop.f32.mrf.mxu2  ;;  %v4583_v59 = vpack.c.b16 %v1236_v22, %v1235_v56  ;;  %5036 = vst [vmem:[#allocation30_spill] sm:$0xff] %v4596_v35 }
 0x110   : > { %v2141_v37 = vadd.f32 %v2140_v17, %v2052_v18  ;;  %v2229_v30 = vpop.f32.mrf.mxu3  ;;  %v854_v18 = vshll.u32 %v4551_v57, 16  ;;  %5034 = vst [vmem:[#allocation28_spill] sm:$0xff] %v4581_v52  ;;  %v851_v54 = vor.u32 %v850_v10, %v847_v34 }
 0x111   : > { %v2053_v14 = vpop.f32.mrf.mxu1 }
 0x112   : > { %v2230_v43 = vadd.f32 %v2229_v30, %v2141_v37  ;;  %v2054_v11 = vadd.f32 %v2053_v14, %v1965_v3  ;;  %v856_v17 = vrot.slane %v854_v18, 5  ;;  %v860_v3 = vrot.slane %v858_v62, 4  ;;  %v4577_v14 = vld [vmem:[%s3828_s27 + $0x98] sm:$0x1] }
 0x113   : > { %v2320_v1 = vpop.f32.mrf.mxu0  ;;  %v1053_v30 = vrot.slane %v4501_v13, 5  ;;  %v864_v18 = vshll.u32 %v4577_v14, 16  ;;  %v3080_v62 = vrot.slane %v4498_v20, 9  ;;  %v852_v20 = vrot.slane %v851_v54, 4 }
 0x114   : > { %v4573_v55 = vadd.f32 %v2318_v21, %v2230_v43  ;;  %v861_v13 = vor.u32 %v860_v3, %v856_v17  ;;  %v869_v3 = vshrl.u32 %v4591_v42, 16 }
 0x115   : > { %v1055_v8 = vrot.slane %v1053_v30, 4  ;;  %v866_v22 = vrot.slane %v864_v18, 5  ;;  %v1054_v10 = vsel %vm4004_vm5, %v3080_v62, %v1053_v30  ;;  %v857_v30 = vsel %vm3998_vm4, %v852_v20, %v856_v17 }
 0x116   : > { %5033 = vst [vmem:[#allocation27_spill] sm:$0xff] %v4573_v55  ;;  %v862_v56 = vrot.slane %v861_v13, 4  ;;  %v1299_v62 = vunpack.c.l.b16 %v1054_v10  ;;  %v1060_v17 = vrot.slane %v4551_v57, 5  ;;  %v1063_v57 = vrot.slane %v4577_v14, 5  ;;  %v4647_v14 = vld [vmem:[%s3828_s27 + $0xa8] sm:$0xf] }
 0x117   : > { %v2142_v37 = vpop.f32.mrf.mxu2 }
 0x118   : > { %v2143_v33 = vadd.f32 %v2142_v37, %v2054_v11  ;;  %v2231_v63 = vpop.f32.mrf.mxu3  ;;  %v1056_v11 = vrot.slane %v4520_v24, 5  ;;  %v1970_v24 = vadd.f32 %v4178_v48, %v4413_v44  ;;  %v867_v18 = vsel %vm3998_vm4, %v862_v56, %v866_v22 }
 0x119   : > { %v2056_v21 = vpop.f32.mrf.mxu1  ;;  %v1238_v2 = vunpack.c.l.b16 %v867_v18 }
 0x11a   : > { %v2232_v26 = vadd.f32 %v2231_v63, %v2143_v33  ;;  %v2057_v38 = vadd.f32 %v2056_v21, %v1968_v29  ;;  %v4601_v29 = vld [vmem:[%s3828_s27 + $0xa0] sm:$0xf]  ;;  %v872_v63 = vshll.u32 %v4591_v42, 16 }
 0x11b   : > { %v2323_v43 = vpop.f32.mrf.mxu0  ;;  %v878_v21 = vshll.u32 %v4601_v29, 16  ;;  %v882_v54 = vshrl.u32 %v4601_v29, 16 }
 0x11c   : > { %2095 = vmatmul.bf16.gmra.mxu1 %v4527_v28  ;;  %2184 = vmatmul.bf16.gmra.mxu2 %v4581_v52  ;;  %v4593_v15 = vadd.f32 %v2320_v1, %v2232_v26  ;;  %v1057_v1 = vsel %vm4004_vm5, %v1055_v8, %v1056_v11  ;;  %v871_v8 = vrot.slane %v869_v3, 4  ;;  %v874_v11 = vrot.slane %v872_v63, 5  ;;  %v4620_v52 = vld [vmem:[%s3828_s27 + $0xa4] sm:$0x1] }
 0x11d   : > { %2273 = vmatmul.bf16.gmra.mxu3 %v4596_v35  ;;  %v1237_v35 = vunpack.c.l.b16 %v857_v30  ;;  %v888_v10 = vshll.u32 %v4620_v52, 16  ;;  %v4650_v30 = vld [vmem:[%s3828_s27 + $0xac] sm:$0xf] }
 0x11e   : > { %5035 = vst [vmem:[#allocation29_spill] sm:$0xff] %v4593_v15  ;;  %2362 = vmatmul.bf16.gmra.mxu0 %v4583_v59  ;;  %v884_v15 = vrot.slane %v882_v54, 4  ;;  %v875_v56 = vor.u32 %v874_v11, %v871_v8  ;;  %v3081_v54 = vrot.slane %v4548_v7, 9  ;;  %v3515_v7 = vld [vmem:[%s4977_s3 + $0x1c0] sm:$0xff] }
 0x11f   : > { %v2145_v34 = vpop.f32.mrf.mxu2  ;;  %v4626_v3 = vpack.c.b16 %v1238_v2, %v1237_v35  ;;  %v4636_v35 = vld [vmem:[%s3828_s27 + $0x90] sm:$0xff]  ;;  %2573 = vmatpush.bf16.msra.mxu3 %v3515_v7 }
 0x120   : > { %v2146_v37 = vadd.f32 %v2145_v34, %v2057_v38  ;;  %v2234_v33 = vpop.f32.mrf.mxu3  ;;  %v1300_v38 = vunpack.c.l.b16 %v1057_v1  ;;  %v880_v34 = vrot.slane %v878_v21, 5  ;;  %v1061_v18 = vsel %vm4004_vm5, %v3081_v54, %v1060_v17 }
 0x121   : > { %v2058_v26 = vpop.f32.mrf.mxu1  ;;  %v1301_v54 = vunpack.c.l.b16 %v1061_v18  ;;  %v1067_v18 = vrot.slane %v4601_v29, 5 }
 0x122   : > { %v2235_v48 = vadd.f32 %v2234_v33, %v2146_v37  ;;  %v2059_v44 = vadd.f32 %v2058_v26, %v1970_v24  ;;  %v4622_v37 = vpack.c.b16 %v1300_v38, %v1299_v62  ;;  %v885_v22 = vor.u32 %v884_v15, %v880_v34 }
 0x123   : > { %v2325_v13 = vpop.f32.mrf.mxu0  ;;  %v1062_v26 = vrot.slane %v1060_v17, 4  ;;  %v876_v15 = vrot.slane %v875_v56, 4  ;;  %v896_v56 = vshll.u32 %v4647_v14, 16  ;;  %v902_v17 = vshll.u32 %v4650_v30, 16 }
 0x124   : > { %v4617_v55 = vadd.f32 %v2323_v43, %v2235_v48  ;;  %v886_v48 = vrot.slane %v885_v22, 4  ;;  %v906_v22 = vshrl.u32 %v4650_v30, 16  ;;  %v1069_v29 = vrot.slane %v1067_v18, 4 }
 0x125   : > { %v1064_v8 = vsel %vm4004_vm5, %v1062_v26, %v1063_v57  ;;  %v881_v11 = vsel %vm3998_vm4, %v876_v15, %v880_v34  ;;  %v3499_v34 = vld [vmem:[%s4977_s3 + $0x140] sm:$0xff] }
 0x126   : > { %v1302_v26 = vunpack.c.l.b16 %v1064_v8  ;;  %v1239_v57 = vunpack.c.l.b16 %v881_v11  ;;  %2395 = vmatpush.bf16.msra.mxu1 %v3499_v34  ;;  %v908_v7 = vrot.slane %v906_v22, 4 }
 0x127   : > { %v2147_v24 = vpop.f32.mrf.mxu2 }
 0x128   : > { %v2148_v20 = vadd.f32 %v2147_v24, %v2059_v44  ;;  %v2236_v33 = vpop.f32.mrf.mxu3  ;;  %v890_v44 = vrot.slane %v888_v10, 5 }
 0x129   : > { %v2061_v1 = vpop.f32.mrf.mxu1 }
 0x12a   : > { %v2237_v43 = vadd.f32 %v2236_v33, %v2148_v20  ;;  %v2062_v63 = vadd.f32 %v2061_v1, %v4190_v58  ;;  %v3507_v58 = vld [vmem:[%s4977_s3 + $0x180] sm:$0xff]  ;;  %v891_v24 = vsel %vm3998_vm4, %v886_v48, %v890_v44  ;;  %v893_v33 = vshrl.u32 %v4647_v14, 16 }
 0x12b   : > { %v2328_v21 = vpop.f32.mrf.mxu0  ;;  %2484 = vmatpush.bf16.msra.mxu2 %v3507_v58  ;;  %v1240_v15 = vunpack.c.l.b16 %v891_v24  ;;  %v898_v58 = vrot.slane %v896_v56, 5 }
 0x12c   : > { %2100 = vmatmul.bf16.gmra.mxu1 %v4583_v59  ;;  %2189 = vmatmul.bf16.gmra.mxu2 %v4622_v37  ;;  %v4633_v2 = vadd.f32 %v2325_v13, %v2237_v43  ;;  %v895_v44 = vrot.slane %v893_v33, 4 }
 0x12d   : > { %2278 = vmatmul.bf16.gmra.mxu3 %v4636_v35  ;;  %v4679_v11 = vpack.c.b16 %v1240_v15, %v1239_v57  ;;  %v4695_v57 = vld [vmem:[%s3828_s27 + $0xb4] sm:$0xf] }
 0x12e   : > { %5037 = vst [vmem:[#allocation31_spill] sm:$0xff] %v4633_v2  ;;  %2367 = vmatmul.bf16.gmra.mxu0 %v4626_v3  ;;  %v4676_v2 = vpack.c.b16 %v1302_v26, %v1301_v54  ;;  %v899_v24 = vor.u32 %v898_v58, %v895_v44  ;;  %v4698_v44 = vld [vmem:[%s3828_s27 + $0xb8] sm:$0xf] }
 0x12f   : > { %v2150_v13 = vpop.f32.mrf.mxu2  ;;  %5039 = vst [vmem:[#allocation33_spill] sm:$0xff] %v4695_v57 }
 0x130   : > { %v2151_v62 = vadd.f32 %v2150_v13, %v2062_v63  ;;  %v2239_v38 = vpop.f32.mrf.mxu3  ;;  %v3523_v63 = vld [vmem:[%s4977_s3 + $0x200] sm:$0xff]  ;;  %v4674_v13 = vld [vmem:[%s3828_s27 + $0xb0] sm:$0x1]  ;;  %5040 = vst [vmem:[#allocation34_spill] sm:$0xff] %v4698_v44 }
 0x131   : > { %v2063_v20 = vpop.f32.mrf.mxu1  ;;  %2662 = vmatpush.bf16.msra.mxu0 %v3523_v63  ;;  %v912_v33 = vshll.u32 %v4674_v13, 16  ;;  %v4690_v63 = vld [vmem:[%s3828_s27 + $0x9c] sm:$0xff] }
 0x132   : > { %v2240_v10 = vadd.f32 %v2239_v38, %v2151_v62  ;;  %v2064_v1 = vadd.f32 %v2063_v20, %v4231_v25  ;;  %v904_v25 = vrot.slane %v902_v17, 5 }
 0x133   : > { %v2330_v43 = vpop.f32.mrf.mxu0  ;;  %v914_v26 = vrot.slane %v912_v33, 5 }
 0x134   : > { %v4671_v48 = vadd.f32 %v2328_v21, %v2240_v10  ;;  %v909_v21 = vor.u32 %v908_v7, %v904_v25  ;;  %v3082_v10 = vrot.slane %v4591_v42, 9 }
 0x136   : > { %v910_v54 = vrot.slane %v909_v21, 4 }
 0x137   : > { %v2152_v62 = vpop.f32.mrf.mxu2 }
 0x138   : > { %v2153_v38 = vadd.f32 %v2152_v62, %v2064_v1  ;;  %v2241_v20 = vpop.f32.mrf.mxu3  ;;  %v1070_v1 = vrot.slane %v4620_v52, 5  ;;  %v1068_v52 = vsel %vm4004_vm5, %v3082_v10, %v1067_v18  ;;  %v1089_v18 = vshll.u32 %v4698_v44, 16 }
 0x139   : > { %v2066_v8 = vpop.f32.mrf.mxu1 }
 0x13a   : > { %v2242_v56 = vadd.f32 %v2241_v20, %v2153_v38  ;;  %v2067_v17 = vadd.f32 %v2066_v8, %v4256_v46  ;;  %v900_v46 = vrot.slane %v899_v24, 4  ;;  %v915_v38 = vsel %vm3998_vm4, %v910_v54, %v914_v26 }
 0x13b   : > { %v2333_v22 = vpop.f32.mrf.mxu0  ;;  %v1080_v20 = vshrl.u32 %v4695_v57, 16  ;;  %v1083_v8 = vshll.u32 %v4695_v57, 16  ;;  %v1091_v26 = vrot.slane %v1089_v18, 5 }
 0x13c   : > { %2105 = vmatmul.bf16.gmra.mxu1 %v4626_v3  ;;  %2194 = vmatmul.bf16.gmra.mxu2 %v4676_v2  ;;  %v4687_v34 = vadd.f32 %v2330_v43, %v2242_v56  ;;  %v1071_v43 = vsel %vm4004_vm5, %v1069_v29, %v1070_v1  ;;  %v905_v62 = vsel %vm3998_vm4, %v900_v46, %v904_v25  ;;  %v1093_v56 = vshrl.u32 %v4698_v44, 16 }
 0x13d   : > { %2283 = vmatmul.bf16.gmra.mxu3 %v4690_v63  ;;  %v1304_v10 = vunpack.c.l.b16 %v1071_v43  ;;  %v1241_v25 = vunpack.c.l.b16 %v905_v62  ;;  %v1242_v1 = vunpack.c.l.b16 %v915_v38  ;;  %v1082_v46 = vrot.slane %v1080_v20, 4 }
 0x13e   : > { %5038 = vst [vmem:[#allocation32_spill] sm:$0xff] %v4687_v34  ;;  %2372 = vmatmul.bf16.gmra.mxu0 %v4679_v11  ;;  %v1085_v54 = vrot.slane %v1083_v8, 5  ;;  %v4716_v34 = vld [vmem:[%s3828_s27 + $0xbc] sm:$0x1] }
 0x13f   : > { %v2155_v15 = vpop.f32.mrf.mxu2  ;;  %v4720_v44 = vpack.c.b16 %v1242_v1, %v1241_v25  ;;  %v1099_v8 = vshll.u32 %v4716_v34, 16 }
 0x140   : > { %v2156_v42 = vadd.f32 %v2155_v15, %v2067_v17  ;;  %v2244_v58 = vpop.f32.mrf.mxu3  ;;  %v1303_v17 = vunpack.c.l.b16 %v1068_v52  ;;  %v1095_v15 = vrot.slane %v1093_v56, 4  ;;  %v1086_v52 = vor.u32 %v1085_v54, %v1082_v46 }
 0x141   : > { %v2068_v7 = vpop.f32.mrf.mxu1 }
 0x142   : > { %v2245_v24 = vadd.f32 %v2244_v58, %v2156_v42  ;;  %v2069_v21 = vadd.f32 %v2068_v7, %v4288_v31  ;;  %v4718_v58 = vpack.c.b16 %v1304_v10, %v1303_v17  ;;  %v1096_v20 = vor.u32 %v1095_v15, %v1091_v26 }
 0x143   : > { %v2335_v33 = vpop.f32.mrf.mxu0  ;;  %v1087_v18 = vrot.slane %v1086_v52, 4  ;;  %v1101_v17 = vrot.slane %v1099_v8, 5 }
 0x144   : > { %v4713_v29 = vadd.f32 %v2333_v22, %v2245_v24  ;;  %v1074_v22 = vrot.slane %v4650_v30, 5  ;;  %v4730_v24 = vld [vmem:[%s3828_s27 + $0xa8] sm:$0xff]  ;;  %v3083_v30 = vrot.slane %v4647_v14, 9  ;;  %v1097_v56 = vrot.slane %v1096_v20, 4 }
 0x147   : > { %v2157_v57 = vpop.f32.mrf.mxu2 }
 0x148   : > { %v2158_v31 = vadd.f32 %v2157_v57, %v2069_v21  ;;  %v2246_v42 = vpop.f32.mrf.mxu3  ;;  %v1076_v21 = vrot.slane %v1074_v22, 4 }
 0x149   : > { %v2071_v7 = vpop.f32.mrf.mxu1 }
 0x14a   : > { %v2247_v43 = vadd.f32 %v2246_v42, %v2158_v31  ;;  %v2072_v62 = vadd.f32 %v2071_v7, %v4312_v49  ;;  %v1077_v49 = vrot.slane %v4674_v13, 5  ;;  %v1092_v13 = vsel %vm3998_vm4, %v1087_v18, %v1091_v26 }
 0x14b   : > { %v2338_v38 = vpop.f32.mrf.mxu0  ;;  %v1102_v42 = vsel %vm3998_vm4, %v1097_v56, %v1101_v17 }
 0x14c   : > { %2110 = vmatmul.bf16.gmra.mxu1 %v4679_v11  ;;  %2199 = vmatmul.bf16.gmra.mxu2 %v4718_v58  ;;  %v4727_v57 = vadd.f32 %v2335_v33, %v2247_v43  ;;  %v1075_v33 = vsel %vm4004_vm5, %v3083_v30, %v1074_v22  ;;  %v1078_v54 = vsel %vm4004_vm5, %v1076_v21, %v1077_v49  ;;  %v1344_v22 = vunpack.c.l.b16 %v1102_v42 }
 0x14d   : > { %2288 = vmatmul.bf16.gmra.mxu3 %v4730_v24  ;;  %v1305_v7 = vunpack.c.l.b16 %v1075_v33  ;;  %v1306_v52 = vunpack.c.l.b16 %v1078_v54 }
 0x14e   : > { %2377 = vmatmul.bf16.gmra.mxu0 %v4720_v44 }
 0x14f   : > { %v2160_v10 = vpop.f32.mrf.mxu2  ;;  %v4747_v21 = vpack.c.b16 %v1306_v52, %v1305_v7 }
 0x150   : > { %v2161_v25 = vadd.f32 %v2160_v10, %v2072_v62  ;;  %v2249_v1 = vpop.f32.mrf.mxu3  ;;  %v1343_v62 = vunpack.c.l.b16 %v1092_v13 }
 0x151   : > { %v2073_v46 = vpop.f32.mrf.mxu1 }
 0x152   : > { %v2250_v15 = vadd.f32 %v2249_v1, %v2161_v25  ;;  %v2074_v14 = vadd.f32 %v2073_v46, %v4353_v16  ;;  %v4750_v16 = vld [vmem:[%s3828_s27 + $0xb4] sm:$0xff]  ;;  %v4752_v10 = vpack.c.b16 %v1344_v22, %v1343_v62  ;;  %v3694_v22 = vld [vmem:[%s3828_s27 + $0xc] sm:$0xff] }
 0x153   : > { %v2340_v31 = vpop.f32.mrf.mxu0 }
 0x154   : > { %v4745_v43 = vadd.f32 %v2338_v38, %v2250_v15 }
 0x157   : > { %v2162_v20 = vpop.f32.mrf.mxu2 }
 0x158   : > { %v2163_v8 = vadd.f32 %v2162_v20, %v2074_v14  ;;  %v2251_v30 = vpop.f32.mrf.mxu3 }
 0x159   : > { %v2076_v49 = vpop.f32.mrf.mxu1 }
 0x15a   : > { %v2252_v26 = vadd.f32 %v2251_v30, %v2163_v8  ;;  %v2077_v18 = vadd.f32 %v2076_v49, %v4379_v5 }
 0x15b   : > { %v2343_v56 = vpop.f32.mrf.mxu0 }
 0x15c   : > { %2115 = vmatmul.bf16.gmra.mxu1 %v4720_v44  ;;  %2204 = vmatmul.bf16.gmra.mxu2 %v4747_v21  ;;  %v4757_v38 = vadd.f32 %v2340_v31, %v2252_v26 }
 0x15d   : > { %2293 = vmatmul.bf16.gmra.mxu3 %v4750_v16 }
 0x15e   : > { %2382 = vmatmul.bf16.gmra.mxu0 %v4752_v10 }
 0x15f   : > { %v2165_v17 = vpop.f32.mrf.mxu2 }
 0x160   : > { %v2166_v25 = vadd.f32 %v2165_v17, %v2077_v18  ;;  %v2254_v1 = vpop.f32.mrf.mxu3 }
 0x161   : > { %v2078_v46 = vpop.f32.mrf.mxu1 }
 0x162   : > { %v2255_v33 = vadd.f32 %v2254_v1, %v2166_v25  ;;  %v2079_v54 = vadd.f32 %v2078_v46, %v4411_v4 }
 0x163   : > { %v2345_v5 = vpop.f32.mrf.mxu0 }
 0x164   : > { %v4762_v15 = vadd.f32 %v2343_v56, %v2255_v33 }
 0x167   : > { %v2167_v14 = vpop.f32.mrf.mxu2 }
 0x168   : > { %v2168_v13 = vadd.f32 %v2167_v14, %v2079_v54  ;;  %v2256_v42 = vpop.f32.mrf.mxu3  ;;  %v3695_v54 = vld [vmem:[%s3828_s27 + $0x18] sm:$0xff] }
 0x169   : > { %v2081_v31 = vpop.f32.mrf.mxu1 }
 0x16a   : > { %v2257_v7 = vadd.f32 %v2256_v42, %v2168_v13  ;;  %v2082_v52 = vadd.f32 %v2081_v31, %v4213_v41 }
 0x16b   : > { %v2348_v62 = vpop.f32.mrf.mxu0 }
 0x16c   : > { %2396 = vmatmul.bf16.vlgmr.msra.gmra.mxu1 %v4070_v61  ;;  %2485 = vmatmul.bf16.vlgmr.msra.gmra.mxu2 %v3694_v22  ;;  %v4767_v20 = vadd.f32 %v2345_v5, %v2257_v7 }
 0x16d   : > { %2574 = vmatmul.bf16.vlgmr.msra.gmra.mxu3 %v4073_v0 }
 0x16e   : > { %2663 = vmatmul.bf16.vlgmr.msra.gmra.mxu0 %v4102_v12 }
 0x16f   : > { %v2170_v4 = vpop.f32.mrf.mxu2 }
 0x170   : > { %v2171_v8 = vadd.f32 %v2170_v4, %v2082_v52  ;;  %v2259_v30 = vpop.f32.mrf.mxu3 }
 0x171   : > { %v2083_v49 = vpop.f32.mrf.mxu1 }
 0x172   : > { %v2260_v26 = vadd.f32 %v2259_v30, %v2171_v8  ;;  %v2084_v18 = vadd.f32 %v2083_v49, %v4246_v47  ;;  %v3696_v49 = vld [vmem:[%s3828_s27 + $0x24] sm:$0xff] }
 0x173   : > { %v2350_v41 = vpop.f32.mrf.mxu0 }
 0x174   : > { %v4772_v56 = vadd.f32 %v2348_v62, %v2260_v26 }
 0x177   : > { %v2172_v61 = vpop.f32.mrf.mxu2 }
 0x178   : > { %v2173_v17 = vadd.f32 %v2172_v61, %v2084_v18  ;;  %v2261_v25 = vpop.f32.mrf.mxu3 }
 0x179   : > { %v2086_v1 = vpop.f32.mrf.mxu1 }
 0x17a   : > { %v2262_v46 = vadd.f32 %v2261_v25, %v2173_v17  ;;  %v2087_v0 = vadd.f32 %v2086_v1, %v4279_v23 }
 0x17b   : > { %v2353_v33 = vpop.f32.mrf.mxu0 }
 0x17c   : > { %2401 = vmatmul.bf16.gmra.mxu1 %v4102_v12  ;;  %2490 = vmatmul.bf16.gmra.mxu2 %v3695_v54  ;;  %v4777_v5 = vadd.f32 %v2350_v41, %v2262_v46 }
 0x17d   : > { %2579 = vmatmul.bf16.gmra.mxu3 %v4104_v36 }
 0x17e   : > { %2668 = vmatmul.bf16.gmra.mxu0 %v4146_v51 }
 0x17f   : > { %v2175_v47 = vpop.f32.mrf.mxu2 }
 0x180   : > { %v2176_v14 = vadd.f32 %v2175_v47, %v2087_v0  ;;  %v2264_v13 = vpop.f32.mrf.mxu3 }
 0x181   : > { %v2088_v42 = vpop.f32.mrf.mxu1 }
 0x182   : > { %v2265_v31 = vadd.f32 %v2264_v13, %v2176_v14  ;;  %v2089_v7 = vadd.f32 %v2088_v42, %v4303_v40  ;;  %v3697_v14 = vld [vmem:[%s3828_s27 + $0x30] sm:$0xff]  ;;  %v5041_v42 = vld [vmem:[#allocation3_spill] sm:$0xff] }
 0x183   : > { %v2355_v23 = vpop.f32.mrf.mxu0 }
 0x184   : > { %v4782_v52 = vadd.f32 %v2353_v33, %v2265_v31 }
 0x187   : > { %v2177_v12 = vpop.f32.mrf.mxu2 }
 0x188   : > { %v2178_v62 = vadd.f32 %v2177_v12, %v2089_v7  ;;  %v2266_v22 = vpop.f32.mrf.mxu3 }
 0x189   : > { %v2091_v4 = vpop.f32.mrf.mxu1 }
 0x18a   : > { %v2267_v8 = vadd.f32 %v2266_v22, %v2178_v62  ;;  %v2092_v36 = vadd.f32 %v2091_v4, %v4339_v39  ;;  %v5043_v22 = vld [vmem:[#allocation17_spill] sm:$0xff] }
 0x18b   : > { %v2358_v30 = vpop.f32.mrf.mxu0 }
 0x18c   : > { %2406 = vmatmul.bf16.gmra.mxu1 %v4146_v51  ;;  %2495 = vmatmul.bf16.gmra.mxu2 %v3696_v49  ;;  %v4787_v26 = vadd.f32 %v2355_v23, %v2267_v8 }
 0x18d   : > { %2584 = vmatmul.bf16.gmra.mxu3 %v4149_v19 }
 0x18e   : > { %2673 = vmatmul.bf16.gmra.mxu0 %v4183_v53 }
 0x18f   : > { %v2180_v40 = vpop.f32.mrf.mxu2 }
 0x190   : > { %v2181_v18 = vadd.f32 %v2180_v40, %v2092_v36  ;;  %v2269_v41 = vpop.f32.mrf.mxu3 }
 0x191   : > { %v2093_v61 = vpop.f32.mrf.mxu1 }
 0x192   : > { %v2270_v17 = vadd.f32 %v2269_v41, %v2181_v18  ;;  %v2094_v25 = vadd.f32 %v2093_v61, %v4367_v9  ;;  %v5042_v9 = vld [vmem:[#allocation5_spill] sm:$0xff]  ;;  %v5044_v18 = vld [vmem:[#allocation4_spill] sm:$0xff] }
 0x193   : > { %v2360_v39 = vpop.f32.mrf.mxu0 }
 0x194   : > { %v4792_v1 = vadd.f32 %v2358_v30, %v2270_v17  ;;  %v3698_v17 = vld [vmem:[%s3828_s27 + $0x3c] sm:$0xff] }
 0x197   : > { %v2182_v51 = vpop.f32.mrf.mxu2 }
 0x198   : > { %v2183_v46 = vadd.f32 %v2182_v51, %v2094_v25  ;;  %v2271_v0 = vpop.f32.mrf.mxu3  ;;  %v5046_v51 = vld [vmem:[#allocation9_spill] sm:$0xff] }
 0x199   : > { %v2096_v33 = vpop.f32.mrf.mxu1 }
 0x19a   : > { %v2272_v54 = vadd.f32 %v2271_v0, %v2183_v46  ;;  %v2097_v19 = vadd.f32 %v2096_v33, %v4396_v32 }
 0x19b   : > { %v2363_v47 = vpop.f32.mrf.mxu0 }
 0x19c   : > { %2411 = vmatmul.bf16.gmra.mxu1 %v4183_v53  ;;  %2500 = vmatmul.bf16.gmra.mxu2 %v3697_v14  ;;  %v4797_v13 = vadd.f32 %v2360_v39, %v2272_v54  ;;  %v5045_v39 = vld [vmem:[#allocation7_spill] sm:$0xff] }
 0x19d   : > { %2589 = vmatmul.bf16.gmra.mxu3 %v5041_v42 }
 0x19e   : > { %2678 = vmatmul.bf16.gmra.mxu0 %v5042_v9 }
 0x19f   : > { %v2185_v31 = vpop.f32.mrf.mxu2 }
 0x1a0   : > { %v2186_v7 = vadd.f32 %v2185_v31, %v2097_v19  ;;  %v2274_v23 = vpop.f32.mrf.mxu3 }
 0x1a1   : > { %v2098_v12 = vpop.f32.mrf.mxu1 }
 0x1a2   : > { %v2275_v62 = vadd.f32 %v2274_v23, %v2186_v7  ;;  %v2099_v4 = vadd.f32 %v2098_v12, %v5043_v22  ;;  %v5048_v22 = vld [vmem:[#allocation8_spill] sm:$0xff] }
 0x1a3   : > { %v2365_v32 = vpop.f32.mrf.mxu0 }
 0x1a4   : > { %v4802_v8 = vadd.f32 %v2363_v47, %v2275_v62  ;;  %v5047_v47 = vld [vmem:[#allocation6_spill] sm:$0xff] }
 0x1a7   : > { %v2187_v53 = vpop.f32.mrf.mxu2 }
 0x1a8   : > { %v2188_v36 = vadd.f32 %v2187_v53, %v2099_v4  ;;  %v2276_v30 = vpop.f32.mrf.mxu3  ;;  %v3699_v53 = vld [vmem:[%s3828_s27 + $0x48] sm:$0xff] }
 0x1a9   : > { %v2101_v49 = vpop.f32.mrf.mxu1 }
 0x1aa   : > { %v2277_v40 = vadd.f32 %v2276_v30, %v2188_v36  ;;  %v2102_v41 = vadd.f32 %v2101_v49, %v5044_v18  ;;  %v5049_v30 = vld [vmem:[#allocation11_spill] sm:$0xff]  ;;  %v5050_v49 = vld [vmem:[#allocation13_spill] sm:$0xff] }
 0x1ab   : > { %v2368_v61 = vpop.f32.mrf.mxu0 }
 0x1ac   : > { %2416 = vmatmul.bf16.gmra.mxu1 %v5042_v9  ;;  %2505 = vmatmul.bf16.gmra.mxu2 %v3698_v17  ;;  %v4807_v25 = vadd.f32 %v2365_v32, %v2277_v40 }
 0x1ad   : > { %2594 = vmatmul.bf16.gmra.mxu3 %v5045_v39  ;;  %v5051_v39 = vld [vmem:[#allocation10_spill] sm:$0xff] }
 0x1ae   : > { %2683 = vmatmul.bf16.gmra.mxu0 %v5046_v51 }
 0x1af   : > { %v2190_v46 = vpop.f32.mrf.mxu2 }
 0x1b0   : > { %v2191_v0 = vadd.f32 %v2190_v46, %v2102_v41  ;;  %v2279_v33 = vpop.f32.mrf.mxu3 }
 0x1b1   : > { %v2103_v54 = vpop.f32.mrf.mxu1 }
 0x1b2   : > { %v2280_v19 = vadd.f32 %v2279_v33, %v2191_v0  ;;  %v2104_v14 = vadd.f32 %v2103_v54, %v5047_v47 }
 0x1b3   : > { %v2370_v42 = vpop.f32.mrf.mxu0 }
 0x1b4   : > { %v4812_v31 = vadd.f32 %v2368_v61, %v2280_v19 }
 0x1b7   : > { %v2192_v9 = vpop.f32.mrf.mxu2 }
 0x1b8   : > { %v2193_v7 = vadd.f32 %v2192_v9, %v2104_v14  ;;  %v2281_v23 = vpop.f32.mrf.mxu3 }
 0x1b9   : > { %v2106_v12 = vpop.f32.mrf.mxu1 }
 0x1ba   : > { %v2282_v62 = vadd.f32 %v2281_v23, %v2193_v7  ;;  %v2107_v4 = vadd.f32 %v2106_v12, %v5048_v22  ;;  %v3700_v23 = vld [vmem:[%s3828_s27 + $0x54] sm:$0xff]  ;;  %v5054_v22 = vld [vmem:[#allocation18_spill] sm:$0xff] }
 0x1bb   : > { %v2373_v32 = vpop.f32.mrf.mxu0 }
 0x1bc   : > { %2421 = vmatmul.bf16.gmra.mxu1 %v5046_v51  ;;  %2510 = vmatmul.bf16.gmra.mxu2 %v3699_v53  ;;  %v4817_v36 = vadd.f32 %v2370_v42, %v2282_v62  ;;  %v5052_v42 = vld [vmem:[#allocation12_spill] sm:$0xff]  ;;  %v5053_v62 = vld [vmem:[#allocation14_spill] sm:$0xff] }
 0x1bd   : > { %2599 = vmatmul.bf16.gmra.mxu3 %v5049_v30 }
 0x1be   : > { %2688 = vmatmul.bf16.gmra.mxu0 %v5050_v49 }
 0x1bf   : > { %v2195_v40 = vpop.f32.mrf.mxu2 }
 0x1c0   : > { %v2196_v18 = vadd.f32 %v2195_v40, %v2107_v4  ;;  %v2284_v41 = vpop.f32.mrf.mxu3 }
 0x1c1   : > { %v2108_v61 = vpop.f32.mrf.mxu1 }
 0x1c2   : > { %v2285_v17 = vadd.f32 %v2284_v41, %v2196_v18  ;;  %v2109_v46 = vadd.f32 %v2108_v61, %v5051_v39  ;;  %v5055_v18 = vld [vmem:[#allocation15_spill] sm:$0xff] }
 0x1c3   : > { %v2375_v0 = vpop.f32.mrf.mxu0 }
 0x1c4   : > { %v4822_v33 = vadd.f32 %v2373_v32, %v2285_v17 }
 0x1c7   : > { %v2197_v51 = vpop.f32.mrf.mxu2 }
 0x1c8   : > { %v2198_v54 = vadd.f32 %v2197_v51, %v2109_v46  ;;  %v2286_v19 = vpop.f32.mrf.mxu3 }
 0x1c9   : > { %v2111_v47 = vpop.f32.mrf.mxu1 }
 0x1ca   : > { %v2287_v14 = vadd.f32 %v2286_v19, %v2198_v54  ;;  %v2112_v9 = vadd.f32 %v2111_v47, %v5052_v42  ;;  %v5056_v54 = vld [vmem:[#allocation16_spill] sm:$0xff] }
 0x1cb   : > { %v2378_v7 = vpop.f32.mrf.mxu0 }
 0x1cc   : > { %2426 = vmatmul.bf16.gmra.mxu1 %v5050_v49  ;;  %2515 = vmatmul.bf16.gmra.mxu2 %v3700_v23  ;;  %v4827_v12 = vadd.f32 %v2375_v0, %v2287_v14  ;;  %v3701_v14 = vld [vmem:[%s3828_s27 + $0x60] sm:$0xff]  ;;  %s3442_s27 = sshll.u32 %s5081_s21, 7 }
 0x1cd   : > { %2604 = vmatmul.bf16.gmra.mxu3 %v5053_v62  ;;  %v5058_v23 = vld [vmem:[#allocation22_spill] sm:$0xff]  ;;  %s4861_s15 = scalar_lea.vmem %s4979_s5, %s3442_s27 }
 0x1ce   : > { %2693 = vmatmul.bf16.gmra.mxu0 %v5054_v22 }
 0x1cf   : > { %v2200_v4 = vpop.f32.mrf.mxu2 }
 0x1d0   : > { %v2201_v32 = vadd.f32 %v2200_v4, %v2112_v9  ;;  %v2289_v53 = vpop.f32.mrf.mxu3  ;;  %v5057_v9 = vld [vmem:[#allocation20_spill] sm:$0xff] }
 0x1d1   : > { %v2113_v30 = vpop.f32.mrf.mxu1 }
 0x1d2   : > { %v2290_v40 = vadd.f32 %v2289_v53, %v2201_v32  ;;  %v2114_v41 = vadd.f32 %v2113_v30, %v5055_v18  ;;  %v5059_v30 = vld [vmem:[#allocation19_spill] sm:$0xff] }
 0x1d3   : > { %v2380_v61 = vpop.f32.mrf.mxu0 }
 0x1d4   : > { %v4832_v17 = vadd.f32 %v2378_v7, %v2290_v40 }
 0x1d7   : > { %v2202_v49 = vpop.f32.mrf.mxu2 }
 0x1d8   : > { %v2203_v39 = vadd.f32 %v2202_v49, %v2114_v41  ;;  %v2291_v46 = vpop.f32.mrf.mxu3 }
 0x1d9   : > { %v2116_v0 = vpop.f32.mrf.mxu1 }
 0x1da   : > { %v2292_v51 = vadd.f32 %v2291_v46, %v2203_v39  ;;  %v2117_v19 = vadd.f32 %v2116_v0, %v5056_v54 }
 0x1db   : > { %v2383_v47 = vpop.f32.mrf.mxu0 }
 0x1dc   : > { %2431 = vmatmul.bf16.gmra.mxu1 %v5054_v22  ;;  %2520 = vmatmul.bf16.gmra.mxu2 %v3701_v14  ;;  %v4837_v42 = vadd.f32 %v2380_v61, %v2292_v51  ;;  %v5060_v51 = vld [vmem:[#allocation24_spill] sm:$0xff] }
 0x1dd   : > { %2609 = vmatmul.bf16.gmra.mxu3 %v5057_v9 }
 0x1de   : > { %2698 = vmatmul.bf16.gmra.mxu0 %v5058_v23 }
 0x1df   : > { %v2205_v7 = vpop.f32.mrf.mxu2 }
 0x1e0   : > { %v2206_v62 = vadd.f32 %v2205_v7, %v2117_v19  ;;  %v2294_v4 = vpop.f32.mrf.mxu3 }
 0x1e1   : > { %v2118_v32 = vpop.f32.mrf.mxu1 }
 0x1e2   : > { %v2295_v53 = vadd.f32 %v2294_v4, %v2206_v62  ;;  %v2119_v40 = vadd.f32 %v2118_v32, %v5059_v30 }
 0x1e3   : > { %v2385_v18 = vpop.f32.mrf.mxu0 }
 0x1e4   : > { %v4842_v41 = vadd.f32 %v2383_v47, %v2295_v53  ;;  %v5062_v47 = vld [vmem:[#allocation21_spill] sm:$0xff]  ;;  %v5063_v53 = vld [vmem:[#allocation23_spill] sm:$0xff] }
 0x1e7   : > { %v2207_v49 = vpop.f32.mrf.mxu2 }
 0x1e8   : > { %v2208_v22 = vadd.f32 %v2207_v49, %v2119_v40  ;;  %v2296_v39 = vpop.f32.mrf.mxu3 }
 0x1e9   : > { %v2397_v46 = vpop.f32.mrf.mxu1 }
 0x1ea   : > { %v2297_v61 = vadd.f32 %v2296_v39, %v2208_v22  ;;  %v2398_v14 = vadd.f32 %v2397_v46, %v5062_v47  ;;  %v5064_v46 = vld [vmem:[#allocation28_spill] sm:$0xff]  ;;  %v5065_v47 = vld [vmem:[#allocation25_spill] sm:$0xff] }
 0x1eb   : > { %v2664_v0 = vpop.f32.mrf.mxu0 }
 0x1ec   : > { %2436 = vmatmul.bf16.gmra.mxu1 %v5058_v23  ;;  %2525 = vmatmul.bf16.gmra.mxu2 %v5060_v51  ;;  %v4846_v54 = vadd.f32 %v2385_v18, %v2297_v61 }
 0x1ed   : > { %2614 = vmatmul.bf16.gmra.mxu3 %v4484_v60 }
 0x1ee   : > { %5061 = vst [vmem:[#allocation3_spill] sm:$0xff] %v4846_v54  ;;  %2703 = vmatmul.bf16.gmra.mxu0 %v4524_v27 }
 0x1ef   : > { %v2486_v19 = vpop.f32.mrf.mxu2 }
 0x1f0   : > { %v2575_v9 = vpop.f32.mrf.mxu3  ;;  %v2487_v62 = vadd.f32 %v2486_v19, %v2398_v14 }
 0x1f1   : > { %v2399_v7 = vpop.f32.mrf.mxu1 }
 0x1f2   : > { %v2576_v32 = vadd.f32 %v2575_v9, %v2487_v62  ;;  %v2400_v30 = vadd.f32 %v2399_v7, %v5063_v53 }
 0x1f3   : > { %v2666_v4 = vpop.f32.mrf.mxu0 }
 0x1f4   : > { %v2665_v22 = vadd.f32 %v2664_v0, %v2576_v32 }
 0x1f6   : > { %v2744_v51 = vmax.f32 %v2665_v22, 0.0 }
 0x1f7   : > { %v2488_v23 = vpop.f32.mrf.mxu2 }
 0x1f8   : > { %v2489_v40 = vadd.f32 %v2488_v23, %v2400_v30  ;;  %v2577_v49 = vpop.f32.mrf.mxu3  ;;  %v5066_v30 = vld [vmem:[#allocation26_spill] sm:$0xff] }
 0x1f9   : > { %v2402_v18 = vpop.f32.mrf.mxu1 }
 0x1fa   : > { %v2578_v39 = vadd.f32 %v2577_v49, %v2489_v40  ;;  %v2403_v14 = vadd.f32 %v2402_v18, %v5065_v47 }
 0x1fb   : > { %v2669_v60 = vpop.f32.mrf.mxu0 }
 0x1fc   : > { %v2667_v61 = vadd.f32 %v2666_v4, %v2578_v39  ;;  %2441 = vmatmul.bf16.gmra.mxu1 %v4524_v27  ;;  %2530 = vmatmul.bf16.gmra.mxu2 %v4537_v6 }
 0x1fd   : > { %2619 = vmatmul.bf16.gmra.mxu3 %v4527_v28 }
 0x1fe   : > { %2708 = vmatmul.bf16.gmra.mxu0 %v5064_v46  ;;  %v2745_v19 = vmax.f32 %v2667_v61, 0.0 }
 0x1ff   : > { %v2491_v0 = vpop.f32.mrf.mxu2 }
 0x200   : > { %v3542_v9 = vpack.c.bf16 %v2745_v19, %v2744_v51  ;;  %v2840_v7 = vadd.f32 %v2745_v19, %v2744_v51  ;;  %v2492_v27 = vadd.f32 %v2491_v0, %v2403_v14  ;;  %v2580_v62 = vpop.f32.mrf.mxu3  ;;  %v5067_v51 = vld [vmem:[#allocation30_spill] sm:$0xff]  ;;  %v5068_v19 = vld [vmem:[#allocation27_spill] sm:$0xff] }
 0x201   : > { %v2404_v6 = vpop.f32.mrf.mxu1 }
 0x202   : > { %3543 = vst [vmem:[%s4861_s15] sm:$0xff] %v3542_v9   ;;  %v2581_v28 = vadd.f32 %v2580_v62, %v2492_v27  ;;  %v2405_v23 = vadd.f32 %v2404_v6, %v5066_v30  ;;  %v5069_v30 = vld [vmem:[#allocation29_spill] sm:$0xff] }
 0x203   : > { %v2671_v4 = vpop.f32.mrf.mxu0 }
 0x204   : > { %v2670_v32 = vadd.f32 %v2669_v60, %v2581_v28 }
 0x206   : > { %v2746_v53 = vmax.f32 %v2670_v32, 0.0 }
 0x207   : > { %v2493_v40 = vpop.f32.mrf.mxu2 }
 0x208   : > { %v2841_v49 = vadd.f32 %v2840_v7, %v2746_v53  ;;  %v2494_v18 = vadd.f32 %v2493_v40, %v2405_v23  ;;  %v2582_v22 = vpop.f32.mrf.mxu3 }
 0x209   : > { %v2407_v39 = vpop.f32.mrf.mxu1 }
 0x20a   : > { %v2583_v61 = vadd.f32 %v2582_v22, %v2494_v18  ;;  %v2408_v14 = vadd.f32 %v2407_v39, %v5068_v19 }
 0x20b   : > { %v2674_v47 = vpop.f32.mrf.mxu0 }
 0x20c   : > { %v2672_v54 = vadd.f32 %v2671_v4, %v2583_v61  ;;  %2446 = vmatmul.bf16.gmra.mxu1 %v5064_v46  ;;  %2535 = vmatmul.bf16.gmra.mxu2 %v5067_v51 }
 0x20d   : > { %2624 = vmatmul.bf16.gmra.mxu3 %v4583_v59 }
 0x20e   : > { %2713 = vmatmul.bf16.gmra.mxu0 %v4622_v37  ;;  %v2747_v60 = vmax.f32 %v2672_v54, 0.0 }
 0x20f   : > { %v2496_v0 = vpop.f32.mrf.mxu2 }
 0x210   : > { %v3547_v9 = vpack.c.bf16 %v2747_v60, %v2746_v53  ;;  %v2842_v7 = vadd.f32 %v2841_v49, %v2747_v60  ;;  %v2497_v27 = vadd.f32 %v2496_v0, %v2408_v14  ;;  %v2585_v62 = vpop.f32.mrf.mxu3 }
 0x211   : > { %v2409_v6 = vpop.f32.mrf.mxu1 }
 0x212   : > { %3619 = vst [vmem:[%s4861_s15 + $0x8] sm:$0xff] %v3547_v9   ;;  %v2586_v28 = vadd.f32 %v2585_v62, %v2497_v27  ;;  %v2410_v23 = vadd.f32 %v2409_v6, %v5069_v30 }
 0x213   : > { %v2676_v4 = vpop.f32.mrf.mxu0 }
 0x214   : > { %v2675_v32 = vadd.f32 %v2674_v47, %v2586_v28 }
 0x216   : > { %v2748_v46 = vmax.f32 %v2675_v32, 0.0 }
 0x217   : > { %v2498_v40 = vpop.f32.mrf.mxu2 }
 0x218   : > { %v2843_v59 = vadd.f32 %v2842_v7, %v2748_v46  ;;  %v2499_v18 = vadd.f32 %v2498_v40, %v2410_v23  ;;  %v2587_v22 = vpop.f32.mrf.mxu3 }
 0x219   : > { %v2412_v54 = vpop.f32.mrf.mxu1 }
 0x21a   : > { %v2588_v39 = vadd.f32 %v2587_v22, %v2499_v18  ;;  %v2413_v47 = vadd.f32 %v2412_v54, %v4617_v55 }
 0x21b   : > { %v2679_v61 = vpop.f32.mrf.mxu0 }
 0x21c   : > { %v2677_v53 = vadd.f32 %v2676_v4, %v2588_v39  ;;  %2451 = vmatmul.bf16.gmra.mxu1 %v4622_v37  ;;  %2540 = vmatmul.bf16.gmra.mxu2 %v4636_v35  ;;  %v5070_v35 = vld [vmem:[#allocation31_spill] sm:$0xff] }
 0x21d   : > { %2629 = vmatmul.bf16.gmra.mxu3 %v4626_v3 }
 0x21e   : > { %2718 = vmatmul.bf16.gmra.mxu0 %v4676_v2  ;;  %v2749_v49 = vmax.f32 %v2677_v53, 0.0 }
 0x21f   : > { %v2501_v51 = vpop.f32.mrf.mxu2 }
 0x220   : > { %v3552_v60 = vpack.c.bf16 %v2749_v49, %v2748_v46  ;;  %v2844_v19 = vadd.f32 %v2843_v59, %v2749_v49  ;;  %v2502_v14 = vadd.f32 %v2501_v51, %v2413_v47  ;;  %v2590_v0 = vpop.f32.mrf.mxu3  ;;  %v3536_v49 = vld [vmem:[%s416_s10] sm:$0xff]  }
 0x221   : > { %v2414_v9 = vpop.f32.mrf.mxu1  ;;  %v3537_v47 = vunpack.c.l.bf16 %v3536_v49  ;;  %v3538_v51 = vunpack.c.h.bf16 %v3536_v49 }
 0x222   : > { %3620 = vst [vmem:[%s4861_s15 + $0x10] sm:$0xff] %v3552_v60   ;;  %v2591_v7 = vadd.f32 %v2590_v0, %v2502_v14  ;;  %v2415_v6 = vadd.f32 %v2414_v9, %v5070_v35  ;;  %v5072_v0 = vld [vmem:[#allocation34_spill] sm:$0xff] }
 0x223   : > { %v2681_v27 = vpop.f32.mrf.mxu0  ;;  %v1108_v9 = vrot.slane %v5072_v0, 5  ;;  %v5073_v35 = vld [vmem:[#allocation2_spill] sm:$0xff] }
 0x224   : > { %v2680_v37 = vadd.f32 %v2679_v61, %v2591_v7 }
 0x226   : > { %v2750_v62 = vmax.f32 %v2680_v37, 0.0 }
 0x227   : > { %v2503_v3 = vpop.f32.mrf.mxu2 }
 0x228   : > { %v2845_v28 = vadd.f32 %v2844_v19, %v2750_v62  ;;  %v2504_v4 = vadd.f32 %v2503_v3, %v2415_v6  ;;  %v2592_v32 = vpop.f32.mrf.mxu3  ;;  %v5071_v19 = vld [vmem:[#allocation32_spill] sm:$0xff]  ;;  %v523_v6 = vmul.f32 %v3537_v47, %v5073_v35  ;;  %v524_v3 = vmul.f32 %v3538_v51, %v5073_v35 }
 0x229   : > { %v2417_v30 = vpop.f32.mrf.mxu1 }
 0x22a   : > { %v2593_v55 = vadd.f32 %v2592_v32, %v2504_v4  ;;  %v2418_v59 = vadd.f32 %v2417_v30, %v4671_v48  ;;  %v5074_v30 = vld [vmem:[#allocation33_spill] sm:$0xff] }
 0x22b   : > { %v2684_v23 = vpop.f32.mrf.mxu0 }
 0x22c   : > { %v2682_v46 = vadd.f32 %v2681_v27, %v2593_v55  ;;  %2456 = vmatmul.bf16.gmra.mxu1 %v4676_v2  ;;  %2545 = vmatmul.bf16.gmra.mxu2 %v4690_v63  ;;  %v3084_v55 = vrot.slane %v5074_v30, 9 }
 0x22d   : > { %2634 = vmatmul.bf16.gmra.mxu3 %v4679_v11 }
 0x22e   : > { %2723 = vmatmul.bf16.gmra.mxu0 %v4718_v58  ;;  %v2751_v40 = vmax.f32 %v2682_v46, 0.0  ;;  %v1111_v46 = vrot.slane %v4716_v34, 5  ;;  %v1109_v34 = vsel %vm4004_vm5, %v3084_v55, %v1108_v9 }
 0x22f   : > { %v2506_v18 = vpop.f32.mrf.mxu2  ;;  %v1347_v0 = vunpack.c.l.b16 %v1109_v34 }
 0x230   : > { %v3557_v22 = vpack.c.bf16 %v2751_v40, %v2750_v62  ;;  %v2846_v54 = vadd.f32 %v2845_v28, %v2751_v40  ;;  %v2507_v39 = vadd.f32 %v2506_v18, %v2418_v59  ;;  %v2595_v61 = vpop.f32.mrf.mxu3  ;;  %v519_v28 = vld [vmem:[%s416_s10 + $0x8] sm:$0x1]  ;;  %v4899_v18 = vpack.c.bf16 %v523_v6, %v523_v6 }
 0x231   : > { %v2419_v2 = vpop.f32.mrf.mxu1  ;;  %v522_v59 = vunpack.c.l.bf16 %v519_v28 }
 0x232   : > { %3621 = vst [vmem:[%s4861_s15 + $0x18] sm:$0xff] %v3557_v22   ;;  %v2596_v63 = vadd.f32 %v2595_v61, %v2507_v39  ;;  %v2420_v48 = vadd.f32 %v2419_v2, %v5071_v19  ;;  %v4901_v22 = vpack.c.bf16 %v524_v3, %v524_v3  ;;  %v1117_v47 = vshll.u32 %v4899_v18, 16 }
 0x233   : > { %v2686_v53 = vpop.f32.mrf.mxu0 }
 0x234   : > { %v2685_v11 = vadd.f32 %v2684_v23, %v2596_v63  ;;  %v1110_v23 = vrot.slane %v1108_v9, 4  ;;  %v1127_v51 = vshrl.u32 %v4901_v22, 16 }
 0x236   : > { %v2752_v60 = vmax.f32 %v2685_v11, 0.0  ;;  %v1114_v11 = vshrl.u32 %v4899_v18, 16 }
 0x237   : > { %v2508_v14 = vpop.f32.mrf.mxu2 }
 0x238   : > { %v2847_v7 = vadd.f32 %v2846_v54, %v2752_v60  ;;  %v2509_v27 = vadd.f32 %v2508_v14, %v2420_v48  ;;  %v2597_v37 = vpop.f32.mrf.mxu3 }
 0x239   : > { %v2422_v62 = vpop.f32.mrf.mxu1 }
 0x23a   : > { %v2598_v4 = vadd.f32 %v2597_v37, %v2509_v27  ;;  %v2423_v39 = vadd.f32 %v2422_v62, %v4713_v29  ;;  %v1123_v29 = vshll.u32 %v4901_v22, 16  ;;  %v1119_v27 = vrot.slane %v1117_v47, 5 }
 0x23b   : > { %v2689_v32 = vpop.f32.mrf.mxu0  ;;  %v1129_v62 = vrot.slane %v1127_v51, 4 }
 0x23c   : > { %v2687_v40 = vadd.f32 %v2686_v53, %v2598_v4  ;;  %2461 = vmatmul.bf16.gmra.mxu1 %v4718_v58  ;;  %2550 = vmatmul.bf16.gmra.mxu2 %v4730_v24  ;;  %v1112_v58 = vsel %vm4004_vm5, %v1110_v23, %v1111_v46  ;;  %v525_v53 = vmul.f32 %v522_v59, %v5073_v35  ;;  %v1125_v37 = vrot.slane %v1123_v29, 5 }
 0x23d   : > { %2639 = vmatmul.bf16.gmra.mxu3 %v4720_v44 }
 0x23e   : > { %2728 = vmatmul.bf16.gmra.mxu0 %v4747_v21  ;;  %v2753_v54 = vmax.f32 %v2687_v40, 0.0  ;;  %v528_v9 = vpack.c.bf16 %v525_v53, %v525_v53  ;;  %v1130_v40 = vor.u32 %v1129_v62, %v1125_v37 }
 0x23f   : > { %v2511_v61 = vpop.f32.mrf.mxu2 }
 0x240   : > { %v3562_v24 = vpack.c.bf16 %v2753_v54, %v2752_v60  ;;  %v2848_v2 = vadd.f32 %v2847_v7, %v2753_v54  ;;  %v2512_v44 = vadd.f32 %v2511_v61, %v2423_v39  ;;  %v2600_v63 = vpop.f32.mrf.mxu3  ;;  %v1348_v60 = vunpack.c.l.b16 %v1112_v58 }
 0x241   : > { %v2424_v49 = vpop.f32.mrf.mxu1  ;;  %v1116_v7 = vrot.slane %v1114_v11, 4  ;;  %v1133_v59 = vshll.u32 %v528_v9, 16  ;;  %v1142_v39 = vrot.slane %v4901_v22, 5  ;;  %v1131_v34 = vrot.slane %v1130_v40, 4 }
 0x242   : > { %3622 = vst [vmem:[%s4861_s15 + $0x20] sm:$0xff] %v3562_v24   ;;  %v2601_v19 = vadd.f32 %v2600_v63, %v2512_v44  ;;  %v2425_v6 = vadd.f32 %v2424_v49, %v4727_v57  ;;  %v1349_v23 = vpack.c.b16 %v1348_v60, %v1347_v0  ;;  %v3085_v24 = vrot.slane %v4899_v18, 9 }
 0x243   : > { %v2691_v48 = vpop.f32.mrf.mxu0  ;;  %v1120_v46 = vor.u32 %v1119_v27, %v1116_v7  ;;  %v1135_v58 = vrot.slane %v1133_v59, 5  ;;  %v1144_v63 = vrot.slane %v1142_v39, 4  ;;  %v1145_v53 = vrot.slane %v528_v9, 5 }
 0x244   : > { %v2690_v14 = vadd.f32 %v2689_v32, %v2601_v19  ;;  %v1351_v60 = vunpack.c.l.b16 %v4899_v18  ;;  %v1352_v9 = vunpack.c.l.b16 %v4901_v22 }
 0x245   : > { %v1121_v57 = vrot.slane %v1120_v46, 4 }
 0x246   : > { %v2754_v35 = vmax.f32 %v2690_v14, 0.0  ;;  %v1146_v14 = vsel %vm4004_vm5, %v1144_v63, %v1145_v53 }
 0x247   : > { %v2513_v3 = vpop.f32.mrf.mxu2  ;;  %v1360_v62 = vunpack.c.l.b16 %v1146_v14 }
 0x248   : > { %v2849_v28 = vadd.f32 %v2848_v2, %v2754_v35  ;;  %v2514_v4 = vadd.f32 %v2513_v3, %v2425_v6  ;;  %v2602_v30 = vpop.f32.mrf.mxu3 }
 0x249   : > { %v2427_v55 = vpop.f32.mrf.mxu1 }
 0x24a   : > { %v2603_v32 = vadd.f32 %v2602_v30, %v2514_v4  ;;  %v2428_v44 = vadd.f32 %v2427_v55, %v4745_v43  ;;  %v1143_v43 = vsel %vm4004_vm5, %v3085_v24, %v1142_v39  ;;  %v1353_v30 = vpack.c.b16 %v1352_v9, %v1351_v60 }
 0x24b   : > { %v2694_v54 = vpop.f32.mrf.mxu0 }
 0x24c   : > { %v2692_v61 = vadd.f32 %v2691_v48, %v2603_v32  ;;  %2466 = vmatmul.bf16.gmra.mxu1 %v4747_v21  ;;  %2555 = vmatmul.bf16.gmra.mxu2 %v4750_v16  ;;  %v1136_v48 = vsel %vm3998_vm4, %v1131_v34, %v1135_v58 }
 0x24d   : > { %2644 = vmatmul.bf16.gmra.mxu3 %v4752_v10  ;;  %v1126_v10 = vsel %vm3998_vm4, %v1121_v57, %v1125_v37  ;;  %v1356_v27 = vunpack.c.l.b16 %v1136_v48  ;;  %v1359_v37 = vunpack.c.l.b16 %v1143_v43 }
 0x24e   : > { %2733 = vmatmul.bf16.gmra.mxu0 %v1349_v23  ;;  %v2755_v2 = vmax.f32 %v2692_v61, 0.0  ;;  %v1355_v7 = vunpack.c.l.b16 %v1126_v10 }
 0x24f   : > { %v2516_v49 = vpop.f32.mrf.mxu2  ;;  %v1361_v46 = vpack.c.b16 %v1360_v62, %v1359_v37 }
 0x250   : > { %v3567_v11 = vpack.c.bf16 %v2755_v2, %v2754_v35  ;;  %v2850_v47 = vadd.f32 %v2849_v28, %v2755_v2  ;;  %v2517_v21 = vadd.f32 %v2516_v49, %v2428_v44  ;;  %v2605_v29 = vpop.f32.mrf.mxu3  ;;  %v1357_v50 = vpack.c.b16 %v1356_v27, %v1355_v7 }
 0x251   : > { %v2429_v16 = vpop.f32.mrf.mxu1 }
 0x252   : > { %3623 = vst [vmem:[%s4861_s15 + $0x28] sm:$0xff] %v3567_v11   ;;  %v2606_v51 = vadd.f32 %v2605_v29, %v2517_v21  ;;  %v2430_v6 = vadd.f32 %v2429_v16, %v4757_v38 }
 0x253   : > { %v2696_v19 = vpop.f32.mrf.mxu0 }
 0x254   : > { %v2695_v0 = vadd.f32 %v2694_v54, %v2606_v51 }
 0x256   : > { %v2756_v35 = vmax.f32 %v2695_v0, 0.0 }
 0x257   : > { %v2518_v45 = vpop.f32.mrf.mxu2 }
 0x258   : > { %v2851_v3 = vadd.f32 %v2850_v47, %v2756_v35  ;;  %v2519_v28 = vadd.f32 %v2518_v45, %v2430_v6  ;;  %v2607_v4 = vpop.f32.mrf.mxu3 }
 0x259   : > { %v2432_v55 = vpop.f32.mrf.mxu1 }
 0x25a   : > { %v2608_v40 = vadd.f32 %v2607_v4, %v2519_v28  ;;  %v2433_v32 = vadd.f32 %v2432_v55, %v4762_v15 }
 0x25b   : > { %v2699_v18 = vpop.f32.mrf.mxu0 }
 0x25c   : > { %v2697_v59 = vadd.f32 %v2696_v19, %v2608_v40  ;;  %2471 = vmatmul.bf16.gmra.mxu1 %v1349_v23  ;;  %2560 = vmatmul.bf16.gmra.mxu2 %v1353_v30 }
 0x25d   : > { %2649 = vmatmul.bf16.gmra.mxu3 %v1357_v50 }
 0x25e   : > { %2738 = vmatmul.bf16.gmra.mxu0 %v1361_v46  ;;  %v2757_v22 = vmax.f32 %v2697_v59, 0.0 }
 0x25f   : > { %v2521_v38 = vpop.f32.mrf.mxu2 }
 0x260   : > { %v3572_v54 = vpack.c.bf16 %v2757_v22, %v2756_v35  ;;  %v2852_v39 = vadd.f32 %v2851_v3, %v2757_v22  ;;  %v2522_v61 = vadd.f32 %v2521_v38, %v2433_v32  ;;  %v2610_v57 = vpop.f32.mrf.mxu3 }
 0x261   : > { %v2434_v34 = vpop.f32.mrf.mxu1 }
 0x262   : > { %3624 = vst [vmem:[%s4861_s15 + $0x30] sm:$0xff] %v3572_v54   ;;  %v2611_v58 = vadd.f32 %v2610_v57, %v2522_v61  ;;  %v2435_v63 = vadd.f32 %v2434_v34, %v4767_v20 }
 0x263   : > { %v2701_v24 = vpop.f32.mrf.mxu0 }
 0x264   : > { %v2700_v2 = vadd.f32 %v2699_v18, %v2611_v58 }
 0x266   : > { %v2758_v44 = vmax.f32 %v2700_v2, 0.0 }
 0x267   : > { %v2523_v23 = vpop.f32.mrf.mxu2 }
 0x268   : > { %v2853_v53 = vadd.f32 %v2852_v39, %v2758_v44  ;;  %v2524_v49 = vadd.f32 %v2523_v23, %v2435_v63  ;;  %v2612_v11 = vpop.f32.mrf.mxu3 }
 0x269   : > { %v2437_v47 = vpop.f32.mrf.mxu1 }
 0x26a   : > { %v2613_v15 = vadd.f32 %v2612_v11, %v2524_v49  ;;  %v2438_v10 = vadd.f32 %v2437_v47, %v4772_v56 }
 0x26b   : > { %v2704_v21 = vpop.f32.mrf.mxu0 }
 0x26c   : > { %v2702_v29 = vadd.f32 %v2701_v24, %v2613_v15 }
 0x26e   : > { %v2759_v16 = vmax.f32 %v2702_v29, 0.0 }
 0x26f   : > { %v2526_v51 = vpop.f32.mrf.mxu2 }
 0x270   : > { %v3577_v19 = vpack.c.bf16 %v2759_v16, %v2758_v44  ;;  %v2854_v48 = vadd.f32 %v2853_v53, %v2759_v16  ;;  %v2527_v43 = vadd.f32 %v2526_v51, %v2438_v10  ;;  %v2615_v14 = vpop.f32.mrf.mxu3 }
 0x271   : > { %v2439_v0 = vpop.f32.mrf.mxu1 }
 0x272   : > { %3625 = vst [vmem:[%s4861_s15 + $0x38] sm:$0xff] %v3577_v19   ;;  %v2616_v20 = vadd.f32 %v2615_v14, %v2527_v43  ;;  %v2440_v27 = vadd.f32 %v2439_v0, %v4777_v5 }
 0x273   : > { %v2706_v60 = vpop.f32.mrf.mxu0 }
 0x274   : > { %v2705_v9 = vadd.f32 %v2704_v21, %v2616_v20 }
 0x276   : > { %v2760_v7 = vmax.f32 %v2705_v9, 0.0 }
 0x277   : > { %v2528_v37 = vpop.f32.mrf.mxu2 }
 0x278   : > { %v2855_v62 = vadd.f32 %v2854_v48, %v2760_v7  ;;  %v2529_v35 = vadd.f32 %v2528_v37, %v2440_v27  ;;  %v2617_v6 = vpop.f32.mrf.mxu3 }
 0x279   : > { %v2442_v45 = vpop.f32.mrf.mxu1 }
 0x27a   : > { %v2618_v56 = vadd.f32 %v2617_v6, %v2529_v35  ;;  %v2443_v30 = vadd.f32 %v2442_v45, %v4782_v52 }
 0x27b   : > { %v2709_v3 = vpop.f32.mrf.mxu0 }
 0x27c   : > { %v2707_v28 = vadd.f32 %v2706_v60, %v2618_v56 }
 0x27e   : > { %v2761_v4 = vmax.f32 %v2707_v28, 0.0 }
 0x27f   : > { %v2531_v55 = vpop.f32.mrf.mxu2 }
 0x280   : > { %v3582_v50 = vpack.c.bf16 %v2761_v4, %v2760_v7  ;;  %v2856_v46 = vadd.f32 %v2855_v62, %v2761_v4  ;;  %v2532_v40 = vadd.f32 %v2531_v55, %v2443_v30  ;;  %v2620_v18 = vpop.f32.mrf.mxu3 }
 0x281   : > { %v2444_v59 = vpop.f32.mrf.mxu1 }
 0x282   : > { %3626 = vst [vmem:[%s4861_s15 + $0x40] sm:$0xff] %v3582_v50   ;;  %v2621_v5 = vadd.f32 %v2620_v18, %v2532_v40  ;;  %v2445_v54 = vadd.f32 %v2444_v59, %v4787_v26 }
 0x283   : > { %v2711_v22 = vpop.f32.mrf.mxu0 }
 0x284   : > { %v2710_v32 = vadd.f32 %v2709_v3, %v2621_v5 }
 0x286   : > { %v2762_v38 = vmax.f32 %v2710_v32, 0.0 }
 0x287   : > { %v2533_v39 = vpop.f32.mrf.mxu2 }
 0x288   : > { %v2857_v61 = vadd.f32 %v2856_v46, %v2762_v38  ;;  %v2534_v57 = vadd.f32 %v2533_v39, %v2445_v54  ;;  %v2622_v34 = vpop.f32.mrf.mxu3 }
 0x289   : > { %v2447_v58 = vpop.f32.mrf.mxu1 }
 0x28a   : > { %v2623_v52 = vadd.f32 %v2622_v34, %v2534_v57  ;;  %v2448_v63 = vadd.f32 %v2447_v58, %v4792_v1 }
 0x28b   : > { %v2714_v24 = vpop.f32.mrf.mxu0 }
 0x28c   : > { %v2712_v2 = vadd.f32 %v2711_v22, %v2623_v52 }
 0x28e   : > { %v2763_v44 = vmax.f32 %v2712_v2, 0.0 }
 0x28f   : > { %v2536_v23 = vpop.f32.mrf.mxu2 }
 0x290   : > { %v3587_v53 = vpack.c.bf16 %v2763_v44, %v2762_v38  ;;  %v2858_v49 = vadd.f32 %v2857_v61, %v2763_v44  ;;  %v2537_v11 = vadd.f32 %v2536_v23, %v2448_v63  ;;  %v2625_v47 = vpop.f32.mrf.mxu3 }
 0x291   : > { %v2449_v15 = vpop.f32.mrf.mxu1 }
 0x292   : > { %3627 = vst [vmem:[%s4861_s15 + $0x48] sm:$0xff] %v3587_v53   ;;  %v2626_v26 = vadd.f32 %v2625_v47, %v2537_v11  ;;  %v2450_v10 = vadd.f32 %v2449_v15, %v4797_v13 }
 0x293   : > { %v2716_v21 = vpop.f32.mrf.mxu0 }
 0x294   : > { %v2715_v29 = vadd.f32 %v2714_v24, %v2626_v26 }
 0x296   : > { %v2764_v16 = vmax.f32 %v2715_v29, 0.0 }
 0x297   : > { %v2538_v51 = vpop.f32.mrf.mxu2 }
 0x298   : > { %v2859_v19 = vadd.f32 %v2858_v49, %v2764_v16  ;;  %v2539_v48 = vadd.f32 %v2538_v51, %v2450_v10  ;;  %v2627_v43 = vpop.f32.mrf.mxu3 }
 0x299   : > { %v2452_v14 = vpop.f32.mrf.mxu1 }
 0x29a   : > { %v2628_v1 = vadd.f32 %v2627_v43, %v2539_v48  ;;  %v2453_v9 = vadd.f32 %v2452_v14, %v4802_v8 }
 0x29b   : > { %v2719_v0 = vpop.f32.mrf.mxu0 }
 0x29c   : > { %v2717_v20 = vadd.f32 %v2716_v21, %v2628_v1 }
 0x29e   : > { %v2765_v60 = vmax.f32 %v2717_v20, 0.0 }
 0x29f   : > { %v2541_v7 = vpop.f32.mrf.mxu2 }
 0x2a0   : > { %v3592_v27 = vpack.c.bf16 %v2765_v60, %v2764_v16  ;;  %v2860_v37 = vadd.f32 %v2859_v19, %v2765_v60  ;;  %v2542_v62 = vadd.f32 %v2541_v7, %v2453_v9  ;;  %v2630_v35 = vpop.f32.mrf.mxu3 }
 0x2a1   : > { %v2454_v6 = vpop.f32.mrf.mxu1 }
 0x2a2   : > { %3628 = vst [vmem:[%s4861_s15 + $0x50] sm:$0xff] %v3592_v27   ;;  %v2631_v13 = vadd.f32 %v2630_v35, %v2542_v62  ;;  %v2455_v28 = vadd.f32 %v2454_v6, %v4807_v25 }
 0x2a3   : > { %v2721_v45 = vpop.f32.mrf.mxu0 }
 0x2a4   : > { %v2720_v56 = vadd.f32 %v2719_v0, %v2631_v13 }
 0x2a6   : > { %v2766_v3 = vmax.f32 %v2720_v56, 0.0 }
 0x2a7   : > { %v2543_v4 = vpop.f32.mrf.mxu2 }
 0x2a8   : > { %v2861_v30 = vadd.f32 %v2860_v37, %v2766_v3  ;;  %v2544_v55 = vadd.f32 %v2543_v4, %v2455_v28  ;;  %v2632_v50 = vpop.f32.mrf.mxu3 }
 0x2a9   : > { %v2457_v46 = vpop.f32.mrf.mxu1 }
 0x2aa   : > { %v2633_v8 = vadd.f32 %v2632_v50, %v2544_v55  ;;  %v2458_v5 = vadd.f32 %v2457_v46, %v4812_v31 }
 0x2ab   : > { %v2724_v40 = vpop.f32.mrf.mxu0 }
 0x2ac   : > { %v2722_v18 = vadd.f32 %v2721_v45, %v2633_v8 }
 0x2ae   : > { %v2767_v59 = vmax.f32 %v2722_v18, 0.0 }
 0x2af   : > { %v2546_v22 = vpop.f32.mrf.mxu2 }
 0x2b0   : > { %v3597_v32 = vpack.c.bf16 %v2767_v59, %v2766_v3  ;;  %v2862_v38 = vadd.f32 %v2861_v30, %v2767_v59  ;;  %v2547_v54 = vadd.f32 %v2546_v22, %v2458_v5  ;;  %v2635_v39 = vpop.f32.mrf.mxu3 }
 0x2b1   : > { %v2459_v61 = vpop.f32.mrf.mxu1 }
 0x2b2   : > { %3629 = vst [vmem:[%s4861_s15 + $0x58] sm:$0xff] %v3597_v32   ;;  %v2636_v25 = vadd.f32 %v2635_v39, %v2547_v54  ;;  %v2460_v52 = vadd.f32 %v2459_v61, %v4817_v36 }
 0x2b3   : > { %v2726_v57 = vpop.f32.mrf.mxu0 }
 0x2b4   : > { %v2725_v34 = vadd.f32 %v2724_v40, %v2636_v25 }
 0x2b6   : > { %v2768_v58 = vmax.f32 %v2725_v34, 0.0 }
 0x2b7   : > { %v2548_v24 = vpop.f32.mrf.mxu2 }
 0x2b8   : > { %v2863_v2 = vadd.f32 %v2862_v38, %v2768_v58  ;;  %v2549_v44 = vadd.f32 %v2548_v24, %v2460_v52  ;;  %v2637_v63 = vpop.f32.mrf.mxu3 }
 0x2b9   : > { %v2462_v23 = vpop.f32.mrf.mxu1 }
 0x2ba   : > { %v2638_v31 = vadd.f32 %v2637_v63, %v2549_v44  ;;  %v2463_v47 = vadd.f32 %v2462_v23, %v4822_v33 }
 0x2bb   : > { %v2729_v53 = vpop.f32.mrf.mxu0 }
 0x2bc   : > { %v2727_v49 = vadd.f32 %v2726_v57, %v2638_v31 }
 0x2be   : > { %v2769_v11 = vmax.f32 %v2727_v49, 0.0 }
 0x2bf   : > { %v2551_v15 = vpop.f32.mrf.mxu2 }
 0x2c0   : > { %v3602_v26 = vpack.c.bf16 %v2769_v11, %v2768_v58  ;;  %v2864_v21 = vadd.f32 %v2863_v2, %v2769_v11  ;;  %v2552_v29 = vadd.f32 %v2551_v15, %v2463_v47  ;;  %v2640_v16 = vpop.f32.mrf.mxu3  ;;  %v5075_v58 = vld [vmem:[#allocation3_spill] sm:$0xff] }
 0x2c1   : > { %v2464_v10 = vpop.f32.mrf.mxu1 }
 0x2c2   : > { %3630 = vst [vmem:[%s4861_s15 + $0x60] sm:$0xff] %v3602_v26   ;;  %v2641_v36 = vadd.f32 %v2640_v16, %v2552_v29  ;;  %v2465_v43 = vadd.f32 %v2464_v10, %v4827_v12 }
 0x2c3   : > { %v2731_v51 = vpop.f32.mrf.mxu0 }
 0x2c4   : > { %v2730_v19 = vadd.f32 %v2729_v53, %v2641_v36 }
 0x2c6   : > { %v2770_v48 = vmax.f32 %v2730_v19, 0.0 }
 0x2c7   : > { %v2553_v14 = vpop.f32.mrf.mxu2 }
 0x2c8   : > { %v2865_v1 = vadd.f32 %v2864_v21, %v2770_v48  ;;  %v2554_v0 = vadd.f32 %v2553_v14, %v2465_v43  ;;  %v2642_v20 = vpop.f32.mrf.mxu3 }
 0x2c9   : > { %v2467_v60 = vpop.f32.mrf.mxu1 }
 0x2ca   : > { %v2643_v33 = vadd.f32 %v2642_v20, %v2554_v0  ;;  %v2468_v37 = vadd.f32 %v2467_v60, %v4832_v17 }
 0x2cb   : > { %v2734_v7 = vpop.f32.mrf.mxu0 }
 0x2cc   : > { %v2732_v9 = vadd.f32 %v2731_v51, %v2643_v33 }
 0x2ce   : > { %v2771_v27 = vmax.f32 %v2732_v9, 0.0 }
 0x2cf   : > { %v2556_v62 = vpop.f32.mrf.mxu2 }
 0x2d0   : > { %v3607_v35 = vpack.c.bf16 %v2771_v27, %v2770_v48  ;;  %v2866_v6 = vadd.f32 %v2865_v1, %v2771_v27  ;;  %v2557_v13 = vadd.f32 %v2556_v62, %v2468_v37  ;;  %v2645_v45 = vpop.f32.mrf.mxu3 }
 0x2d1   : > { %v2469_v56 = vpop.f32.mrf.mxu1 }
 0x2d2   : > { %3631 = vst [vmem:[%s4861_s15 + $0x68] sm:$0xff] %v3607_v35   ;;  %v2646_v12 = vadd.f32 %v2645_v45, %v2557_v13  ;;  %v2470_v4 = vadd.f32 %v2469_v56, %v4837_v42 }
 0x2d3   : > { %v2736_v30 = vpop.f32.mrf.mxu0 }
 0x2d4   : > { %v2735_v3 = vadd.f32 %v2734_v7, %v2646_v12 }
 0x2d6   : > { %v2772_v28 = vmax.f32 %v2735_v3, 0.0 }
 0x2d7   : > { %v2558_v55 = vpop.f32.mrf.mxu2 }
 0x2d8   : > { %v2867_v50 = vadd.f32 %v2866_v6, %v2772_v28  ;;  %v2559_v46 = vadd.f32 %v2558_v55, %v2470_v4  ;;  %v2647_v8 = vpop.f32.mrf.mxu3 }
 0x2d9   : > { %v2472_v40 = vpop.f32.mrf.mxu1 }
 0x2da   : > { %v2648_v17 = vadd.f32 %v2647_v8, %v2559_v46  ;;  %v2473_v5 = vadd.f32 %v2472_v40, %v4842_v41 }
 0x2db   : > { %v2739_v61 = vpop.f32.mrf.mxu0 }
 0x2dc   : > { %v2737_v18 = vadd.f32 %v2736_v30, %v2648_v17 }
 0x2de   : > { %v2773_v59 = vmax.f32 %v2737_v18, 0.0 }
 0x2df   : > { %v2561_v22 = vpop.f32.mrf.mxu2 }
 0x2e0   : > { %v3612_v32 = vpack.c.bf16 %v2773_v59, %v2772_v28  ;;  %v2868_v38 = vadd.f32 %v2867_v50, %v2773_v59  ;;  %v2562_v54 = vadd.f32 %v2561_v22, %v2473_v5  ;;  %v2650_v39 = vpop.f32.mrf.mxu3 }
 0x2e1   : > { %v2474_v25 = vpop.f32.mrf.mxu1 }
 0x2e2   : > { %3632 = vst [vmem:[%s4861_s15 + $0x70] sm:$0xff] %v3612_v32   ;;  %v2651_v42 = vadd.f32 %v2650_v39, %v2562_v54  ;;  %v2475_v52 = vadd.f32 %v2474_v25, %v5075_v58 }
 0x2e3   : > { %v2741_v23 = vpop.f32.mrf.mxu0 }
 0x2e4   : > { %v2740_v57 = vadd.f32 %v2739_v61, %v2651_v42 }
 0x2e6   : > { %v2774_v34 = vmax.f32 %v2740_v57, 0.0 }
 0x2e7   : > { %v2563_v24 = vpop.f32.mrf.mxu2 }
 0x2e8   : > { %v2869_v2 = vadd.f32 %v2868_v38, %v2774_v34  ;;  %v2564_v44 = vadd.f32 %v2563_v24, %v2475_v52  ;;  %v2652_v63 = vpop.f32.mrf.mxu3 }
 0x2ea   : > { %v2653_v41 = vadd.f32 %v2652_v63, %v2564_v44 }
 0x2ec   : > { %v2742_v31 = vadd.f32 %v2741_v23, %v2653_v41 }
 0x2ee   : > { %v2775_v53 = vmax.f32 %v2742_v31, 0.0 }
 0x2f0   : > { %v3617_v49 = vpack.c.bf16 %v2775_v53, %v2774_v34  ;;  %v2870_v11 = vadd.f32 %v2869_v2, %v2775_v53 }
 0x2f2   : > { %3633 = vst [vmem:[%s4861_s15 + $0x78] sm:$0xff] %v3617_v49   ;;  %v2871_v47 = vrot.slane %v2870_v11, 4 }
 0x2f4   : > { %v2872_v15 = vadd.f32 %v2871_v47, %v2870_v11 }
 0x2f6   : > { %v2873_v26 = vrot.slane %v2872_v15, 2 }
 0x2f8   : > { %v2874_v21 = vadd.f32 %v2873_v26, %v2872_v15 }
 0x2fa   : > { %v2875_v29 = vrot.slane %v2874_v21, 1 }
 0x2fc   : > { %v2876_v16 = vadd.f32 %v2875_v29, %v2874_v21 }
 0x2fe   : > { %2877 = vst [vmem:[%s438_s25] sm:$0xff] %v2876_v16 }
 0x2ff PF: > { %s17_s23 = sadd.s32 1, %s3724_s23   ;;  %s5076_s21 = smov %s3720_s22 }
 0x300   : > { %p14_p5 = scmp.ge.s32.totalorder %s17_s23, 4   ;;  %s5077_s22 = smov %s5079_s24 }
 0x302   :  { %16 = sbr.rel (!%p14_p5) target bundleno = 2 (0x2), region = 88 }

// kernel: vgg_block_forward.4
= control target key start
LH: loop header
LB: loop body
LE: loop exit
PB: predicated region body
PF: predicated region fallthrough
CT: control target
= control target key end

     0   :  { %s3986_s18 = smov 0   ;;  %s3988_s19 = smov 0   ;;  %s5303_s0 = inlined_call_operand.vmem [shape: bf16[2,16,18,128], index: 0, kind: input, shape index: {}, may-alias: {0,1,2}]   ;;  %s5304_s1 = inlined_call_operand.vmem [shape: bf16[2,16,18,128], index: 1, kind: input, shape index: {}, may-alias: {0,1,2}]   ;;  %s5305_s2 = inlined_call_operand.vmem [shape: bf16[2,16,18,128], index: 2, kind: input, shape index: {}, may-alias: {0,1,2}]   ;;  %s5306_s3 = inlined_call_operand.vmem [shape: bf16[1152,128], index: 3, kind: input, shape index: {}]   ;;  %s5307_s4 = inlined_call_operand.vmem [shape: f32[1,128], index: 4, kind: input, shape index: {}]   ;;  %s5308_s5 = inlined_call_operand.vmem [shape: bf16[2,16,18,128], index: 5, kind: output, shape index: {}]  }
   0x1   :  { %s3990_s20 = smov 0  }
   0x2 LB: > { %s27_s21 = sadd.s32 1, %s3949_s19  ;;  %p3388_p0 = scmp.ge.s32.totalorder %s3953_s20, 1  ;;  %s3953_s20 = sphi %s3990_s20, %s15_s20   ;;  %s3949_s19 = sphi %s3988_s19, %s5407_s19   ;;  %s3945_s18 = sphi %s3986_s18, %s5406_s18  }
   0x3   : > { %p29_p1 = scmp.ge.s32.totalorder %s27_s21, 2  ;;  %p273_p2 = scmp.lt.s32.totalorder %s3953_s20, 3 }
   0x5   : > { %s5409_s21 = smov (%p29_p1, %s27_s21), 0  ;;  %p274_p3 = pnand %p3388_p0, %p273_p2 }
   0x7   : > { %277 = sbr.rel (%p274_p3) target bundleno = 771 (0x303), region = 40 }
   0xc   : > { %v3790_v0 = vld [vmem:[%s5306_s3 + $0x38] sm:$0xff]  ;;  %p341_p4 = scmp.lt.s32.totalorder %s3945_s18, 1  ;;  %v3789_v1 = vld [vmem:[%s5306_s3 + $0x30] sm:$0xff]  ;;  %v3788_v2 = vld [vmem:[%s5306_s3 + $0x28] sm:$0xff]  ;;  %v3955_v8 = vmov 0.0   ;;  %vm919_vm2 = vcmask 1042432  }
   0xd   : > { %3863 = vmatpush.bf16.msra.mxu1 %v3790_v0  ;;  %3864 = vmatpush.bf16.msra.mxu2 %v3790_v0  ;;  %v3787_v3 = vld [vmem:[%s5306_s3 + $0x20] sm:$0xff]  ;;  %v3786_v5 = vld [vmem:[%s5306_s3 + $0x18] sm:$0xff]  ;;  %v4028_v9 = vunpack.c.l.bf16 %v3955_v8  ;;  %v3785_v10 = vld [vmem:[%s5306_s3 + $0x10] sm:$0xff]  ;;  %vm484_vm0 = vsmask.f32 3328  ;;  %vm920_vm3 = vcmask 1046532  }
   0xe   : > { %s5411_s18 = smov (!%p341_p4, %s3945_s18), 1  ;;  %3865 = vmatpush.bf16.msra.mxu3 %v3790_v0  ;;  %1898 = vmatpush.bf16.msra.mxu0 %v3790_v0  ;;  %v3784_v13 = vld [vmem:[%s5306_s3 + $0x8] sm:$0xff]  ;;  %v3783_v16 = vld [vmem:[%s5306_s3] sm:$0xff]  ;;  %v3806_v19 = vld [vmem:[%s5306_s3 + $0xb8] sm:$0xff]  ;;  %vm485_vm1 = vsmask.f32 7440 }
   0xf   : > { %s4010_s26 = smul.u32 192, %s5411_s18  ;;  %5332 = vst [vmem:[#allocation2_spill] sm:$0xff] %v4028_v9  ;;  %v3814_v20 = vld [vmem:[%s5306_s3 + $0xf8] sm:$0xff]  ;;  %v3805_v27 = vld [vmem:[%s5306_s3 + $0xb0] sm:$0xff]  ;;  %v3804_v31 = vld [vmem:[%s5306_s3 + $0xa8] sm:$0xff]  ;;  %vm2987_vm6 = vcmask 1040384  }
  0x10   : > { %v3798_v25 = vld [vmem:[%s5306_s3 + $0x78] sm:$0xff]  ;;  %v3813_v28 = vld [vmem:[%s5306_s3 + $0xf0] sm:$0xff]  ;;  %v3812_v32 = vld [vmem:[%s5306_s3 + $0xe8] sm:$0xff]  ;;  %vm2988_vm7 = vsmask.f32 256 }
  0x11   : > { %3866 = vmatpush.bf16.msra.mxu1 %v3789_v1  ;;  %3867 = vmatpush.bf16.msra.mxu2 %v3789_v1  ;;  %s4019_s6 = scalar_lea.vmem %s5303_s0, %s4010_s26  ;;  %s4049_s22 = scalar_lea.vmem %s5304_s1, %s4010_s26  ;;  %v3822_v26 = vld [vmem:[%s5306_s3 + $0x138] sm:$0xff]  ;;  %v3797_v29 = vld [vmem:[%s5306_s3 + $0x70] sm:$0xff]  ;;  %v3796_v33 = vld [vmem:[%s5306_s3 + $0x68] sm:$0xff] }
  0x12   : > { %3868 = vmatpush.bf16.msra.mxu3 %v3789_v1  ;;  %1899 = vmatpush.bf16.msra.mxu0 %v3789_v1  ;;  %v3856_v4 = vld [vmem:[%s4019_s6] sm:$0xff]   ;;  %v4063_v22 = vld [vmem:[%s4049_s22 + $0x54] sm:$0xff]  ;;  %v3820_v34 = vld [vmem:[%s5306_s3 + $0x128] sm:$0xff]  ;;  %s5089_s13 = scalar_lea.vmem %s5308_s5, %s4010_s26  ;;  %s3766_s14 = sadd.s32 180, %s4010_s26 }
  0x13   : > { %v3857_v6 = vunpack.c.l.bf16 %v3856_v4  ;;  %v3858_v7 = vunpack.c.h.bf16 %v3856_v4  ;;  %v4060_v21 = vld [vmem:[%s4049_s22 + $0x24] sm:$0xff]  ;;  %v3821_v30 = vld [vmem:[%s5306_s3 + $0x130] sm:$0xff]  ;;  %v3802_v39 = vld [vmem:[%s5306_s3 + $0x98] sm:$0xff]  ;;  %s377_s16 = scalar_lea.vmem %s5305_s2, %s3766_s14 }
  0x14   : > { %v3778_v23 = vld [vmem:[%s4049_s22 + $0x84] sm:$0xff]  ;;  %v3810_v40 = vld [vmem:[%s5306_s3 + $0xd8] sm:$0xff]  ;;  %v4117_v41 = vld [vmem:[%s4049_s22 + $0x30] sm:$0xff] }
  0x15   : > { %3869 = vmatpush.bf16.msra.mxu1 %v3788_v2  ;;  %3870 = vmatpush.bf16.msra.mxu2 %v3788_v2  ;;  %v418_v11 = vmul.f32 %v3857_v6, %v4028_v9  ;;  %v419_v12 = vmul.f32 %v3858_v7, %v4028_v9  ;;  %v3803_v35 = vld [vmem:[%s5306_s3 + $0xa0] sm:$0xff]  ;;  %v3779_v43 = vld [vmem:[%s4049_s22 + $0x90] sm:$0xff]  ;;  %v3794_v45 = vld [vmem:[%s5306_s3 + $0x58] sm:$0xff] }
  0x16   : > { %3871 = vmatpush.bf16.msra.mxu3 %v3788_v2  ;;  %1900 = vmatpush.bf16.msra.mxu0 %v3788_v2  ;;  %v3811_v36 = vld [vmem:[%s5306_s3 + $0xe0] sm:$0xff]  ;;  %v3818_v46 = vld [vmem:[%s5306_s3 + $0x118] sm:$0xff]  ;;  %v3801_v47 = vld [vmem:[%s5306_s3 + $0x90] sm:$0xff] }
  0x17   : > { %v4038_v14 = vpack.c.bf16 %v418_v11, %v418_v11  ;;  %v4040_v15 = vpack.c.bf16 %v419_v12, %v419_v12  ;;  %v3795_v37 = vld [vmem:[%s5306_s3 + $0x60] sm:$0xff]  ;;  %v3809_v48 = vld [vmem:[%s5306_s3 + $0xd0] sm:$0xff]  ;;  %v3800_v51 = vld [vmem:[%s5306_s3 + $0x88] sm:$0xff] }
  0x18   : > { %v3819_v38 = vld [vmem:[%s5306_s3 + $0x120] sm:$0xff]  ;;  %v3793_v49 = vld [vmem:[%s5306_s3 + $0x50] sm:$0xff]  ;;  %v3808_v52 = vld [vmem:[%s5306_s3 + $0xc8] sm:$0xff] }
  0x19   : > { %3872 = vmatpush.bf16.msra.mxu1 %v3787_v3  ;;  %3873 = vmatpush.bf16.msra.mxu2 %v3787_v3  ;;  %v1102_v17 = vunpack.c.l.b16 %v4038_v14  ;;  %v1103_v18 = vunpack.c.l.b16 %v4040_v15  ;;  %v3775_v42 = vld [vmem:[%s4049_s22 + $0x60] sm:$0xff]  ;;  %v3817_v50 = vld [vmem:[%s5306_s3 + $0x110] sm:$0xff]  ;;  %v3792_v53 = vld [vmem:[%s5306_s3 + $0x48] sm:$0xff]  ;;  %v488_v1 = vshrl.u32 %v4038_v14, 16  ;;  %v491_v2 = vshll.u32 %v4038_v14, 16 }
  0x1a   : > { %3874 = vmatpush.bf16.msra.mxu3 %v3787_v3  ;;  %1901 = vmatpush.bf16.msra.mxu0 %v3787_v3  ;;  %v4122_v44 = vld [vmem:[%s4049_s22] sm:$0xff]  ;;  %v3816_v54 = vld [vmem:[%s5306_s3 + $0x108] sm:$0xff]  ;;  %v497_v3 = vshll.u32 %v4040_v15, 16  ;;  %v501_v4 = vshrl.u32 %v4040_v15, 16  ;;  %v3846_v6 = vld [vmem:[%s5306_s3 + $0x1f8] sm:$0xff] }
  0x1b   : > { %v1134_v24 = vpack.c.b16 %v1103_v18, %v1102_v17  ;;  %v3799_v55 = vld [vmem:[%s5306_s3 + $0x80] sm:$0xff]  ;;  %v3776_v60 = vld [vmem:[%s4049_s22 + $0x6c] sm:$0xff]  ;;  %v409_v61 = vld [vmem:[%s4019_s6 + $0x8] sm:$0x1] }
  0x1c   : > { %v3807_v56 = vld [vmem:[%s5306_s3 + $0xc0] sm:$0xff]  ;;  %v4175_v63 = vld [vmem:[%s4049_s22 + $0xc] sm:$0xff]  ;;  %v416_v0 = vunpack.c.l.bf16 %v409_v61  ;;  %v3830_v7 = vld [vmem:[%s5306_s3 + $0x178] sm:$0xff]  ;;  %v499_v17 = vrot.slane %v497_v3, 5  ;;  %v503_v18 = vrot.slane %v501_v4, 4 }
  0x1d   : > { %3875 = vmatpush.bf16.msra.mxu1 %v3786_v5  ;;  %3876 = vmatpush.bf16.msra.mxu2 %v3786_v5  ;;  %v3791_v57 = vld [vmem:[%s5306_s3 + $0x40] sm:$0xff]  ;;  %v3854_v8 = vld [vmem:[%s5306_s3 + $0x238] sm:$0xff]  ;;  %vm4219_vm4 = vmor %vm484_vm0, %vm485_vm1 }
  0x1e   : > { %3877 = vmatpush.bf16.msra.mxu3 %v3786_v5  ;;  %1902 = vmatpush.bf16.msra.mxu0 %v3786_v5  ;;  %v3815_v58 = vld [vmem:[%s5306_s3 + $0x100] sm:$0xff]  ;;  %v3838_v5 = vld [vmem:[%s5306_s3 + $0x1b8] sm:$0xff]  ;;  %vm4225_vm5 = vmor %vm919_vm2, %vm920_vm3 }
  0x1f   : > { %v4169_v59 = vld [vmem:[%s4049_s22 + $0x3c] sm:$0xff]  ;;  %v4200_v12 = vld [vmem:[%s4049_s22 + $0x4] sm:$0xf]  ;;  %vm5079_vm8 = vmand %vm2987_vm6, %vm2988_vm7 }
  0x20   : > { %v3780_v62 = vld [vmem:[%s4049_s22 + $0x9c] sm:$0xff] }
  0x21   : > { %3878 = vmatpush.bf16.msra.mxu1 %v3785_v10  ;;  %3879 = vmatpush.bf16.msra.mxu2 %v3785_v10  ;;  %v4197_v11 = vld [vmem:[%s4049_s22] sm:$0xf] }
  0x22   : > { %3880 = vmatpush.bf16.msra.mxu3 %v3785_v10  ;;  %1903 = vmatpush.bf16.msra.mxu0 %v3785_v10  ;;  %v420_v10 = vmul.f32 %v4028_v9, %v416_v0 }
  0x25   : > { %3881 = vmatpush.bf16.msra.mxu1 %v3784_v13  ;;  %3882 = vmatpush.bf16.msra.mxu2 %v3784_v13 }
  0x26   : > { %3883 = vmatpush.bf16.msra.mxu3 %v3784_v13  ;;  %1904 = vmatpush.bf16.msra.mxu0 %v3784_v13  ;;  %v490_v13 = vrot.slane %v488_v1, 4 }
  0x29   : > { %3884 = vmatpush.bf16.msra.mxu1 %v3783_v16  ;;  %3885 = vmatpush.bf16.msra.mxu2 %v3783_v16 }
  0x2a   : > { %3886 = vmatpush.bf16.msra.mxu3 %v3783_v16  ;;  %1905 = vmatpush.bf16.msra.mxu0 %v3783_v16  ;;  %v493_v16 = vrot.slane %v491_v2, 5 }
  0x2c   : > { %1926 = vmatmul.bf16.vlgmr.msra.gmra.mxu1 %v4060_v21  ;;  %1946 = vmatmul.bf16.vlgmr.msra.gmra.mxu2 %v4063_v22 }
  0x2d   : > { %2076 = vmatpush.bf16.msrb.mxu2 %v3806_v19  ;;  %1966 = vmatmul.bf16.vlgmr.msra.gmra.mxu3 %v3778_v23  ;;  %v512_v19 = vshrl.u32 %v4197_v11, 16  ;;  %v521_v23 = vshll.u32 %v4200_v12, 16 }
  0x2e   : > { %2165 = vmatpush.bf16.msrb.mxu3 %v3814_v20  ;;  %1906 = vmatmul.bf16.vlgmr.msra.gmra.mxu0 %v1134_v24  ;;  %v515_v20 = vshll.u32 %v4197_v11, 16  ;;  %v525_v24 = vshrl.u32 %v4200_v12, 16 }
  0x2f   : > { %1987 = vmatpush.bf16.msrb.mxu1 %v3798_v25  ;;  %2254 = vmatpush.bf16.msrb.mxu0 %v3822_v26  ;;  %v423_v25 = vpack.c.bf16 %v420_v10, %v420_v10  ;;  %v494_v26 = vor.u32 %v493_v16, %v490_v13 }
  0x31   : > { %2077 = vmatpush.bf16.msrb.mxu2 %v3805_v27  ;;  %v504_v27 = vor.u32 %v503_v18, %v499_v17  ;;  %v4253_v18 = vld [vmem:[%s4049_s22 + $0x14] sm:$0x1] }
  0x32   : > { %2166 = vmatpush.bf16.msrb.mxu3 %v3813_v28  ;;  %v514_v28 = vrot.slane %v512_v19, 4 }
  0x33   : > { %1988 = vmatpush.bf16.msrb.mxu1 %v3797_v29  ;;  %2255 = vmatpush.bf16.msrb.mxu0 %v3821_v30  ;;  %v517_v29 = vrot.slane %v515_v20, 5  ;;  %v523_v30 = vrot.slane %v521_v23, 5  ;;  %v931_v20 = vrot.slane %v4200_v12, 5  ;;  %v3837_v12 = vld [vmem:[%s5306_s3 + $0x1b0] sm:$0xff] }
  0x35   : > { %2078 = vmatpush.bf16.msrb.mxu2 %v3804_v31  ;;  %v527_v31 = vrot.slane %v525_v24, 4 }
  0x36   : > { %2167 = vmatpush.bf16.msrb.mxu3 %v3812_v32  ;;  %v507_v32 = vshll.u32 %v423_v25, 16 }
  0x37   : > { %1989 = vmatpush.bf16.msrb.mxu1 %v3796_v33  ;;  %2256 = vmatpush.bf16.msrb.mxu0 %v3820_v34  ;;  %v924_v33 = vrot.slane %v4040_v15, 5  ;;  %v4208_v34 = vld [vmem:[%s4049_s22 + $0x8] sm:$0x1] }
  0x38   : > { %v531_v15 = vshll.u32 %v4208_v34, 16 }
  0x39   : > { %2079 = vmatpush.bf16.msrb.mxu2 %v3803_v35  ;;  %v4211_v35 = vld [vmem:[%s4049_s22 + $0x48] sm:$0xff] }
  0x3a   : > { %2168 = vmatpush.bf16.msrb.mxu3 %v3811_v36  ;;  %v3777_v36 = vld [vmem:[%s4049_s22 + $0x78] sm:$0xff] }
  0x3b   : > { %1990 = vmatpush.bf16.msrb.mxu1 %v3795_v37  ;;  %2257 = vmatpush.bf16.msrb.mxu0 %v3819_v38  ;;  %v3781_v37 = vld [vmem:[%s4049_s22 + $0xa8] sm:$0xff]  ;;  %v4216_v38 = vld [vmem:[%s4049_s22 + $0x18] sm:$0xff] }
  0x3c   : > { %1931 = vmatmul.bf16.gmra.mxu1 %v4117_v41  ;;  %1951 = vmatmul.bf16.gmra.mxu2 %v3775_v42  ;;  %v518_v42 = vor.u32 %v517_v29, %v514_v28  ;;  %v3394_v28 = vrot.slane %v4197_v11, 9  ;;  %v933_v29 = vrot.slane %v931_v20, 4  ;;  %v3829_v11 = vld [vmem:[%s5306_s3 + $0x170] sm:$0xff] }
  0x3d   : > { %2080 = vmatpush.bf16.msrb.mxu2 %v3802_v39  ;;  %1971 = vmatmul.bf16.gmra.mxu3 %v3779_v43  ;;  %v495_v39 = vrot.slane %v494_v26, 4  ;;  %v528_v43 = vor.u32 %v527_v31, %v523_v30  ;;  %v555_v26 = vshll.u32 %v4253_v18, 16 }
  0x3e   : > { %2169 = vmatpush.bf16.msrb.mxu3 %v3810_v40  ;;  %1911 = vmatmul.bf16.gmra.mxu0 %v4122_v44  ;;  %v505_v40 = vrot.slane %v504_v27, 4 }
  0x3f   : > { %1991 = vmatpush.bf16.msrb.mxu1 %v3794_v45  ;;  %2258 = vmatpush.bf16.msrb.mxu0 %v3818_v46  ;;  %v509_v46 = vrot.slane %v507_v32, 5 }
  0x41   : > { %2081 = vmatpush.bf16.msrb.mxu2 %v3801_v47  ;;  %v3393_v47 = vrot.slane %v4038_v14, 9  ;;  %v500_v14 = vsel %vm4219_vm4, %v495_v39, %v499_v17  ;;  %v932_v39 = vsel %vm4225_vm5, %v3394_v28, %v931_v20 }
  0x42   : > { %2170 = vmatpush.bf16.msrb.mxu3 %v3809_v48  ;;  %v926_v48 = vrot.slane %v924_v33, 4  ;;  %v1166_v3 = vunpack.c.l.b16 %v500_v14 }
  0x43   : > { %1992 = vmatpush.bf16.msrb.mxu1 %v3793_v49  ;;  %2259 = vmatpush.bf16.msrb.mxu0 %v3817_v50  ;;  %v927_v49 = vrot.slane %v423_v25, 5 }
  0x45   : > { %2082 = vmatpush.bf16.msrb.mxu2 %v3800_v51  ;;  %v4231_v51 = vld [vmem:[%s4049_s22 + $0xc] sm:$0xf] }
  0x46   : > { %2171 = vmatpush.bf16.msrb.mxu3 %v3808_v52  ;;  %v4234_v52 = vld [vmem:[%s4049_s22 + $0x10] sm:$0xf]  ;;  %v539_v61 = vshll.u32 %v4231_v51, 16 }
  0x47   : > { %1993 = vmatpush.bf16.msrb.mxu1 %v3792_v53  ;;  %2260 = vmatpush.bf16.msrb.mxu0 %v3816_v54  ;;  %v519_v53 = vrot.slane %v518_v42, 4  ;;  %v529_v54 = vrot.slane %v528_v43, 4  ;;  %v549_v0 = vshrl.u32 %v4234_v52, 16 }
  0x49   : > { %2083 = vmatpush.bf16.msrb.mxu2 %v3799_v55  ;;  %v533_v55 = vrot.slane %v531_v15, 5  ;;  %v524_v1 = vsel %vm4219_vm4, %v519_v53, %v523_v30  ;;  %v551_v13 = vrot.slane %v549_v0, 4  ;;  %v934_v30 = vrot.slane %v4208_v34, 5  ;;  %v4273_v34 = vld [vmem:[%s4049_s22 + $0x1c] sm:$0xf] }
  0x4a   : > { %2172 = vmatpush.bf16.msrb.mxu3 %v3807_v56  ;;  %v510_v56 = vsel %vm4219_vm4, %v505_v40, %v509_v46  ;;  %v1168_v16 = vunpack.c.l.b16 %v524_v1 }
  0x4b   : > { %1994 = vmatpush.bf16.msrb.mxu1 %v3791_v57  ;;  %2261 = vmatpush.bf16.msrb.mxu0 %v3815_v58  ;;  %v925_v57 = vsel %vm4225_vm5, %v3393_v47, %v924_v33  ;;  %v928_v58 = vsel %vm4225_vm5, %v926_v48, %v927_v49  ;;  %v534_v2 = vsel %vm4219_vm4, %v529_v54, %v533_v55  ;;  %v1167_v4 = vunpack.c.l.b16 %v510_v56 }
  0x4c   : > { %1936 = vmatmul.bf16.gmra.mxu1 %v4169_v59  ;;  %1956 = vmatmul.bf16.gmra.mxu2 %v3776_v60  ;;  %v536_v60 = vshrl.u32 %v4231_v51, 16  ;;  %v1169_v17 = vunpack.c.l.b16 %v534_v2  ;;  %v557_v33 = vrot.slane %v555_v26, 5  ;;  %v935_v40 = vsel %vm4225_vm5, %v933_v29, %v934_v30 }
  0x4d   : > { %1976 = vmatmul.bf16.gmra.mxu3 %v3780_v62  ;;  %2432 = vmatpush.bf16.msra.mxu2 %v3838_v5  ;;  %v545_v62 = vshll.u32 %v4234_v52, 16  ;;  %v1230_v5 = vunpack.c.l.b16 %v925_v57  ;;  %v1198_v23 = vpack.c.b16 %v1167_v4, %v1166_v3  ;;  %v569_v47 = vshll.u32 %v4273_v34, 16 }
  0x4e   : > { %1916 = vmatmul.bf16.gmra.mxu0 %v4175_v63  ;;  %2521 = vmatpush.bf16.msra.mxu3 %v3846_v6  ;;  %v1231_v6 = vunpack.c.l.b16 %v928_v58  ;;  %v1199_v27 = vpack.c.b16 %v1169_v17, %v1168_v16  ;;  %v573_v48 = vshrl.u32 %v4273_v34, 16  ;;  %v1232_v49 = vunpack.c.l.b16 %v932_v39 }
  0x4f   : > { %2343 = vmatpush.bf16.msra.mxu1 %v3830_v7  ;;  %2610 = vmatpush.bf16.msra.mxu0 %v3854_v8  ;;  %v538_v7 = vrot.slane %v536_v60, 4  ;;  %v541_v8 = vrot.slane %v539_v61, 5  ;;  %v547_v10 = vrot.slane %v545_v62, 5  ;;  %v1233_v53 = vunpack.c.l.b16 %v935_v40  ;;  %v432_v60 = vld [vmem:[%s4049_s22 + $0x20] sm:$0x1] }
  0x50   : > { %v1262_v19 = vpack.c.b16 %v1231_v6, %v1230_v5  ;;  %v571_v57 = vrot.slane %v569_v47, 5  ;;  %v575_v58 = vrot.slane %v573_v48, 4  ;;  %v938_v62 = vrot.slane %v4234_v52, 5 }
  0x51   : > { %v542_v24 = vor.u32 %v541_v8, %v538_v7  ;;  %v552_v25 = vor.u32 %v551_v13, %v547_v10  ;;  %2433 = vmatpush.bf16.msra.mxu2 %v3837_v12  ;;  %v4291_v61 = vpack.c.b16 %v1233_v53, %v1232_v49  ;;  %v579_v3 = vshll.u32 %v432_v60, 16  ;;  %v4305_v13 = vld [vmem:[%s4049_s22 + $0x28] sm:$0xf] }
  0x52   : > { %v576_v2 = vor.u32 %v575_v58, %v571_v57  ;;  %v3395_v4 = vrot.slane %v4231_v51, 9  ;;  %v940_v5 = vrot.slane %v938_v62, 4  ;;  %v941_v6 = vrot.slane %v4253_v18, 5 }
  0x53   : > { %v543_v31 = vrot.slane %v542_v24, 4  ;;  %v553_v32 = vrot.slane %v552_v25, 4  ;;  %2344 = vmatpush.bf16.msra.mxu1 %v3829_v11  ;;  %v581_v8 = vrot.slane %v579_v3, 5  ;;  %v593_v20 = vshll.u32 %v4305_v13, 16 }
  0x54   : > { %v577_v52 = vrot.slane %v576_v2, 4  ;;  %v939_v16 = vsel %vm4225_vm5, %v3395_v4, %v938_v62  ;;  %v942_v51 = vsel %vm4225_vm5, %v940_v5, %v941_v6  ;;  %v3852_v2 = vld [vmem:[%s5306_s3 + $0x228] sm:$0xff] }
  0x55   : > { %v548_v42 = vsel %vm4219_vm4, %v543_v31, %v547_v10  ;;  %v558_v43 = vsel %vm4219_vm4, %v553_v32, %v557_v33  ;;  %v4302_v10 = vld [vmem:[%s4049_s22 + $0x24] sm:$0xf]  ;;  %v1234_v24 = vunpack.c.l.b16 %v939_v16  ;;  %v1235_v25 = vunpack.c.l.b16 %v942_v51  ;;  %v4321_v33 = vld [vmem:[%s4049_s22 + $0x2c] sm:$0x1] }
  0x56   : > { %v1170_v54 = vunpack.c.l.b16 %v548_v42  ;;  %v1171_v55 = vunpack.c.l.b16 %v558_v43  ;;  %v582_v17 = vsel %vm4219_vm4, %v577_v52, %v581_v8  ;;  %v584_v18 = vshrl.u32 %v4302_v10, 16  ;;  %v4364_v8 = vld [vmem:[%s4049_s22 + $0x38] sm:$0x1] }
  0x57   : > { %v595_v30 = vrot.slane %v593_v20, 5  ;;  %v945_v32 = vrot.slane %v4273_v34, 5  ;;  %v4323_v12 = vpack.c.b16 %v1235_v25, %v1234_v24  ;;  %v603_v39 = vshll.u32 %v4321_v33, 16  ;;  %v4332_v34 = vld [vmem:[%s4049_s22 + $0x30] sm:$0xf] }
  0x58   : > { %v4294_v0 = vpack.c.b16 %v1171_v55, %v1170_v54  ;;  %v586_v28 = vrot.slane %v584_v18, 4  ;;  %v948_v43 = vrot.slane %v432_v60, 5  ;;  %v608_v54 = vshrl.u32 %v4332_v34, 16 }
  0x59   : > { %v947_v42 = vrot.slane %v945_v32, 4  ;;  %v605_v49 = vrot.slane %v603_v39, 5  ;;  %v611_v55 = vshll.u32 %v4332_v34, 16  ;;  %v952_v16 = vrot.slane %v4305_v13, 5 }
  0x5a   : > { %v610_v3 = vrot.slane %v608_v54, 4  ;;  %v627_v18 = vshll.u32 %v4364_v8, 16  ;;  %v3397_v20 = vrot.slane %v4302_v10, 9  ;;  %v955_v24 = vrot.slane %v4321_v33, 5 }
  0x5b   : > { %v613_v4 = vrot.slane %v611_v55, 5 }
  0x5c   : > { %1941 = vmatmul.bf16.gmra.mxu1 %v4211_v35  ;;  %1961 = vmatmul.bf16.gmra.mxu2 %v3777_v36  ;;  %v3845_v36 = vld [vmem:[%s5306_s3 + $0x1f0] sm:$0xff] }
  0x5d   : > { %1981 = vmatmul.bf16.gmra.mxu3 %v3781_v37  ;;  %v4270_v37 = vld [vmem:[%s4049_s22 + $0x18] sm:$0xf] }
  0x5e   : > { %1921 = vmatmul.bf16.gmra.mxu0 %v4216_v38  ;;  %2522 = vmatpush.bf16.msra.mxu3 %v3845_v36  ;;  %v560_v15 = vshrl.u32 %v4270_v37, 16  ;;  %v563_v46 = vshll.u32 %v4270_v37, 16  ;;  %v3396_v40 = vrot.slane %v4270_v37, 9  ;;  %v3844_v37 = vld [vmem:[%s5306_s3 + $0x1e8] sm:$0xff] }
  0x60   : > { %v562_v14 = vrot.slane %v560_v15, 4  ;;  %v565_v56 = vrot.slane %v563_v46, 5  ;;  %v3836_v15 = vld [vmem:[%s5306_s3 + $0x1a8] sm:$0xff]  ;;  %v4340_v46 = vld [vmem:[%s4049_s22 + $0x34] sm:$0xf]  ;;  %v946_v53 = vsel %vm4225_vm5, %v3396_v40, %v945_v32 }
  0x61   : > { %2434 = vmatpush.bf16.msra.mxu2 %v3836_v15  ;;  %v1236_v62 = vunpack.c.l.b16 %v946_v53 }
  0x62   : > { %v566_v1 = vor.u32 %v565_v56, %v562_v14  ;;  %2523 = vmatpush.bf16.msra.mxu3 %v3844_v37  ;;  %v617_v14 = vshll.u32 %v4340_v46, 16  ;;  %v621_v56 = vshrl.u32 %v4340_v46, 16 }
  0x64   : > { %v567_v7 = vrot.slane %v566_v1, 4  ;;  %v619_v5 = vrot.slane %v617_v14, 5  ;;  %v623_v6 = vrot.slane %v621_v56, 4 }
  0x6c   : > { %1995 = vmatmul.bf16.vlgmr.msrb.gmra.mxu1 %v1198_v23  ;;  %2084 = vmatmul.bf16.vlgmr.msrb.gmra.mxu2 %v1262_v19  ;;  %v587_v19 = vshll.u32 %v4302_v10, 16  ;;  %v597_v23 = vshrl.u32 %v4305_v13, 16  ;;  %v953_v10 = vsel %vm4225_vm5, %v3397_v20, %v952_v16 }
  0x6d   : > { %2173 = vmatmul.bf16.vlgmr.msrb.gmra.mxu3 %v4122_v44  ;;  %v3853_v44 = vld [vmem:[%s5306_s3 + $0x230] sm:$0xff] }
  0x6e   : > { %2262 = vmatmul.bf16.vlgmr.msrb.gmra.mxu0 %v1199_v27  ;;  %v589_v29 = vrot.slane %v587_v19, 5  ;;  %v599_v31 = vrot.slane %v597_v23, 4  ;;  %v954_v23 = vrot.slane %v952_v16, 4 }
  0x6f   : > { %2611 = vmatpush.bf16.msra.mxu0 %v3853_v44 }
  0x70   : > { %v590_v11 = vor.u32 %v589_v29, %v586_v28  ;;  %v600_v44 = vor.u32 %v599_v31, %v595_v30  ;;  %v4382_v28 = vld [vmem:[%s4049_s22 + $0x40] sm:$0xf]  ;;  %v956_v29 = vsel %vm4225_vm5, %v954_v23, %v955_v24 }
  0x71   : > { %v641_v33 = vshll.u32 %v4382_v28, 16  ;;  %v1239_v39 = vunpack.c.l.b16 %v956_v29 }
  0x72   : > { %v591_v47 = vrot.slane %v590_v11, 4  ;;  %v601_v48 = vrot.slane %v600_v44, 4  ;;  %v645_v11 = vshrl.u32 %v4382_v28, 16  ;;  %v1238_v44 = vunpack.c.l.b16 %v953_v10 }
  0x73   : > { %2612 = vmatpush.bf16.msra.mxu0 %v3852_v2  ;;  %v643_v37 = vrot.slane %v641_v33, 5 }
  0x74   : > { %v596_v58 = vsel %vm4219_vm4, %v591_v47, %v595_v30  ;;  %v606_v60 = vsel %vm4219_vm4, %v601_v48, %v605_v49  ;;  %v647_v47 = vrot.slane %v645_v11, 4  ;;  %v4399_v48 = vld [vmem:[%s5307_s4] ss:$0 sm:$0xff]  ;;  %v4402_v49 = vld [vmem:[%s4049_s22 + $0x44] sm:$0x1]  ;;  %v4404_v53 = vpack.c.b16 %v1239_v39, %v1238_v44 }
  0x75   : > { %v1175_v52 = vunpack.c.l.b16 %v606_v60 }
  0x76   : > { %v648_v56 = vor.u32 %v647_v47, %v643_v37 }
  0x7c   : > { %2000 = vmatmul.bf16.gmra.mxu1 %v1199_v27  ;;  %2089 = vmatmul.bf16.gmra.mxu2 %v4291_v61  ;;  %v1173_v27 = vunpack.c.l.b16 %v582_v17  ;;  %v624_v17 = vor.u32 %v623_v6, %v619_v5  ;;  %v3843_v6 = vld [vmem:[%s5306_s3 + $0x1e0] sm:$0xff] }
  0x7d   : > { %2178 = vmatmul.bf16.gmra.mxu3 %v4175_v63  ;;  %v572_v63 = vsel %vm4219_vm4, %v567_v7, %v571_v57  ;;  %v3828_v57 = vld [vmem:[%s5306_s3 + $0x168] sm:$0xff]  ;;  %v1174_v7 = vunpack.c.l.b16 %v596_v58 }
  0x7e   : > { %2267 = vmatmul.bf16.gmra.mxu0 %v4294_v0  ;;  %v1172_v26 = vunpack.c.l.b16 %v572_v63  ;;  %2345 = vmatpush.bf16.msra.mxu1 %v3828_v57  ;;  %v614_v63 = vor.u32 %v613_v4, %v610_v3  ;;  %v625_v25 = vrot.slane %v624_v17, 4  ;;  %v651_v57 = vshll.u32 %v4402_v49, 16 }
  0x7f   : > { %v4370_v19 = vpack.c.b16 %v1175_v52, %v1174_v7  ;;  %v649_v3 = vrot.slane %v648_v56, 4  ;;  %v4428_v7 = vld [vmem:[%s4049_s22 + $0x48] sm:$0xf]  ;;  %v4431_v52 = vld [vmem:[%s4049_s22 + $0x4c] sm:$0xf]  ;;  %2524 = vmatpush.bf16.msra.mxu3 %v3843_v6 }
  0x80   : > { %v4325_v36 = vpack.c.b16 %v1173_v27, %v1172_v26  ;;  %v615_v13 = vrot.slane %v614_v63, 4  ;;  %v629_v26 = vrot.slane %v627_v18, 5  ;;  %v4379_v27 = vld [vmem:[%s4049_s22 + $0x3c] sm:$0xf]  ;;  %v653_v4 = vrot.slane %v651_v57, 5 }
  0x81   : > { %v635_v32 = vshll.u32 %v4379_v27, 16  ;;  %v656_v24 = vshrl.u32 %v4428_v7, 16  ;;  %v659_v10 = vshll.u32 %v4428_v7, 16  ;;  %v665_v29 = vshll.u32 %v4431_v52, 16  ;;  %v4487_v6 = vld [vmem:[%s4049_s22 + $0x54] sm:$0xf] }
  0x82   : > { %v620_v30 = vsel %vm4219_vm4, %v615_v13, %v619_v5  ;;  %v630_v31 = vsel %vm4219_vm4, %v625_v25, %v629_v26  ;;  %v3835_v5 = vld [vmem:[%s5306_s3 + $0x1a0] sm:$0xff]  ;;  %v654_v23 = vsel %vm4219_vm4, %v649_v3, %v653_v4  ;;  %v3399_v3 = vrot.slane %v4379_v27, 9 }
  0x83   : > { %v1176_v40 = vunpack.c.l.b16 %v620_v30  ;;  %v637_v15 = vrot.slane %v635_v32, 5  ;;  %2435 = vmatpush.bf16.msra.mxu2 %v3835_v5  ;;  %v3827_v13 = vld [vmem:[%s5306_s3 + $0x160] sm:$0xff]  ;;  %v669_v30 = vshrl.u32 %v4431_v52, 16  ;;  %v1179_v11 = vunpack.c.l.b16 %v654_v23 }
  0x84   : > { %2346 = vmatpush.bf16.msra.mxu1 %v3827_v13  ;;  %v658_v44 = vrot.slane %v656_v24, 4  ;;  %v661_v39 = vrot.slane %v659_v10, 5  ;;  %v969_v5 = vrot.slane %v4402_v49, 5  ;;  %v683_v24 = vshll.u32 %v4487_v6, 16 }
  0x8c   : > { %2005 = vmatmul.bf16.gmra.mxu1 %v4294_v0  ;;  %2094 = vmatmul.bf16.gmra.mxu2 %v4323_v12 }
  0x8d   : > { %2183 = vmatmul.bf16.gmra.mxu3 %v4216_v38  ;;  %v949_v38 = vsel %vm4225_vm5, %v947_v42, %v948_v43  ;;  %v1177_v42 = vunpack.c.l.b16 %v630_v31  ;;  %v3851_v31 = vld [vmem:[%s5306_s3 + $0x220] sm:$0xff] }
  0x8e   : > { %2272 = vmatmul.bf16.gmra.mxu0 %v4325_v36  ;;  %v1237_v1 = vunpack.c.l.b16 %v949_v38  ;;  %v959_v38 = vrot.slane %v4340_v46, 5  ;;  %v3398_v46 = vrot.slane %v4332_v34, 9 }
  0x8f   : > { %v4407_v55 = vpack.c.b16 %v1177_v42, %v1176_v40  ;;  %2613 = vmatpush.bf16.msra.mxu0 %v3851_v31  ;;  %v667_v40 = vrot.slane %v665_v29, 5  ;;  %v671_v42 = vrot.slane %v669_v30, 4 }
  0x90   : > { %v4367_v51 = vpack.c.b16 %v1237_v1, %v1236_v62  ;;  %v961_v62 = vrot.slane %v959_v38, 4  ;;  %v962_v1 = vrot.slane %v4364_v8, 5  ;;  %v960_v16 = vsel %vm4225_vm5, %v3398_v46, %v959_v38 }
  0x91   : > { %5337 = vst [vmem:[#allocation3_spill] sm:$0xff] %v4407_v55 }
  0x92   : > { %v963_v63 = vsel %vm4225_vm5, %v961_v62, %v962_v1  ;;  %v662_v62 = vor.u32 %v661_v39, %v658_v44  ;;  %v672_v1 = vor.u32 %v671_v42, %v667_v40  ;;  %v685_v42 = vrot.slane %v683_v24, 5 }
  0x93   : > { %v1241_v32 = vunpack.c.l.b16 %v963_v63 }
  0x9c   : > { %2010 = vmatmul.bf16.gmra.mxu1 %v4325_v36  ;;  %2099 = vmatmul.bf16.gmra.mxu2 %v4367_v51 }
  0x9d   : > { %2188 = vmatmul.bf16.gmra.mxu3 %v4060_v21  ;;  %v632_v21 = vshrl.u32 %v4379_v27, 16 }
  0x9e   : > { %2277 = vmatmul.bf16.gmra.mxu0 %v4370_v19 }
  0x9f   : > { %v634_v43 = vrot.slane %v632_v21, 4  ;;  %v1240_v21 = vunpack.c.l.b16 %v960_v16  ;;  %v673_v16 = vrot.slane %v672_v1, 4 }
  0xa1   : > { %v638_v14 = vor.u32 %v637_v15, %v634_v43  ;;  %v966_v15 = vrot.slane %v4382_v28, 5 }
  0xa3   : > { %v639_v2 = vrot.slane %v638_v14, 4  ;;  %v968_v4 = vrot.slane %v966_v15, 4  ;;  %v967_v27 = vsel %vm4225_vm5, %v3399_v3, %v966_v15  ;;  %v973_v3 = vrot.slane %v4431_v52, 5 }
  0xa5   : > { %v644_v20 = vsel %vm4219_vm4, %v639_v2, %v643_v37  ;;  %v4464_v37 = vld [vmem:[%s4049_s22 + $0x50] sm:$0x1]  ;;  %v970_v49 = vsel %vm4225_vm5, %v968_v4, %v969_v5 }
  0xa6   : > { %v1178_v33 = vunpack.c.l.b16 %v644_v20  ;;  %v675_v2 = vshll.u32 %v4464_v37, 16  ;;  %v680_v20 = vshrl.u32 %v4487_v6, 16  ;;  %v1243_v44 = vunpack.c.l.b16 %v970_v49 }
  0xa7   : > { %v976_v24 = vrot.slane %v4464_v37, 5  ;;  %v4553_v37 = vld [vmem:[%s4049_s22 + $0x64] sm:$0xf] }
  0xa8   : > { %v4474_v57 = vpack.c.b16 %v1179_v11, %v1178_v33  ;;  %v677_v63 = vrot.slane %v675_v2, 5  ;;  %v1242_v11 = vunpack.c.l.b16 %v967_v27  ;;  %v682_v39 = vrot.slane %v680_v20, 4 }
  0xa9   : > { %v1927_v54 = vpop.f32.mrf.mxu1  ;;  %v3400_v20 = vrot.slane %v4428_v7, 9  ;;  %v3842_v7 = vld [vmem:[%s5306_s3 + $0x1d8] sm:$0xff] }
  0xaa   : > { %v4411_v58 = vadd.f32 %v4399_v48, %v1927_v54  ;;  %v4469_v54 = vpack.c.b16 %v1241_v32, %v1240_v21  ;;  %5341 = vst [vmem:[#allocation7_spill] sm:$0xff] %v4474_v57  ;;  %v678_v33 = vsel %vm4219_vm4, %v673_v16, %v677_v63  ;;  %v4520_v2 = vpack.c.b16 %v1243_v44, %v1242_v11 }
  0xab   : > { %v4413_v60 = vpop.f32.mrf.mxu0  ;;  %v686_v5 = vor.u32 %v685_v42, %v682_v39  ;;  %v974_v44 = vsel %vm4225_vm5, %v3400_v20, %v973_v3  ;;  %2525 = vmatpush.bf16.msra.mxu3 %v3842_v7  ;;  %v3850_v20 = vld [vmem:[%s5306_s3 + $0x218] sm:$0xff] }
  0xac   : > { %2015 = vmatmul.bf16.gmra.mxu1 %v4370_v19  ;;  %2104 = vmatmul.bf16.gmra.mxu2 %v4404_v53  ;;  %5339 = vst [vmem:[#allocation5_spill] sm:$0xff] %v4469_v54 }
  0xad   : > { %2193 = vmatmul.bf16.gmra.mxu3 %v4117_v41  ;;  %5343 = vst [vmem:[#allocation9_spill] sm:$0xff] %v4520_v2  ;;  %2614 = vmatpush.bf16.msra.mxu0 %v3850_v20 }
  0xae   : > { %2282 = vmatmul.bf16.gmra.mxu0 %v4407_v55 }
  0xaf   : > { %v1947_v34 = vpop.f32.mrf.mxu2 }
  0xb0   : > { %v4434_v41 = vadd.f32 %v4399_v48, %v1947_v34  ;;  %v1967_v8 = vpop.f32.mrf.mxu3  ;;  %v4492_v34 = vld [vmem:[%s4049_s22 + $0x58] sm:$0xf] }
  0xb1   : > { %v4441_v17 = vadd.f32 %v4399_v48, %v1967_v8  ;;  %v1929_v18 = vpop.f32.mrf.mxu1  ;;  %v663_v8 = vrot.slane %v662_v62, 4  ;;  %v689_v13 = vshll.u32 %v4492_v34, 16  ;;  %v693_v10 = vshrl.u32 %v4492_v34, 16  ;;  %v4518_v62 = vld [vmem:[%s4049_s22 + $0x5c] sm:$0x1] }
  0xb2   : > { %v4452_v25 = vadd.f32 %v4399_v48, %v1929_v18  ;;  %v699_v16 = vshll.u32 %v4518_v62, 16 }
  0xb3   : > { %5338 = vst [vmem:[#allocation4_spill] sm:$0xff] %v4441_v17  ;;  %v4454_v26 = vpop.f32.mrf.mxu0  ;;  %v668_v32 = vsel %vm4219_vm4, %v663_v8, %v667_v40  ;;  %v695_v15 = vrot.slane %v693_v10, 4 }
  0xb7   : > { %v1949_v43 = vpop.f32.mrf.mxu2 }
  0xb8   : > { %v4467_v47 = vadd.f32 %v4399_v48, %v1949_v43  ;;  %v1969_v38 = vpop.f32.mrf.mxu3  ;;  %v691_v43 = vrot.slane %v689_v13, 5  ;;  %v687_v13 = vrot.slane %v686_v5, 4  ;;  %v713_v5 = vshll.u32 %v4553_v37, 16 }
  0xb9   : > { %v4472_v14 = vadd.f32 %v4399_v48, %v1969_v38  ;;  %v1932_v56 = vpop.f32.mrf.mxu1  ;;  %v1180_v38 = vunpack.c.l.b16 %v668_v32  ;;  %v3834_v32 = vld [vmem:[%s5306_s3 + $0x198] sm:$0xff] }
  0xba   : > { %v4477_v46 = vadd.f32 %v4399_v48, %v1932_v56  ;;  %v1181_v56 = vunpack.c.l.b16 %v678_v33  ;;  %v696_v8 = vor.u32 %v695_v15, %v691_v43  ;;  %v4547_v33 = vld [vmem:[%s4049_s22 + $0x60] sm:$0xf]  ;;  %2436 = vmatpush.bf16.msra.mxu2 %v3834_v32  ;;  %v692_v15 = vsel %vm4219_vm4, %v687_v13, %v691_v43 }
  0xbb   : > { %5340 = vst [vmem:[#allocation6_spill] sm:$0xff] %v4472_v14  ;;  %v4479_v28 = vpop.f32.mrf.mxu0  ;;  %v1182_v13 = vunpack.c.l.b16 %v692_v15  ;;  %v715_v7 = vrot.slane %v713_v5, 5  ;;  %v1908_v14 = vadd.f32 %v4399_v48, %v4413_v60 }
  0xbc   : > { %2020 = vmatmul.bf16.gmra.mxu1 %v4407_v55  ;;  %2109 = vmatmul.bf16.gmra.mxu2 %v4469_v54  ;;  %v4530_v27 = vpack.c.b16 %v1181_v56, %v1180_v38  ;;  %v697_v10 = vrot.slane %v696_v8, 4  ;;  %v704_v56 = vshrl.u32 %v4547_v33, 16  ;;  %v717_v8 = vshrl.u32 %v4553_v37, 16 }
  0xbd   : > { %2198 = vmatmul.bf16.gmra.mxu3 %v4169_v59 }
  0xbe   : > { %2287 = vmatmul.bf16.gmra.mxu0 %v4474_v57  ;;  %5345 = vst [vmem:[#allocation11_spill] sm:$0xff] %v4530_v27 }
  0xbf   : > { %v1952_v18 = vpop.f32.mrf.mxu2 }
  0xc0   : > { %v4500_v23 = vadd.f32 %v4399_v48, %v1952_v18  ;;  %v1972_v59 = vpop.f32.mrf.mxu3 }
  0xc1   : > { %v4506_v29 = vadd.f32 %v4399_v48, %v1972_v59  ;;  %v1934_v30 = vpop.f32.mrf.mxu1  ;;  %v975_v59 = vrot.slane %v973_v3, 4 }
  0xc2   : > { %v4509_v31 = vadd.f32 %v4399_v48, %v1934_v30  ;;  %v701_v30 = vrot.slane %v699_v16, 5 }
  0xc3   : > { %5342 = vst [vmem:[#allocation8_spill] sm:$0xff] %v4506_v29  ;;  %v4511_v21 = vpop.f32.mrf.mxu0 }
  0xc4   : > { %v702_v38 = vsel %vm4219_vm4, %v697_v10, %v701_v30  ;;  %v706_v30 = vrot.slane %v704_v56, 4 }
  0xc5   : > { %v1183_v10 = vunpack.c.l.b16 %v702_v38 }
  0xc7   : > { %v1954_v1 = vpop.f32.mrf.mxu2  ;;  %v4592_v29 = vpack.c.b16 %v1183_v10, %v1182_v13  ;;  %v4611_v13 = vld [vmem:[%s4049_s22 + $0x6c] sm:$0xf] }
  0xc8   : > { %v4524_v40 = vadd.f32 %v4399_v48, %v1954_v1  ;;  %v1974_v4 = vpop.f32.mrf.mxu3 }
  0xc9   : > { %v4528_v63 = vadd.f32 %v4399_v48, %v1974_v4  ;;  %v1937_v18 = vpop.f32.mrf.mxu1  ;;  %v707_v4 = vshll.u32 %v4547_v33, 16  ;;  %5348 = vst [vmem:[#allocation14_spill] sm:$0xff] %v4592_v29 }
  0xca   : > { %v4533_v49 = vadd.f32 %v4399_v48, %v1937_v18  ;;  %v3826_v18 = vld [vmem:[%s5306_s3 + $0x158] sm:$0xff] }
  0xcb   : > { %5344 = vst [vmem:[#allocation10_spill] sm:$0xff] %v4528_v63  ;;  %v4535_v52 = vpop.f32.mrf.mxu0  ;;  %2347 = vmatpush.bf16.msra.mxu1 %v3826_v18  ;;  %v709_v32 = vrot.slane %v707_v4, 5  ;;  %v983_v18 = vrot.slane %v4518_v62, 5 }
  0xcc   : > { %2025 = vmatmul.bf16.gmra.mxu1 %v4474_v57  ;;  %2114 = vmatmul.bf16.gmra.mxu2 %v4520_v2 }
  0xcd   : > { %2203 = vmatmul.bf16.gmra.mxu3 %v4211_v35  ;;  %v977_v35 = vsel %vm4225_vm5, %v975_v59, %v976_v24  ;;  %v1244_v59 = vunpack.c.l.b16 %v974_v44  ;;  %v980_v44 = vrot.slane %v4492_v34, 5  ;;  %v710_v38 = vor.u32 %v709_v32, %v706_v30  ;;  %v4614_v30 = vld [vmem:[%s4049_s22 + $0x70] sm:$0xf] }
  0xce   : > { %2292 = vmatmul.bf16.gmra.mxu0 %v4530_v27  ;;  %v1245_v24 = vunpack.c.l.b16 %v977_v35  ;;  %v3401_v34 = vrot.slane %v4487_v6, 9 }
  0xcf   : > { %v1957_v11 = vpop.f32.mrf.mxu2  ;;  %v711_v20 = vrot.slane %v710_v38, 4 }
  0xd0   : > { %v4560_v39 = vadd.f32 %v4399_v48, %v1957_v11  ;;  %v1977_v42 = vpop.f32.mrf.mxu3  ;;  %v719_v11 = vrot.slane %v717_v8, 4  ;;  %v4590_v63 = vpack.c.b16 %v1245_v24, %v1244_v59  ;;  %v981_v6 = vsel %vm4225_vm5, %v3401_v34, %v980_v44 }
  0xd1   : > { %v4568_v1 = vadd.f32 %v4399_v48, %v1977_v42  ;;  %v1939_v3 = vpop.f32.mrf.mxu1  ;;  %v4585_v42 = vld [vmem:[%s4049_s22 + $0x68] sm:$0x1]  ;;  %v731_v34 = vshll.u32 %v4611_v13, 16 }
  0xd2   : > { %v4574_v16 = vadd.f32 %v4399_v48, %v1939_v3  ;;  %5347 = vst [vmem:[#allocation13_spill] sm:$0xff] %v4590_v63  ;;  %v720_v56 = vor.u32 %v719_v11, %v715_v7  ;;  %v723_v4 = vshll.u32 %v4585_v42, 16  ;;  %v990_v17 = vrot.slane %v4585_v42, 5 }
  0xd3   : > { %5346 = vst [vmem:[#allocation12_spill] sm:$0xff] %v4568_v1  ;;  %v4576_v43 = vpop.f32.mrf.mxu0 }
  0xd4   : > { %v721_v59 = vrot.slane %v720_v56, 4  ;;  %v725_v24 = vrot.slane %v723_v4, 5  ;;  %v728_v56 = vshrl.u32 %v4611_v13, 16 }
  0xd6   : > { %v726_v38 = vsel %vm4219_vm4, %v721_v59, %v725_v24  ;;  %v733_v59 = vrot.slane %v731_v34, 5 }
  0xd7   : > { %v1959_v3 = vpop.f32.mrf.mxu2 }
  0xd8   : > { %v4588_v9 = vadd.f32 %v4399_v48, %v1959_v3  ;;  %v1979_v1 = vpop.f32.mrf.mxu3 }
  0xd9   : > { %v4596_v35 = vadd.f32 %v4399_v48, %v1979_v1  ;;  %v1942_v15 = vpop.f32.mrf.mxu1  ;;  %v982_v1 = vrot.slane %v980_v44, 4 }
  0xda   : > { %v4600_v5 = vadd.f32 %v4399_v48, %v1942_v15  ;;  %v716_v15 = vsel %vm4219_vm4, %v711_v20, %v715_v7  ;;  %v1185_v20 = vunpack.c.l.b16 %v726_v38 }
  0xdb   : > { %5349 = vst [vmem:[#allocation15_spill] sm:$0xff] %v4596_v35  ;;  %v4602_v8 = vpop.f32.mrf.mxu0  ;;  %v1184_v7 = vunpack.c.l.b16 %v716_v15 }
  0xdc   : > { %2030 = vmatmul.bf16.gmra.mxu1 %v4530_v27  ;;  %2119 = vmatmul.bf16.gmra.mxu2 %v4590_v63  ;;  %v4641_v27 = vld [vmem:[%s4049_s22 + $0x74] sm:$0x1] }
  0xdd   : > { %2208 = vmatmul.bf16.gmra.mxu3 %v4063_v22  ;;  %v984_v22 = vsel %vm4225_vm5, %v982_v1, %v983_v18  ;;  %v737_v1 = vshll.u32 %v4614_v30, 16  ;;  %v741_v18 = vshrl.u32 %v4614_v30, 16  ;;  %v747_v60 = vshll.u32 %v4641_v27, 16 }
  0xde   : > { %2297 = vmatmul.bf16.gmra.mxu0 %v4592_v29 }
  0xdf   : > { %v1962_v10 = vpop.f32.mrf.mxu2  ;;  %v739_v24 = vrot.slane %v737_v1, 5  ;;  %v743_v35 = vrot.slane %v741_v18, 4 }
  0xe0   : > { %v4617_v32 = vadd.f32 %v4399_v48, %v1962_v10  ;;  %v1982_v11 = vpop.f32.mrf.mxu3  ;;  %v1246_v10 = vunpack.c.l.b16 %v981_v6 }
  0xe1   : > { %v4624_v62 = vadd.f32 %v4399_v48, %v1982_v11  ;;  %v1944_v3 = vpop.f32.mrf.mxu1  ;;  %v1247_v11 = vunpack.c.l.b16 %v984_v22  ;;  %v744_v18 = vor.u32 %v743_v35, %v739_v24  ;;  %v4669_v35 = vld [vmem:[%s4049_s22 + $0x7c] sm:$0xf] }
  0xe2   : > { %v4632_v4 = vadd.f32 %v4399_v48, %v1944_v3  ;;  %v987_v3 = vrot.slane %v4553_v37, 5 }
  0xe3   : > { %5350 = vst [vmem:[#allocation16_spill] sm:$0xff] %v4624_v62  ;;  %v4634_v44 = vpop.f32.mrf.mxu0  ;;  %v730_v62 = vrot.slane %v728_v56, 4  ;;  %v4648_v22 = vpack.c.b16 %v1247_v11, %v1246_v10  ;;  %v4653_v56 = vpack.c.b16 %v1185_v20, %v1184_v7  ;;  %v4661_v10 = vld [vmem:[%s4049_s22 + $0x78] sm:$0xf]  ;;  %v3916_v11 = vld [vmem:[%s4049_s22 + $0x60] sm:$0xff]  ;;  %v749_v7 = vrot.slane %v747_v60, 5 }
  0xe4   : > { %v989_v57 = vrot.slane %v987_v3, 4  ;;  %v1910_v20 = vadd.f32 %v4399_v48, %v4454_v26  ;;  %v765_v60 = vshrl.u32 %v4669_v35, 16 }
  0xe5   : > { %5352 = vst [vmem:[#allocation18_spill] sm:$0xff] %v4648_v22  ;;  %v734_v1 = vor.u32 %v733_v59, %v730_v62  ;;  %v745_v62 = vrot.slane %v744_v18, 4  ;;  %v761_v18 = vshll.u32 %v4669_v35, 16 }
  0xe6   : > { %5354 = vst [vmem:[#allocation20_spill] sm:$0xff] %v4653_v56 }
  0xe7   : > { %v1964_v63 = vpop.f32.mrf.mxu2  ;;  %v735_v42 = vrot.slane %v734_v1, 4  ;;  %v755_v1 = vshll.u32 %v4661_v10, 16 }
  0xe8   : > { %v4646_v2 = vadd.f32 %v4399_v48, %v1964_v63  ;;  %v1984_v6 = vpop.f32.mrf.mxu3  ;;  %v3402_v63 = vrot.slane %v4547_v33, 9  ;;  %v3841_v33 = vld [vmem:[%s5306_s3 + $0x1d0] sm:$0xff] }
  0xe9   : > { %v4651_v15 = vadd.f32 %v4399_v48, %v1984_v6  ;;  %v1996_v38 = vpop.f32.mrf.mxu1  ;;  %2526 = vmatpush.bf16.msra.mxu3 %v3841_v33  ;;  %v763_v33 = vrot.slane %v761_v18, 5 }
  0xea   : > { %5351 = vst [vmem:[#allocation17_spill] sm:$0xff] %v4646_v2  ;;  %v1997_v37 = vadd.f32 %v1996_v38, %v1908_v14  ;;  %v3833_v14 = vld [vmem:[%s5306_s3 + $0x190] sm:$0xff]  ;;  %v988_v6 = vsel %vm4225_vm5, %v3402_v63, %v987_v3  ;;  %v991_v38 = vsel %vm4225_vm5, %v989_v57, %v990_v17  ;;  %v740_v17 = vsel %vm4219_vm4, %v735_v42, %v739_v24 }
  0xeb   : > { %5353 = vst [vmem:[#allocation19_spill] sm:$0xff] %v4651_v15  ;;  %v2263_v34 = vpop.f32.mrf.mxu0  ;;  %2437 = vmatpush.bf16.msra.mxu2 %v3833_v14  ;;  %v750_v57 = vsel %vm4219_vm4, %v745_v62, %v749_v7  ;;  %v3825_v3 = vld [vmem:[%s5306_s3 + $0x150] sm:$0xff]  ;;  %v1248_v63 = vunpack.c.l.b16 %v988_v6  ;;  %v1249_v14 = vunpack.c.l.b16 %v991_v38  ;;  %v1186_v42 = vunpack.c.l.b16 %v740_v17  ;;  %v4697_v7 = vld [vmem:[%s4049_s22 + $0x80] sm:$0x1] }
  0xec   : > { %2035 = vmatmul.bf16.gmra.mxu1 %v4592_v29  ;;  %2124 = vmatmul.bf16.gmra.mxu2 %v4648_v22  ;;  %v1187_v62 = vunpack.c.l.b16 %v750_v57  ;;  %v994_v6 = vrot.slane %v4614_v30, 5  ;;  %v997_v30 = vrot.slane %v4641_v27, 5  ;;  %v1915_v27 = vadd.f32 %v4399_v48, %v4511_v21 }
  0xed   : > { %2213 = vmatmul.bf16.gmra.mxu3 %v3916_v11  ;;  %v752_v11 = vshrl.u32 %v4661_v10, 16  ;;  %2348 = vmatpush.bf16.msra.mxu1 %v3825_v3  ;;  %v4701_v55 = vpack.c.b16 %v1249_v14, %v1248_v63  ;;  %v3403_v3 = vrot.slane %v4611_v13, 9  ;;  %v4722_v13 = vld [vmem:[%s4049_s22 + $0x88] sm:$0xf] }
  0xee   : > { %2302 = vmatmul.bf16.gmra.mxu0 %v4653_v56 }
  0xef   : > { %v2085_v59 = vpop.f32.mrf.mxu2  ;;  %5356 = vst [vmem:[#allocation22_spill] sm:$0xff] %v4701_v55 }
  0xf0   : > { %v2086_v15 = vadd.f32 %v2085_v59, %v1997_v37  ;;  %v2174_v22 = vpop.f32.mrf.mxu3  ;;  %v3849_v37 = vld [vmem:[%s5306_s3 + $0x210] sm:$0xff]  ;;  %v1913_v59 = vadd.f32 %v4399_v48, %v4479_v28 }
  0xf1   : > { %v1998_v26 = vpop.f32.mrf.mxu1  ;;  %2615 = vmatpush.bf16.msra.mxu0 %v3849_v37  ;;  %v996_v37 = vrot.slane %v994_v6, 4 }
  0xf2   : > { %v2175_v29 = vadd.f32 %v2174_v22, %v2086_v15  ;;  %v1999_v2 = vadd.f32 %v1998_v26, %v1910_v20  ;;  %v754_v22 = vrot.slane %v752_v11, 4  ;;  %v757_v15 = vrot.slane %v755_v1, 5 }
  0xf3   : > { %v2265_v54 = vpop.f32.mrf.mxu0  ;;  %v767_v20 = vrot.slane %v765_v60, 4  ;;  %v4705_v60 = vpack.c.b16 %v1187_v62, %v1186_v42  ;;  %v995_v62 = vsel %vm4225_vm5, %v3403_v3, %v994_v6  ;;  %v789_v6 = vshrl.u32 %v4722_v13, 16 }
  0xf4   : > { %v4694_v24 = vadd.f32 %v2263_v34, %v2175_v29  ;;  %v758_v1 = vor.u32 %v757_v15, %v754_v22  ;;  %v771_v29 = vshll.u32 %v4697_v7, 16  ;;  %v4714_v15 = vld [vmem:[%s4049_s22 + $0x6c] sm:$0xff]  ;;  %v1250_v3 = vunpack.c.l.b16 %v995_v62 }
  0xf5   : > { %v768_v18 = vor.u32 %v767_v20, %v763_v33  ;;  %5358 = vst [vmem:[#allocation24_spill] sm:$0xff] %v4714_v15  ;;  %v4719_v20 = vld [vmem:[%s4049_s22 + $0x84] sm:$0xf]  ;;  %v1001_v62 = vrot.slane %v4669_v35, 5  ;;  %v1004_v35 = vrot.slane %v4697_v7, 5 }
  0xf6   : > { %5355 = vst [vmem:[#allocation21_spill] sm:$0xff] %v4694_v24  ;;  %v773_v14 = vrot.slane %v771_v29, 5  ;;  %v779_v21 = vshll.u32 %v4719_v20, 16  ;;  %v785_v29 = vshll.u32 %v4722_v13, 16  ;;  %v4741_v24 = vld [vmem:[%s4049_s22 + $0x8c] sm:$0x1] }
  0xf7   : > { %v2087_v26 = vpop.f32.mrf.mxu2  ;;  %v769_v63 = vrot.slane %v768_v18, 4  ;;  %v776_v18 = vshrl.u32 %v4719_v20, 16  ;;  %v4769_v7 = vld [vmem:[%s4049_s22 + $0x90] sm:$0xf] }
  0xf8   : > { %v2088_v38 = vadd.f32 %v2087_v26, %v1999_v2  ;;  %v2176_v11 = vpop.f32.mrf.mxu3  ;;  %v759_v2 = vrot.slane %v758_v1, 4  ;;  %v998_v26 = vsel %vm4225_vm5, %v996_v37, %v997_v30 }
  0xf9   : > { %v2001_v34 = vpop.f32.mrf.mxu1  ;;  %v1251_v37 = vunpack.c.l.b16 %v998_v26 }
  0xfa   : > { %v2177_v17 = vadd.f32 %v2176_v11, %v2088_v38  ;;  %v2002_v57 = vadd.f32 %v2001_v34, %v1913_v59  ;;  %v764_v38 = vsel %vm4219_vm4, %v759_v2, %v763_v33  ;;  %v774_v11 = vsel %vm4219_vm4, %v769_v63, %v773_v14 }
  0xfb   : > { %v2268_v28 = vpop.f32.mrf.mxu0  ;;  %v1188_v30 = vunpack.c.l.b16 %v764_v38  ;;  %v1189_v33 = vunpack.c.l.b16 %v774_v11  ;;  %v778_v63 = vrot.slane %v776_v18, 4  ;;  %v781_v14 = vrot.slane %v779_v21, 5 }
  0xfc   : > { %2040 = vmatmul.bf16.gmra.mxu1 %v4653_v56  ;;  %2129 = vmatmul.bf16.gmra.mxu2 %v4701_v55  ;;  %v4711_v22 = vadd.f32 %v2265_v54, %v2177_v17  ;;  %v1918_v55 = vadd.f32 %v4399_v48, %v4535_v52  ;;  %v795_v11 = vshll.u32 %v4741_v24, 16  ;;  %v3404_v52 = vrot.slane %v4661_v10, 9  ;;  %v3840_v10 = vld [vmem:[%s5306_s3 + $0x1c8] sm:$0xff] }
  0xfd   : > { %2218 = vmatmul.bf16.gmra.mxu3 %v4714_v15  ;;  %v782_v26 = vor.u32 %v781_v14, %v778_v63 }
  0xfe   : > { %5357 = vst [vmem:[#allocation23_spill] sm:$0xff] %v4711_v22  ;;  %2307 = vmatmul.bf16.gmra.mxu0 %v4705_v60  ;;  %v791_v22 = vrot.slane %v789_v6, 4  ;;  %v4758_v6 = vld [vmem:[%s4049_s22 + $0x78] sm:$0xff]  ;;  %2527 = vmatpush.bf16.msra.mxu3 %v3840_v10 }
  0xff   : > { %v2090_v42 = vpop.f32.mrf.mxu2 }
 0x100   : > { %v2091_v59 = vadd.f32 %v2090_v42, %v2002_v57  ;;  %v2179_v54 = vpop.f32.mrf.mxu3  ;;  %v787_v42 = vrot.slane %v785_v29, 5 }
 0x101   : > { %v2003_v1 = vpop.f32.mrf.mxu1 }
 0x102   : > { %v2180_v34 = vadd.f32 %v2179_v54, %v2091_v59  ;;  %v2004_v17 = vadd.f32 %v2003_v1, %v1915_v27  ;;  %v4745_v27 = vpack.c.b16 %v1251_v37, %v1250_v3  ;;  %v792_v38 = vor.u32 %v791_v22, %v787_v42 }
 0x103   : > { %v2270_v57 = vpop.f32.mrf.mxu0  ;;  %v797_v22 = vrot.slane %v795_v11, 5  ;;  %v1920_v3 = vadd.f32 %v4399_v48, %v4576_v43 }
 0x104   : > { %v4738_v2 = vadd.f32 %v2268_v28, %v2180_v34  ;;  %v4748_v28 = vpack.c.b16 %v1189_v33, %v1188_v30  ;;  %v3832_v34 = vld [vmem:[%s5306_s3 + $0x188] sm:$0xff]  ;;  %v1002_v33 = vsel %vm4225_vm5, %v3404_v52, %v1001_v62 }
 0x105   : > { %2438 = vmatpush.bf16.msra.mxu2 %v3832_v34  ;;  %v3824_v52 = vld [vmem:[%s5306_s3 + $0x148] sm:$0xff] }
 0x106   : > { %5359 = vst [vmem:[#allocation25_spill] sm:$0xff] %v4738_v2  ;;  %2349 = vmatpush.bf16.msra.mxu1 %v3824_v52 }
 0x107   : > { %v2092_v15 = vpop.f32.mrf.mxu2 }
 0x108   : > { %v2093_v56 = vadd.f32 %v2092_v15, %v2004_v17  ;;  %v2181_v59 = vpop.f32.mrf.mxu3  ;;  %v1003_v15 = vrot.slane %v1001_v62, 4 }
 0x109   : > { %v2006_v54 = vpop.f32.mrf.mxu1 }
 0x10a   : > { %v2182_v1 = vadd.f32 %v2181_v59, %v2093_v56  ;;  %v2007_v18 = vadd.f32 %v2006_v54, %v1918_v55  ;;  %v783_v55 = vrot.slane %v782_v26, 4  ;;  %v793_v56 = vrot.slane %v792_v38, 4 }
 0x10b   : > { %v2273_v21 = vpop.f32.mrf.mxu0  ;;  %v1005_v63 = vsel %vm4225_vm5, %v1003_v15, %v1004_v35  ;;  %v800_v26 = vshrl.u32 %v4769_v7, 16  ;;  %v803_v38 = vshll.u32 %v4769_v7, 16  ;;  %v1252_v15 = vunpack.c.l.b16 %v1002_v33 }
 0x10c   : > { %2045 = vmatmul.bf16.gmra.mxu1 %v4705_v60  ;;  %2134 = vmatmul.bf16.gmra.mxu2 %v4745_v27  ;;  %v4755_v29 = vadd.f32 %v2270_v57, %v2182_v1  ;;  %v4772_v57 = vld [vmem:[%s4049_s22 + $0x94] sm:$0xf]  ;;  %v788_v59 = vsel %vm4219_vm4, %v783_v55, %v787_v42  ;;  %v798_v54 = vsel %vm4219_vm4, %v793_v56, %v797_v22  ;;  %v3848_v42 = vld [vmem:[%s5306_s3 + $0x208] sm:$0xff]  ;;  %v1253_v35 = vunpack.c.l.b16 %v1005_v63 }
 0x10d   : > { %2223 = vmatmul.bf16.gmra.mxu3 %v4758_v6  ;;  %v813_v62 = vshrl.u32 %v4772_v57, 16  ;;  %2616 = vmatpush.bf16.msra.mxu0 %v3848_v42  ;;  %v1190_v56 = vunpack.c.l.b16 %v788_v59  ;;  %v1191_v22 = vunpack.c.l.b16 %v798_v54  ;;  %v802_v34 = vrot.slane %v800_v26, 4  ;;  %v4812_v42 = vld [vmem:[%s4049_s22 + $0x9c] sm:$0xf] }
 0x10e   : > { %5360 = vst [vmem:[#allocation26_spill] sm:$0xff] %v4755_v29  ;;  %2312 = vmatmul.bf16.gmra.mxu0 %v4748_v28  ;;  %v805_v10 = vrot.slane %v803_v38, 5  ;;  %v1923_v29 = vadd.f32 %v4399_v48, %v4602_v8  ;;  %v4802_v52 = vpack.c.b16 %v1253_v35, %v1252_v15  ;;  %v4817_v35 = vld [vmem:[%s4049_s22 + $0x84] sm:$0xff] }
 0x10f   : > { %v2095_v17 = vpop.f32.mrf.mxu2  ;;  %v4804_v59 = vpack.c.b16 %v1191_v22, %v1190_v56  ;;  %5364 = vst [vmem:[#allocation30_spill] sm:$0xff] %v4817_v35 }
 0x110   : > { %v2096_v37 = vadd.f32 %v2095_v17, %v2007_v18  ;;  %v2184_v30 = vpop.f32.mrf.mxu3  ;;  %v809_v18 = vshll.u32 %v4772_v57, 16  ;;  %5362 = vst [vmem:[#allocation28_spill] sm:$0xff] %v4802_v52  ;;  %v806_v54 = vor.u32 %v805_v10, %v802_v34 }
 0x111   : > { %v2008_v14 = vpop.f32.mrf.mxu1 }
 0x112   : > { %v2185_v43 = vadd.f32 %v2184_v30, %v2096_v37  ;;  %v2009_v11 = vadd.f32 %v2008_v14, %v1920_v3  ;;  %v811_v17 = vrot.slane %v809_v18, 5  ;;  %v815_v3 = vrot.slane %v813_v62, 4  ;;  %v4798_v14 = vld [vmem:[%s4049_s22 + $0x98] sm:$0x1] }
 0x113   : > { %v2275_v1 = vpop.f32.mrf.mxu0  ;;  %v1008_v30 = vrot.slane %v4722_v13, 5  ;;  %v819_v18 = vshll.u32 %v4798_v14, 16  ;;  %v3405_v62 = vrot.slane %v4719_v20, 9  ;;  %v807_v20 = vrot.slane %v806_v54, 4 }
 0x114   : > { %v4794_v55 = vadd.f32 %v2273_v21, %v2185_v43  ;;  %v816_v13 = vor.u32 %v815_v3, %v811_v17  ;;  %v824_v3 = vshrl.u32 %v4812_v42, 16 }
 0x115   : > { %v1010_v8 = vrot.slane %v1008_v30, 4  ;;  %v821_v22 = vrot.slane %v819_v18, 5  ;;  %v1009_v10 = vsel %vm4225_vm5, %v3405_v62, %v1008_v30  ;;  %v812_v30 = vsel %vm4219_vm4, %v807_v20, %v811_v17 }
 0x116   : > { %5361 = vst [vmem:[#allocation27_spill] sm:$0xff] %v4794_v55  ;;  %v817_v56 = vrot.slane %v816_v13, 4  ;;  %v1254_v62 = vunpack.c.l.b16 %v1009_v10  ;;  %v1015_v17 = vrot.slane %v4772_v57, 5  ;;  %v1018_v57 = vrot.slane %v4798_v14, 5  ;;  %v4868_v14 = vld [vmem:[%s4049_s22 + $0xa8] sm:$0xf] }
 0x117   : > { %v2097_v37 = vpop.f32.mrf.mxu2 }
 0x118   : > { %v2098_v33 = vadd.f32 %v2097_v37, %v2009_v11  ;;  %v2186_v63 = vpop.f32.mrf.mxu3  ;;  %v1011_v11 = vrot.slane %v4741_v24, 5  ;;  %v1925_v24 = vadd.f32 %v4399_v48, %v4634_v44  ;;  %v822_v18 = vsel %vm4219_vm4, %v817_v56, %v821_v22 }
 0x119   : > { %v2011_v21 = vpop.f32.mrf.mxu1  ;;  %v1193_v2 = vunpack.c.l.b16 %v822_v18 }
 0x11a   : > { %v2187_v26 = vadd.f32 %v2186_v63, %v2098_v33  ;;  %v2012_v38 = vadd.f32 %v2011_v21, %v1923_v29  ;;  %v4822_v29 = vld [vmem:[%s4049_s22 + $0xa0] sm:$0xf]  ;;  %v827_v63 = vshll.u32 %v4812_v42, 16 }
 0x11b   : > { %v2278_v43 = vpop.f32.mrf.mxu0  ;;  %v833_v21 = vshll.u32 %v4822_v29, 16  ;;  %v837_v54 = vshrl.u32 %v4822_v29, 16 }
 0x11c   : > { %2050 = vmatmul.bf16.gmra.mxu1 %v4748_v28  ;;  %2139 = vmatmul.bf16.gmra.mxu2 %v4802_v52  ;;  %v4814_v15 = vadd.f32 %v2275_v1, %v2187_v26  ;;  %v1012_v1 = vsel %vm4225_vm5, %v1010_v8, %v1011_v11  ;;  %v826_v8 = vrot.slane %v824_v3, 4  ;;  %v829_v11 = vrot.slane %v827_v63, 5  ;;  %v4841_v52 = vld [vmem:[%s4049_s22 + $0xa4] sm:$0x1] }
 0x11d   : > { %2228 = vmatmul.bf16.gmra.mxu3 %v4817_v35  ;;  %v1192_v35 = vunpack.c.l.b16 %v812_v30  ;;  %v843_v10 = vshll.u32 %v4841_v52, 16  ;;  %v4871_v30 = vld [vmem:[%s4049_s22 + $0xac] sm:$0xf] }
 0x11e   : > { %5363 = vst [vmem:[#allocation29_spill] sm:$0xff] %v4814_v15  ;;  %2317 = vmatmul.bf16.gmra.mxu0 %v4804_v59  ;;  %v839_v15 = vrot.slane %v837_v54, 4  ;;  %v830_v56 = vor.u32 %v829_v11, %v826_v8  ;;  %v3406_v54 = vrot.slane %v4769_v7, 9  ;;  %v3839_v7 = vld [vmem:[%s5306_s3 + $0x1c0] sm:$0xff] }
 0x11f   : > { %v2100_v34 = vpop.f32.mrf.mxu2  ;;  %v4847_v3 = vpack.c.b16 %v1193_v2, %v1192_v35  ;;  %v4857_v35 = vld [vmem:[%s4049_s22 + $0x90] sm:$0xff]  ;;  %2528 = vmatpush.bf16.msra.mxu3 %v3839_v7 }
 0x120   : > { %v2101_v37 = vadd.f32 %v2100_v34, %v2012_v38  ;;  %v2189_v33 = vpop.f32.mrf.mxu3  ;;  %v1255_v38 = vunpack.c.l.b16 %v1012_v1  ;;  %v835_v34 = vrot.slane %v833_v21, 5  ;;  %v1016_v18 = vsel %vm4225_vm5, %v3406_v54, %v1015_v17 }
 0x121   : > { %v2013_v26 = vpop.f32.mrf.mxu1  ;;  %v1256_v54 = vunpack.c.l.b16 %v1016_v18  ;;  %v1022_v18 = vrot.slane %v4822_v29, 5 }
 0x122   : > { %v2190_v48 = vadd.f32 %v2189_v33, %v2101_v37  ;;  %v2014_v44 = vadd.f32 %v2013_v26, %v1925_v24  ;;  %v4843_v37 = vpack.c.b16 %v1255_v38, %v1254_v62  ;;  %v840_v22 = vor.u32 %v839_v15, %v835_v34 }
 0x123   : > { %v2280_v13 = vpop.f32.mrf.mxu0  ;;  %v1017_v26 = vrot.slane %v1015_v17, 4  ;;  %v831_v15 = vrot.slane %v830_v56, 4  ;;  %v851_v56 = vshll.u32 %v4868_v14, 16  ;;  %v857_v17 = vshll.u32 %v4871_v30, 16 }
 0x124   : > { %v4838_v55 = vadd.f32 %v2278_v43, %v2190_v48  ;;  %v841_v48 = vrot.slane %v840_v22, 4  ;;  %v861_v22 = vshrl.u32 %v4871_v30, 16  ;;  %v1024_v29 = vrot.slane %v1022_v18, 4 }
 0x125   : > { %v1019_v8 = vsel %vm4225_vm5, %v1017_v26, %v1018_v57  ;;  %v836_v11 = vsel %vm4219_vm4, %v831_v15, %v835_v34  ;;  %v3823_v34 = vld [vmem:[%s5306_s3 + $0x140] sm:$0xff] }
 0x126   : > { %v1257_v26 = vunpack.c.l.b16 %v1019_v8  ;;  %v1194_v57 = vunpack.c.l.b16 %v836_v11  ;;  %2350 = vmatpush.bf16.msra.mxu1 %v3823_v34  ;;  %v863_v7 = vrot.slane %v861_v22, 4 }
 0x127   : > { %v2102_v24 = vpop.f32.mrf.mxu2 }
 0x128   : > { %v2103_v20 = vadd.f32 %v2102_v24, %v2014_v44  ;;  %v2191_v33 = vpop.f32.mrf.mxu3  ;;  %v845_v44 = vrot.slane %v843_v10, 5 }
 0x129   : > { %v2016_v1 = vpop.f32.mrf.mxu1 }
 0x12a   : > { %v2192_v43 = vadd.f32 %v2191_v33, %v2103_v20  ;;  %v2017_v63 = vadd.f32 %v2016_v1, %v4411_v58  ;;  %v3831_v58 = vld [vmem:[%s5306_s3 + $0x180] sm:$0xff]  ;;  %v846_v24 = vsel %vm4219_vm4, %v841_v48, %v845_v44  ;;  %v848_v33 = vshrl.u32 %v4868_v14, 16 }
 0x12b   : > { %v2283_v21 = vpop.f32.mrf.mxu0  ;;  %2439 = vmatpush.bf16.msra.mxu2 %v3831_v58  ;;  %v1195_v15 = vunpack.c.l.b16 %v846_v24  ;;  %v853_v58 = vrot.slane %v851_v56, 5 }
 0x12c   : > { %2055 = vmatmul.bf16.gmra.mxu1 %v4804_v59  ;;  %2144 = vmatmul.bf16.gmra.mxu2 %v4843_v37  ;;  %v4854_v2 = vadd.f32 %v2280_v13, %v2192_v43  ;;  %v850_v44 = vrot.slane %v848_v33, 4 }
 0x12d   : > { %2233 = vmatmul.bf16.gmra.mxu3 %v4857_v35  ;;  %v4900_v11 = vpack.c.b16 %v1195_v15, %v1194_v57  ;;  %v4916_v57 = vld [vmem:[%s4049_s22 + $0xb4] sm:$0xf] }
 0x12e   : > { %5365 = vst [vmem:[#allocation31_spill] sm:$0xff] %v4854_v2  ;;  %2322 = vmatmul.bf16.gmra.mxu0 %v4847_v3  ;;  %v4897_v2 = vpack.c.b16 %v1257_v26, %v1256_v54  ;;  %v854_v24 = vor.u32 %v853_v58, %v850_v44  ;;  %v4919_v44 = vld [vmem:[%s4049_s22 + $0xb8] sm:$0xf] }
 0x12f   : > { %v2105_v13 = vpop.f32.mrf.mxu2  ;;  %5367 = vst [vmem:[#allocation33_spill] sm:$0xff] %v4916_v57 }
 0x130   : > { %v2106_v62 = vadd.f32 %v2105_v13, %v2017_v63  ;;  %v2194_v38 = vpop.f32.mrf.mxu3  ;;  %v3847_v63 = vld [vmem:[%s5306_s3 + $0x200] sm:$0xff]  ;;  %v4895_v13 = vld [vmem:[%s4049_s22 + $0xb0] sm:$0x1]  ;;  %5368 = vst [vmem:[#allocation34_spill] sm:$0xff] %v4919_v44 }
 0x131   : > { %v2018_v20 = vpop.f32.mrf.mxu1  ;;  %2617 = vmatpush.bf16.msra.mxu0 %v3847_v63  ;;  %v867_v33 = vshll.u32 %v4895_v13, 16  ;;  %v4911_v63 = vld [vmem:[%s4049_s22 + $0x9c] sm:$0xff] }
 0x132   : > { %v2195_v10 = vadd.f32 %v2194_v38, %v2106_v62  ;;  %v2019_v1 = vadd.f32 %v2018_v20, %v4452_v25  ;;  %v859_v25 = vrot.slane %v857_v17, 5 }
 0x133   : > { %v2285_v43 = vpop.f32.mrf.mxu0  ;;  %v869_v26 = vrot.slane %v867_v33, 5 }
 0x134   : > { %v4892_v48 = vadd.f32 %v2283_v21, %v2195_v10  ;;  %v864_v21 = vor.u32 %v863_v7, %v859_v25  ;;  %v3407_v10 = vrot.slane %v4812_v42, 9 }
 0x136   : > { %v865_v54 = vrot.slane %v864_v21, 4 }
 0x137   : > { %v2107_v62 = vpop.f32.mrf.mxu2 }
 0x138   : > { %v2108_v38 = vadd.f32 %v2107_v62, %v2019_v1  ;;  %v2196_v20 = vpop.f32.mrf.mxu3  ;;  %v1025_v1 = vrot.slane %v4841_v52, 5  ;;  %v1023_v52 = vsel %vm4225_vm5, %v3407_v10, %v1022_v18  ;;  %v1044_v18 = vshll.u32 %v4919_v44, 16 }
 0x139   : > { %v2021_v8 = vpop.f32.mrf.mxu1 }
 0x13a   : > { %v2197_v56 = vadd.f32 %v2196_v20, %v2108_v38  ;;  %v2022_v17 = vadd.f32 %v2021_v8, %v4477_v46  ;;  %v855_v46 = vrot.slane %v854_v24, 4  ;;  %v870_v38 = vsel %vm4219_vm4, %v865_v54, %v869_v26 }
 0x13b   : > { %v2288_v22 = vpop.f32.mrf.mxu0  ;;  %v1035_v20 = vshrl.u32 %v4916_v57, 16  ;;  %v1038_v8 = vshll.u32 %v4916_v57, 16  ;;  %v1046_v26 = vrot.slane %v1044_v18, 5 }
 0x13c   : > { %2060 = vmatmul.bf16.gmra.mxu1 %v4847_v3  ;;  %2149 = vmatmul.bf16.gmra.mxu2 %v4897_v2  ;;  %v4908_v34 = vadd.f32 %v2285_v43, %v2197_v56  ;;  %v1026_v43 = vsel %vm4225_vm5, %v1024_v29, %v1025_v1  ;;  %v860_v62 = vsel %vm4219_vm4, %v855_v46, %v859_v25  ;;  %v1048_v56 = vshrl.u32 %v4919_v44, 16 }
 0x13d   : > { %2238 = vmatmul.bf16.gmra.mxu3 %v4911_v63  ;;  %v1259_v10 = vunpack.c.l.b16 %v1026_v43  ;;  %v1196_v25 = vunpack.c.l.b16 %v860_v62  ;;  %v1197_v1 = vunpack.c.l.b16 %v870_v38  ;;  %v1037_v46 = vrot.slane %v1035_v20, 4 }
 0x13e   : > { %5366 = vst [vmem:[#allocation32_spill] sm:$0xff] %v4908_v34  ;;  %2327 = vmatmul.bf16.gmra.mxu0 %v4900_v11  ;;  %v1040_v54 = vrot.slane %v1038_v8, 5  ;;  %v4937_v34 = vld [vmem:[%s4049_s22 + $0xbc] sm:$0x1] }
 0x13f   : > { %v2110_v15 = vpop.f32.mrf.mxu2  ;;  %v4941_v44 = vpack.c.b16 %v1197_v1, %v1196_v25  ;;  %v1054_v8 = vshll.u32 %v4937_v34, 16 }
 0x140   : > { %v2111_v42 = vadd.f32 %v2110_v15, %v2022_v17  ;;  %v2199_v58 = vpop.f32.mrf.mxu3  ;;  %v1258_v17 = vunpack.c.l.b16 %v1023_v52  ;;  %v1050_v15 = vrot.slane %v1048_v56, 4  ;;  %v1041_v52 = vor.u32 %v1040_v54, %v1037_v46 }
 0x141   : > { %v2023_v7 = vpop.f32.mrf.mxu1 }
 0x142   : > { %v2200_v24 = vadd.f32 %v2199_v58, %v2111_v42  ;;  %v2024_v21 = vadd.f32 %v2023_v7, %v4509_v31  ;;  %v4939_v58 = vpack.c.b16 %v1259_v10, %v1258_v17  ;;  %v1051_v20 = vor.u32 %v1050_v15, %v1046_v26 }
 0x143   : > { %v2290_v33 = vpop.f32.mrf.mxu0  ;;  %v1042_v18 = vrot.slane %v1041_v52, 4  ;;  %v1056_v17 = vrot.slane %v1054_v8, 5 }
 0x144   : > { %v4934_v29 = vadd.f32 %v2288_v22, %v2200_v24  ;;  %v1029_v22 = vrot.slane %v4871_v30, 5  ;;  %v4951_v24 = vld [vmem:[%s4049_s22 + $0xa8] sm:$0xff]  ;;  %v3408_v30 = vrot.slane %v4868_v14, 9  ;;  %v1052_v56 = vrot.slane %v1051_v20, 4 }
 0x147   : > { %v2112_v57 = vpop.f32.mrf.mxu2 }
 0x148   : > { %v2113_v31 = vadd.f32 %v2112_v57, %v2024_v21  ;;  %v2201_v42 = vpop.f32.mrf.mxu3  ;;  %v1031_v21 = vrot.slane %v1029_v22, 4 }
 0x149   : > { %v2026_v7 = vpop.f32.mrf.mxu1 }
 0x14a   : > { %v2202_v43 = vadd.f32 %v2201_v42, %v2113_v31  ;;  %v2027_v62 = vadd.f32 %v2026_v7, %v4533_v49  ;;  %v1032_v49 = vrot.slane %v4895_v13, 5  ;;  %v1047_v13 = vsel %vm4219_vm4, %v1042_v18, %v1046_v26 }
 0x14b   : > { %v2293_v38 = vpop.f32.mrf.mxu0  ;;  %v1057_v42 = vsel %vm4219_vm4, %v1052_v56, %v1056_v17 }
 0x14c   : > { %2065 = vmatmul.bf16.gmra.mxu1 %v4900_v11  ;;  %2154 = vmatmul.bf16.gmra.mxu2 %v4939_v58  ;;  %v4948_v57 = vadd.f32 %v2290_v33, %v2202_v43  ;;  %v1030_v33 = vsel %vm4225_vm5, %v3408_v30, %v1029_v22  ;;  %v1033_v54 = vsel %vm4225_vm5, %v1031_v21, %v1032_v49  ;;  %v1299_v22 = vunpack.c.l.b16 %v1057_v42 }
 0x14d   : > { %2243 = vmatmul.bf16.gmra.mxu3 %v4951_v24  ;;  %v1260_v7 = vunpack.c.l.b16 %v1030_v33  ;;  %v1261_v52 = vunpack.c.l.b16 %v1033_v54 }
 0x14e   : > { %2332 = vmatmul.bf16.gmra.mxu0 %v4941_v44 }
 0x14f   : > { %v2115_v10 = vpop.f32.mrf.mxu2  ;;  %v4968_v21 = vpack.c.b16 %v1261_v52, %v1260_v7 }
 0x150   : > { %v2116_v25 = vadd.f32 %v2115_v10, %v2027_v62  ;;  %v2204_v1 = vpop.f32.mrf.mxu3  ;;  %v1298_v62 = vunpack.c.l.b16 %v1047_v13 }
 0x151   : > { %v2028_v46 = vpop.f32.mrf.mxu1 }
 0x152   : > { %v2205_v15 = vadd.f32 %v2204_v1, %v2116_v25  ;;  %v2029_v14 = vadd.f32 %v2028_v46, %v4574_v16  ;;  %v4971_v16 = vld [vmem:[%s4049_s22 + $0xb4] sm:$0xff]  ;;  %v4973_v10 = vpack.c.b16 %v1299_v22, %v1298_v62  ;;  %v3923_v22 = vld [vmem:[%s4049_s22 + $0xc] sm:$0xff] }
 0x153   : > { %v2295_v31 = vpop.f32.mrf.mxu0 }
 0x154   : > { %v4966_v43 = vadd.f32 %v2293_v38, %v2205_v15 }
 0x157   : > { %v2117_v20 = vpop.f32.mrf.mxu2 }
 0x158   : > { %v2118_v8 = vadd.f32 %v2117_v20, %v2029_v14  ;;  %v2206_v30 = vpop.f32.mrf.mxu3 }
 0x159   : > { %v2031_v49 = vpop.f32.mrf.mxu1 }
 0x15a   : > { %v2207_v26 = vadd.f32 %v2206_v30, %v2118_v8  ;;  %v2032_v18 = vadd.f32 %v2031_v49, %v4600_v5 }
 0x15b   : > { %v2298_v56 = vpop.f32.mrf.mxu0 }
 0x15c   : > { %2070 = vmatmul.bf16.gmra.mxu1 %v4941_v44  ;;  %2159 = vmatmul.bf16.gmra.mxu2 %v4968_v21  ;;  %v4978_v38 = vadd.f32 %v2295_v31, %v2207_v26 }
 0x15d   : > { %2248 = vmatmul.bf16.gmra.mxu3 %v4971_v16 }
 0x15e   : > { %2337 = vmatmul.bf16.gmra.mxu0 %v4973_v10 }
 0x15f   : > { %v2120_v17 = vpop.f32.mrf.mxu2 }
 0x160   : > { %v2121_v25 = vadd.f32 %v2120_v17, %v2032_v18  ;;  %v2209_v1 = vpop.f32.mrf.mxu3 }
 0x161   : > { %v2033_v46 = vpop.f32.mrf.mxu1 }
 0x162   : > { %v2210_v33 = vadd.f32 %v2209_v1, %v2121_v25  ;;  %v2034_v54 = vadd.f32 %v2033_v46, %v4632_v4 }
 0x163   : > { %v2300_v5 = vpop.f32.mrf.mxu0 }
 0x164   : > { %v4983_v15 = vadd.f32 %v2298_v56, %v2210_v33 }
 0x167   : > { %v2122_v14 = vpop.f32.mrf.mxu2 }
 0x168   : > { %v2123_v13 = vadd.f32 %v2122_v14, %v2034_v54  ;;  %v2211_v42 = vpop.f32.mrf.mxu3  ;;  %v3924_v54 = vld [vmem:[%s4049_s22 + $0x18] sm:$0xff] }
 0x169   : > { %v2036_v31 = vpop.f32.mrf.mxu1 }
 0x16a   : > { %v2212_v7 = vadd.f32 %v2211_v42, %v2123_v13  ;;  %v2037_v52 = vadd.f32 %v2036_v31, %v4434_v41 }
 0x16b   : > { %v2303_v62 = vpop.f32.mrf.mxu0 }
 0x16c   : > { %2351 = vmatmul.bf16.vlgmr.msra.gmra.mxu1 %v4291_v61  ;;  %2440 = vmatmul.bf16.vlgmr.msra.gmra.mxu2 %v3923_v22  ;;  %v4988_v20 = vadd.f32 %v2300_v5, %v2212_v7 }
 0x16d   : > { %2529 = vmatmul.bf16.vlgmr.msra.gmra.mxu3 %v4294_v0 }
 0x16e   : > { %2618 = vmatmul.bf16.vlgmr.msra.gmra.mxu0 %v4323_v12 }
 0x16f   : > { %v2125_v4 = vpop.f32.mrf.mxu2 }
 0x170   : > { %v2126_v8 = vadd.f32 %v2125_v4, %v2037_v52  ;;  %v2214_v30 = vpop.f32.mrf.mxu3 }
 0x171   : > { %v2038_v49 = vpop.f32.mrf.mxu1 }
 0x172   : > { %v2215_v26 = vadd.f32 %v2214_v30, %v2126_v8  ;;  %v2039_v18 = vadd.f32 %v2038_v49, %v4467_v47  ;;  %v3925_v49 = vld [vmem:[%s4049_s22 + $0x24] sm:$0xff] }
 0x173   : > { %v2305_v41 = vpop.f32.mrf.mxu0 }
 0x174   : > { %v4993_v56 = vadd.f32 %v2303_v62, %v2215_v26 }
 0x177   : > { %v2127_v61 = vpop.f32.mrf.mxu2 }
 0x178   : > { %v2128_v17 = vadd.f32 %v2127_v61, %v2039_v18  ;;  %v2216_v25 = vpop.f32.mrf.mxu3 }
 0x179   : > { %v2041_v1 = vpop.f32.mrf.mxu1 }
 0x17a   : > { %v2217_v46 = vadd.f32 %v2216_v25, %v2128_v17  ;;  %v2042_v0 = vadd.f32 %v2041_v1, %v4500_v23 }
 0x17b   : > { %v2308_v33 = vpop.f32.mrf.mxu0 }
 0x17c   : > { %2356 = vmatmul.bf16.gmra.mxu1 %v4323_v12  ;;  %2445 = vmatmul.bf16.gmra.mxu2 %v3924_v54  ;;  %v4998_v5 = vadd.f32 %v2305_v41, %v2217_v46 }
 0x17d   : > { %2534 = vmatmul.bf16.gmra.mxu3 %v4325_v36 }
 0x17e   : > { %2623 = vmatmul.bf16.gmra.mxu0 %v4367_v51 }
 0x17f   : > { %v2130_v47 = vpop.f32.mrf.mxu2 }
 0x180   : > { %v2131_v14 = vadd.f32 %v2130_v47, %v2042_v0  ;;  %v2219_v13 = vpop.f32.mrf.mxu3 }
 0x181   : > { %v2043_v42 = vpop.f32.mrf.mxu1 }
 0x182   : > { %v2220_v31 = vadd.f32 %v2219_v13, %v2131_v14  ;;  %v2044_v7 = vadd.f32 %v2043_v42, %v4524_v40  ;;  %v3926_v14 = vld [vmem:[%s4049_s22 + $0x30] sm:$0xff]  ;;  %v5369_v42 = vld [vmem:[#allocation3_spill] sm:$0xff] }
 0x183   : > { %v2310_v23 = vpop.f32.mrf.mxu0 }
 0x184   : > { %v5003_v52 = vadd.f32 %v2308_v33, %v2220_v31 }
 0x187   : > { %v2132_v12 = vpop.f32.mrf.mxu2 }
 0x188   : > { %v2133_v62 = vadd.f32 %v2132_v12, %v2044_v7  ;;  %v2221_v22 = vpop.f32.mrf.mxu3 }
 0x189   : > { %v2046_v4 = vpop.f32.mrf.mxu1 }
 0x18a   : > { %v2222_v8 = vadd.f32 %v2221_v22, %v2133_v62  ;;  %v2047_v36 = vadd.f32 %v2046_v4, %v4560_v39  ;;  %v5371_v22 = vld [vmem:[#allocation17_spill] sm:$0xff] }
 0x18b   : > { %v2313_v30 = vpop.f32.mrf.mxu0 }
 0x18c   : > { %2361 = vmatmul.bf16.gmra.mxu1 %v4367_v51  ;;  %2450 = vmatmul.bf16.gmra.mxu2 %v3925_v49  ;;  %v5008_v26 = vadd.f32 %v2310_v23, %v2222_v8 }
 0x18d   : > { %2539 = vmatmul.bf16.gmra.mxu3 %v4370_v19 }
 0x18e   : > { %2628 = vmatmul.bf16.gmra.mxu0 %v4404_v53 }
 0x18f   : > { %v2135_v40 = vpop.f32.mrf.mxu2 }
 0x190   : > { %v2136_v18 = vadd.f32 %v2135_v40, %v2047_v36  ;;  %v2224_v41 = vpop.f32.mrf.mxu3 }
 0x191   : > { %v2048_v61 = vpop.f32.mrf.mxu1 }
 0x192   : > { %v2225_v17 = vadd.f32 %v2224_v41, %v2136_v18  ;;  %v2049_v25 = vadd.f32 %v2048_v61, %v4588_v9  ;;  %v5370_v9 = vld [vmem:[#allocation5_spill] sm:$0xff]  ;;  %v5372_v18 = vld [vmem:[#allocation4_spill] sm:$0xff] }
 0x193   : > { %v2315_v39 = vpop.f32.mrf.mxu0 }
 0x194   : > { %v5013_v1 = vadd.f32 %v2313_v30, %v2225_v17  ;;  %v3927_v17 = vld [vmem:[%s4049_s22 + $0x3c] sm:$0xff] }
 0x197   : > { %v2137_v51 = vpop.f32.mrf.mxu2 }
 0x198   : > { %v2138_v46 = vadd.f32 %v2137_v51, %v2049_v25  ;;  %v2226_v0 = vpop.f32.mrf.mxu3  ;;  %v5374_v51 = vld [vmem:[#allocation9_spill] sm:$0xff] }
 0x199   : > { %v2051_v33 = vpop.f32.mrf.mxu1 }
 0x19a   : > { %v2227_v54 = vadd.f32 %v2226_v0, %v2138_v46  ;;  %v2052_v19 = vadd.f32 %v2051_v33, %v4617_v32 }
 0x19b   : > { %v2318_v47 = vpop.f32.mrf.mxu0 }
 0x19c   : > { %2366 = vmatmul.bf16.gmra.mxu1 %v4404_v53  ;;  %2455 = vmatmul.bf16.gmra.mxu2 %v3926_v14  ;;  %v5018_v13 = vadd.f32 %v2315_v39, %v2227_v54  ;;  %v5373_v39 = vld [vmem:[#allocation7_spill] sm:$0xff] }
 0x19d   : > { %2544 = vmatmul.bf16.gmra.mxu3 %v5369_v42 }
 0x19e   : > { %2633 = vmatmul.bf16.gmra.mxu0 %v5370_v9 }
 0x19f   : > { %v2140_v31 = vpop.f32.mrf.mxu2 }
 0x1a0   : > { %v2141_v7 = vadd.f32 %v2140_v31, %v2052_v19  ;;  %v2229_v23 = vpop.f32.mrf.mxu3 }
 0x1a1   : > { %v2053_v12 = vpop.f32.mrf.mxu1 }
 0x1a2   : > { %v2230_v62 = vadd.f32 %v2229_v23, %v2141_v7  ;;  %v2054_v4 = vadd.f32 %v2053_v12, %v5371_v22  ;;  %v5376_v22 = vld [vmem:[#allocation8_spill] sm:$0xff] }
 0x1a3   : > { %v2320_v32 = vpop.f32.mrf.mxu0 }
 0x1a4   : > { %v5023_v8 = vadd.f32 %v2318_v47, %v2230_v62  ;;  %v5375_v47 = vld [vmem:[#allocation6_spill] sm:$0xff] }
 0x1a7   : > { %v2142_v53 = vpop.f32.mrf.mxu2 }
 0x1a8   : > { %v2143_v36 = vadd.f32 %v2142_v53, %v2054_v4  ;;  %v2231_v30 = vpop.f32.mrf.mxu3  ;;  %v3928_v53 = vld [vmem:[%s4049_s22 + $0x48] sm:$0xff] }
 0x1a9   : > { %v2056_v49 = vpop.f32.mrf.mxu1 }
 0x1aa   : > { %v2232_v40 = vadd.f32 %v2231_v30, %v2143_v36  ;;  %v2057_v41 = vadd.f32 %v2056_v49, %v5372_v18  ;;  %v5377_v30 = vld [vmem:[#allocation11_spill] sm:$0xff]  ;;  %v5378_v49 = vld [vmem:[#allocation13_spill] sm:$0xff] }
 0x1ab   : > { %v2323_v61 = vpop.f32.mrf.mxu0 }
 0x1ac   : > { %2371 = vmatmul.bf16.gmra.mxu1 %v5370_v9  ;;  %2460 = vmatmul.bf16.gmra.mxu2 %v3927_v17  ;;  %v5028_v25 = vadd.f32 %v2320_v32, %v2232_v40 }
 0x1ad   : > { %2549 = vmatmul.bf16.gmra.mxu3 %v5373_v39  ;;  %v5379_v39 = vld [vmem:[#allocation10_spill] sm:$0xff] }
 0x1ae   : > { %2638 = vmatmul.bf16.gmra.mxu0 %v5374_v51 }
 0x1af   : > { %v2145_v46 = vpop.f32.mrf.mxu2 }
 0x1b0   : > { %v2146_v0 = vadd.f32 %v2145_v46, %v2057_v41  ;;  %v2234_v33 = vpop.f32.mrf.mxu3 }
 0x1b1   : > { %v2058_v54 = vpop.f32.mrf.mxu1 }
 0x1b2   : > { %v2235_v19 = vadd.f32 %v2234_v33, %v2146_v0  ;;  %v2059_v14 = vadd.f32 %v2058_v54, %v5375_v47 }
 0x1b3   : > { %v2325_v42 = vpop.f32.mrf.mxu0 }
 0x1b4   : > { %v5033_v31 = vadd.f32 %v2323_v61, %v2235_v19 }
 0x1b7   : > { %v2147_v9 = vpop.f32.mrf.mxu2 }
 0x1b8   : > { %v2148_v7 = vadd.f32 %v2147_v9, %v2059_v14  ;;  %v2236_v23 = vpop.f32.mrf.mxu3 }
 0x1b9   : > { %v2061_v12 = vpop.f32.mrf.mxu1 }
 0x1ba   : > { %v2237_v62 = vadd.f32 %v2236_v23, %v2148_v7  ;;  %v2062_v4 = vadd.f32 %v2061_v12, %v5376_v22  ;;  %v3929_v23 = vld [vmem:[%s4049_s22 + $0x54] sm:$0xff]  ;;  %v5382_v22 = vld [vmem:[#allocation18_spill] sm:$0xff] }
 0x1bb   : > { %v2328_v32 = vpop.f32.mrf.mxu0 }
 0x1bc   : > { %2376 = vmatmul.bf16.gmra.mxu1 %v5374_v51  ;;  %2465 = vmatmul.bf16.gmra.mxu2 %v3928_v53  ;;  %v5038_v36 = vadd.f32 %v2325_v42, %v2237_v62  ;;  %v5380_v42 = vld [vmem:[#allocation12_spill] sm:$0xff]  ;;  %v5381_v62 = vld [vmem:[#allocation14_spill] sm:$0xff] }
 0x1bd   : > { %2554 = vmatmul.bf16.gmra.mxu3 %v5377_v30 }
 0x1be   : > { %2643 = vmatmul.bf16.gmra.mxu0 %v5378_v49 }
 0x1bf   : > { %v2150_v40 = vpop.f32.mrf.mxu2 }
 0x1c0   : > { %v2151_v18 = vadd.f32 %v2150_v40, %v2062_v4  ;;  %v2239_v41 = vpop.f32.mrf.mxu3 }
 0x1c1   : > { %v2063_v61 = vpop.f32.mrf.mxu1 }
 0x1c2   : > { %v2240_v17 = vadd.f32 %v2239_v41, %v2151_v18  ;;  %v2064_v46 = vadd.f32 %v2063_v61, %v5379_v39  ;;  %v5383_v18 = vld [vmem:[#allocation15_spill] sm:$0xff] }
 0x1c3   : > { %v2330_v0 = vpop.f32.mrf.mxu0 }
 0x1c4   : > { %v5043_v33 = vadd.f32 %v2328_v32, %v2240_v17 }
 0x1c7   : > { %v2152_v51 = vpop.f32.mrf.mxu2 }
 0x1c8   : > { %v2153_v54 = vadd.f32 %v2152_v51, %v2064_v46  ;;  %v2241_v19 = vpop.f32.mrf.mxu3 }
 0x1c9   : > { %v2066_v47 = vpop.f32.mrf.mxu1 }
 0x1ca   : > { %v2242_v14 = vadd.f32 %v2241_v19, %v2153_v54  ;;  %v2067_v9 = vadd.f32 %v2066_v47, %v5380_v42  ;;  %v5384_v54 = vld [vmem:[#allocation16_spill] sm:$0xff] }
 0x1cb   : > { %v2333_v7 = vpop.f32.mrf.mxu0 }
 0x1cc   : > { %2381 = vmatmul.bf16.gmra.mxu1 %v5378_v49  ;;  %2470 = vmatmul.bf16.gmra.mxu2 %v3929_v23  ;;  %v5048_v12 = vadd.f32 %v2330_v0, %v2242_v14  ;;  %v3930_v14 = vld [vmem:[%s4049_s22 + $0x60] sm:$0xff] }
 0x1cd   : > { %2559 = vmatmul.bf16.gmra.mxu3 %v5381_v62  ;;  %v5386_v23 = vld [vmem:[#allocation22_spill] sm:$0xff] }
 0x1ce   : > { %2648 = vmatmul.bf16.gmra.mxu0 %v5382_v22 }
 0x1cf   : > { %v2155_v4 = vpop.f32.mrf.mxu2 }
 0x1d0   : > { %v2156_v32 = vadd.f32 %v2155_v4, %v2067_v9  ;;  %v2244_v53 = vpop.f32.mrf.mxu3  ;;  %v5385_v9 = vld [vmem:[#allocation20_spill] sm:$0xff] }
 0x1d1   : > { %v2068_v30 = vpop.f32.mrf.mxu1 }
 0x1d2   : > { %v2245_v40 = vadd.f32 %v2244_v53, %v2156_v32  ;;  %v2069_v41 = vadd.f32 %v2068_v30, %v5383_v18  ;;  %v5387_v30 = vld [vmem:[#allocation19_spill] sm:$0xff] }
 0x1d3   : > { %v2335_v61 = vpop.f32.mrf.mxu0 }
 0x1d4   : > { %v5053_v17 = vadd.f32 %v2333_v7, %v2245_v40 }
 0x1d7   : > { %v2157_v49 = vpop.f32.mrf.mxu2 }
 0x1d8   : > { %v2158_v39 = vadd.f32 %v2157_v49, %v2069_v41  ;;  %v2246_v46 = vpop.f32.mrf.mxu3 }
 0x1d9   : > { %v2071_v0 = vpop.f32.mrf.mxu1 }
 0x1da   : > { %v2247_v51 = vadd.f32 %v2246_v46, %v2158_v39  ;;  %v2072_v19 = vadd.f32 %v2071_v0, %v5384_v54 }
 0x1db   : > { %v2338_v47 = vpop.f32.mrf.mxu0 }
 0x1dc   : > { %2386 = vmatmul.bf16.gmra.mxu1 %v5382_v22  ;;  %2475 = vmatmul.bf16.gmra.mxu2 %v3930_v14  ;;  %v5058_v42 = vadd.f32 %v2335_v61, %v2247_v51  ;;  %v5388_v51 = vld [vmem:[#allocation24_spill] sm:$0xff] }
 0x1dd   : > { %2564 = vmatmul.bf16.gmra.mxu3 %v5385_v9 }
 0x1de   : > { %2653 = vmatmul.bf16.gmra.mxu0 %v5386_v23 }
 0x1df   : > { %v2160_v7 = vpop.f32.mrf.mxu2 }
 0x1e0   : > { %v2161_v62 = vadd.f32 %v2160_v7, %v2072_v19  ;;  %v2249_v4 = vpop.f32.mrf.mxu3  ;;  %v5390_v19 = vld [vmem:[#allocation21_spill] sm:$0xff] }
 0x1e1   : > { %v2073_v32 = vpop.f32.mrf.mxu1 }
 0x1e2   : > { %v2250_v53 = vadd.f32 %v2249_v4, %v2161_v62  ;;  %v2074_v40 = vadd.f32 %v2073_v32, %v5387_v30  ;;  %v5391_v30 = vld [vmem:[#allocation23_spill] sm:$0xff] }
 0x1e3   : > { %v2340_v18 = vpop.f32.mrf.mxu0 }
 0x1e4   : > { %v5063_v41 = vadd.f32 %v2338_v47, %v2250_v53 }
 0x1e7   : > { %v2162_v49 = vpop.f32.mrf.mxu2 }
 0x1e8   : > { %v2163_v22 = vadd.f32 %v2162_v49, %v2074_v40  ;;  %v2251_v39 = vpop.f32.mrf.mxu3 }
 0x1e9   : > { %v2352_v46 = vpop.f32.mrf.mxu1 }
 0x1ea   : > { %v2252_v61 = vadd.f32 %v2251_v39, %v2163_v22  ;;  %v2353_v14 = vadd.f32 %v2352_v46, %v5390_v19  ;;  %v5392_v46 = vld [vmem:[#allocation28_spill] sm:$0xff] }
 0x1eb   : > { %v2619_v0 = vpop.f32.mrf.mxu0 }
 0x1ec   : > { %2391 = vmatmul.bf16.gmra.mxu1 %v5386_v23  ;;  %2480 = vmatmul.bf16.gmra.mxu2 %v5388_v51  ;;  %v5067_v54 = vadd.f32 %v2340_v18, %v2252_v61 }
 0x1ed   : > { %2569 = vmatmul.bf16.gmra.mxu3 %v4705_v60 }
 0x1ee   : > { %5389 = vst [vmem:[#allocation3_spill] sm:$0xff] %v5067_v54  ;;  %2658 = vmatmul.bf16.gmra.mxu0 %v4745_v27 }
 0x1ef   : > { %v2441_v47 = vpop.f32.mrf.mxu2 }
 0x1f0   : > { %v2442_v9 = vadd.f32 %v2441_v47, %v2353_v14  ;;  %v2530_v7 = vpop.f32.mrf.mxu3  ;;  %v5393_v14 = vld [vmem:[#allocation25_spill] sm:$0xff] }
 0x1f1   : > { %v2354_v62 = vpop.f32.mrf.mxu1 }
 0x1f2   : > { %v2531_v4 = vadd.f32 %v2530_v7, %v2442_v9  ;;  %v2355_v40 = vadd.f32 %v2354_v62, %v5391_v30 }
 0x1f3   : > { %v2621_v32 = vpop.f32.mrf.mxu0 }
 0x1f4   : > { %v2620_v53 = vadd.f32 %v2619_v0, %v2531_v4 }
 0x1f6   : > { %v2699_v39 = vmax.f32 %v2620_v53, 0.0 }
 0x1f7   : > { %v2443_v23 = vpop.f32.mrf.mxu2 }
 0x1f8   : > { %v2444_v49 = vadd.f32 %v2443_v23, %v2355_v40  ;;  %v2532_v22 = vpop.f32.mrf.mxu3  ;;  %v2731_v19 = vpack.c.bf16 %v2699_v39, %v2699_v39 }
 0x1f9   : > { %v2357_v18 = vpop.f32.mrf.mxu1 }
 0x1fa   : > { %v2533_v61 = vadd.f32 %v2532_v22, %v2444_v49  ;;  %v2358_v47 = vadd.f32 %v2357_v18, %v5393_v14  ;;  %v2795_v30 = vunpack.c.l.b16 %v2731_v19  ;;  %v5394_v49 = vld [vmem:[#allocation26_spill] sm:$0xff] }
 0x1fb   : > { %v2624_v60 = vpop.f32.mrf.mxu0 }
 0x1fc   : > { %v2622_v51 = vadd.f32 %v2621_v32, %v2533_v61  ;;  %2396 = vmatmul.bf16.gmra.mxu1 %v4745_v27  ;;  %2485 = vmatmul.bf16.gmra.mxu2 %v4758_v6 }
 0x1fd   : > { %2574 = vmatmul.bf16.gmra.mxu3 %v4748_v28 }
 0x1fe   : > { %2663 = vmatmul.bf16.gmra.mxu0 %v5392_v46  ;;  %v2700_v0 = vmax.f32 %v2622_v51, 0.0 }
 0x1ff   : > { %v2446_v9 = vpop.f32.mrf.mxu2 }
 0x200   : > { %v2732_v7 = vpack.c.bf16 %v2700_v0, %v2700_v0  ;;  %v2447_v62 = vadd.f32 %v2446_v9, %v2358_v47  ;;  %v2535_v4 = vpop.f32.mrf.mxu3 }
 0x201   : > { %v2359_v53 = vpop.f32.mrf.mxu1 }
 0x202   : > { %v2796_v40 = vunpack.c.l.b16 %v2732_v7  ;;  %v2536_v32 = vadd.f32 %v2535_v4, %v2447_v62  ;;  %v2360_v22 = vadd.f32 %v2359_v53, %v5394_v49 }
 0x203   : > { %v2626_v23 = vpop.f32.mrf.mxu0 }
 0x204   : > { %v2827_v27 = vpack.c.b16 %v2796_v40, %v2795_v30  ;;  %v2625_v28 = vadd.f32 %v2624_v60, %v2536_v32  ;;  %v5397_v40 = vld [vmem:[#allocation30_spill] sm:$0xff] }
 0x206   : > { %v2844_v6 = vshrl.u32 %v2827_v27, 16  ;;  %v2847_v51 = vshll.u32 %v2827_v27, 16  ;;  %v2701_v7 = vmax.f32 %v2625_v28, 0.0 }
 0x207   : > { %v2448_v18 = vpop.f32.mrf.mxu2 }
 0x208   : > { %v2846_v61 = vrot.slane %v2844_v6, 7  ;;  %v2449_v0 = vadd.f32 %v2448_v18, %v2360_v22  ;;  %v2537_v19 = vpop.f32.mrf.mxu3  ;;  %v2733_v28 = vpack.c.bf16 %v2701_v7, %v2701_v7  ;;  %v5398_v22 = vld [vmem:[#allocation27_spill] sm:$0xff] }
 0x209   : > { %v2362_v14 = vpop.f32.mrf.mxu1 }
 0x20a   : > { %v2849_v47 = vor.u32 %v2847_v51, %v2846_v61  ;;  %v3006_v9 = vsel %vm5079_vm8, %v2846_v61, 0  ;;  %v2538_v62 = vadd.f32 %v2537_v19, %v2449_v0  ;;  %v2363_v18 = vadd.f32 %v2362_v14, %v5398_v22 }
 0x20b   : > { %v2629_v4 = vpop.f32.mrf.mxu0  ;;  %v3056_v60 = vunpack.c.l.b16 %v3006_v9  ;;  %v2797_v9 = vunpack.c.l.b16 %v2733_v28 }
 0x20c   : > { %v2990_v53 = vsel %vm5079_vm8, 0, %v2849_v47  ;;  %v2627_v30 = vadd.f32 %v2626_v23, %v2538_v62  ;;  %2401 = vmatmul.bf16.gmra.mxu1 %v5392_v46  ;;  %2490 = vmatmul.bf16.gmra.mxu2 %v5397_v40 }
 0x20d   : > { %v3054_v32 = vunpack.c.l.b16 %v2990_v53  ;;  %v3055_v27 = vunpack.c.h.b16 %v2990_v53  ;;  %v3104_v6 = vpack.c.b16 %v3056_v60, %v3056_v60  ;;  %2579 = vmatmul.bf16.gmra.mxu3 %v4804_v59 }
 0x20e   : > { %2668 = vmatmul.bf16.gmra.mxu0 %v4843_v37  ;;  %v2702_v49 = vmax.f32 %v2627_v30, 0.0  ;;  %v5399_v30 = vld [vmem:[#allocation29_spill] sm:$0xff] }
 0x20f   : > { %v3102_v61 = vpack.c.b16 %v3054_v32, %v3054_v32  ;;  %v3103_v51 = vpack.c.b16 %v3055_v27, %v3055_v27  ;;  %3200 = vst [vmem:[%s5089_s13 + $0x8] sm:$0x1] %v3104_v6  ;;  %v2451_v23 = vpop.f32.mrf.mxu2 }
 0x210   : > { %v2734_v46 = vpack.c.bf16 %v2702_v49, %v2702_v49  ;;  %v2452_v0 = vadd.f32 %v2451_v23, %v2363_v18  ;;  %v2540_v19 = vpop.f32.mrf.mxu3 }
 0x211   : > { %3198 = vst [vmem:[%s5089_s13] sm:$0xf] %v3102_v61  ;;  %v2364_v47 = vpop.f32.mrf.mxu1 }
 0x212   : > { %3199 = vst [vmem:[%s5089_s13 + $0x4] sm:$0xf] %v3103_v51  ;;  %v2798_v62 = vunpack.c.l.b16 %v2734_v46  ;;  %v2541_v60 = vadd.f32 %v2540_v19, %v2452_v0  ;;  %v2365_v54 = vadd.f32 %v2364_v47, %v5399_v30 }
 0x213   : > { %v2631_v59 = vpop.f32.mrf.mxu0 }
 0x214   : > { %v2828_v53 = vpack.c.b16 %v2798_v62, %v2797_v9  ;;  %v2630_v7 = vadd.f32 %v2629_v4, %v2541_v60 }
 0x216   : > { %v2851_v40 = vshrl.u32 %v2828_v53, 16  ;;  %v2854_v27 = vshll.u32 %v2828_v53, 16  ;;  %v2703_v51 = vmax.f32 %v2630_v7, 0.0 }
 0x217   : > { %v2453_v14 = vpop.f32.mrf.mxu2 }
 0x218   : > { %v2853_v32 = vrot.slane %v2851_v40, 7  ;;  %v2454_v6 = vadd.f32 %v2453_v14, %v2365_v54  ;;  %v2542_v22 = vpop.f32.mrf.mxu3  ;;  %v2735_v9 = vpack.c.bf16 %v2703_v51, %v2703_v51 }
 0x219   : > { %v2367_v49 = vpop.f32.mrf.mxu1 }
 0x21a   : > { %v2856_v18 = vor.u32 %v2854_v27, %v2853_v32  ;;  %v3007_v61 = vsel %vm5079_vm8, %v2853_v32, 0  ;;  %v2543_v28 = vadd.f32 %v2542_v22, %v2454_v6  ;;  %v2368_v60 = vadd.f32 %v2367_v49, %v4838_v55 }
 0x21b   : > { %v2634_v23 = vpop.f32.mrf.mxu0  ;;  %v3059_v46 = vunpack.c.l.b16 %v3007_v61  ;;  %v2799_v14 = vunpack.c.l.b16 %v2735_v9  ;;  %v5400_v61 = vld [vmem:[#allocation31_spill] sm:$0xff] }
 0x21c   : > { %v2991_v4 = vsel %vm5079_vm8, 0, %v2856_v18  ;;  %v2632_v0 = vadd.f32 %v2631_v59, %v2543_v28  ;;  %2406 = vmatmul.bf16.gmra.mxu1 %v4843_v37  ;;  %2495 = vmatmul.bf16.gmra.mxu2 %v4857_v35 }
 0x21d   : > { %v3057_v54 = vunpack.c.l.b16 %v2991_v4  ;;  %v3058_v19 = vunpack.c.h.b16 %v2991_v4  ;;  %v3107_v47 = vpack.c.b16 %v3059_v46, %v3059_v46  ;;  %2584 = vmatmul.bf16.gmra.mxu3 %v4847_v3 }
 0x21e   : > { %2673 = vmatmul.bf16.gmra.mxu0 %v4897_v2  ;;  %v2704_v62 = vmax.f32 %v2632_v0, 0.0 }
 0x21f   : > { %v3105_v53 = vpack.c.b16 %v3057_v54, %v3057_v54  ;;  %v3106_v40 = vpack.c.b16 %v3058_v19, %v3058_v19  ;;  %3203 = vst [vmem:[%s5089_s13 + $0x14] sm:$0x1] %v3107_v47  ;;  %v2456_v59 = vpop.f32.mrf.mxu2 }
 0x220   : > { %v2736_v37 = vpack.c.bf16 %v2704_v62, %v2704_v62  ;;  %v2457_v7 = vadd.f32 %v2456_v59, %v2368_v60  ;;  %v2545_v35 = vpop.f32.mrf.mxu3 }
 0x221   : > { %3201 = vst [vmem:[%s5089_s13 + $0xc] sm:$0xf] %v3105_v53  ;;  %v2369_v30 = vpop.f32.mrf.mxu1 }
 0x222   : > { %3202 = vst [vmem:[%s5089_s13 + $0x10] sm:$0xf] %v3106_v40  ;;  %v2800_v32 = vunpack.c.l.b16 %v2736_v37  ;;  %v2546_v27 = vadd.f32 %v2545_v35, %v2457_v7  ;;  %v2370_v55 = vadd.f32 %v2369_v30, %v5400_v61 }
 0x223   : > { %v2636_v3 = vpop.f32.mrf.mxu0 }
 0x224   : > { %v2829_v6 = vpack.c.b16 %v2800_v32, %v2799_v14  ;;  %v2635_v18 = vadd.f32 %v2634_v23, %v2546_v27 }
 0x226   : > { %v2858_v22 = vshrl.u32 %v2829_v6, 16  ;;  %v2861_v28 = vshll.u32 %v2829_v6, 16  ;;  %v2705_v47 = vmax.f32 %v2635_v18, 0.0  ;;  %v3860_v6 = vld [vmem:[%s377_s16] sm:$0xff]  }
 0x227   : > { %v2458_v49 = vpop.f32.mrf.mxu2 }
 0x228   : > { %v2860_v51 = vrot.slane %v2858_v22, 7  ;;  %v2459_v46 = vadd.f32 %v2458_v49, %v2370_v55  ;;  %v2547_v4 = vpop.f32.mrf.mxu3  ;;  %v2737_v7 = vpack.c.bf16 %v2705_v47, %v2705_v47  ;;  %v3861_v49 = vunpack.c.l.bf16 %v3860_v6  ;;  %v5402_v47 = vld [vmem:[#allocation34_spill] sm:$0xff] }
 0x229   : > { %v2372_v0 = vpop.f32.mrf.mxu1 }
 0x22a   : > { %v2863_v54 = vor.u32 %v2861_v28, %v2860_v51  ;;  %v3008_v19 = vsel %vm5079_vm8, %v2860_v51, 0  ;;  %v2548_v9 = vadd.f32 %v2547_v4, %v2459_v46  ;;  %v2373_v30 = vadd.f32 %v2372_v0, %v4892_v48  ;;  %v5401_v4 = vld [vmem:[#allocation32_spill] sm:$0xff] }
 0x22b   : > { %v2639_v62 = vpop.f32.mrf.mxu0  ;;  %v3062_v60 = vunpack.c.l.b16 %v3008_v19  ;;  %v2801_v22 = vunpack.c.l.b16 %v2737_v7  ;;  %v3862_v28 = vunpack.c.h.bf16 %v3860_v6 }
 0x22c   : > { %v2992_v23 = vsel %vm5079_vm8, 0, %v2863_v54  ;;  %v2637_v53 = vadd.f32 %v2636_v3, %v2548_v9  ;;  %2411 = vmatmul.bf16.gmra.mxu1 %v4897_v2  ;;  %2500 = vmatmul.bf16.gmra.mxu2 %v4911_v63  ;;  %v474_v54 = vld [vmem:[%s377_s16 + $0x8] sm:$0x1]  ;;  %v1063_v9 = vrot.slane %v5402_v47, 5 }
 0x22d   : > { %v3060_v40 = vunpack.c.l.b16 %v2992_v23  ;;  %v3061_v59 = vunpack.c.h.b16 %v2992_v23  ;;  %v3110_v37 = vpack.c.b16 %v3062_v60, %v3062_v60  ;;  %2589 = vmatmul.bf16.gmra.mxu3 %v4900_v11  ;;  %v5403_v60 = vld [vmem:[#allocation2_spill] sm:$0xff] }
 0x22e   : > { %2678 = vmatmul.bf16.gmra.mxu0 %v4939_v58  ;;  %v2706_v35 = vmax.f32 %v2637_v53, 0.0  ;;  %v478_v23 = vmul.f32 %v3861_v49, %v5403_v60  ;;  %v479_v7 = vmul.f32 %v3862_v28, %v5403_v60 }
 0x22f   : > { %v3108_v2 = vpack.c.b16 %v3060_v40, %v3060_v40  ;;  %v3109_v14 = vpack.c.b16 %v3061_v59, %v3061_v59  ;;  %3206 = vst [vmem:[%s5089_s13 + $0x20] sm:$0x1] %v3110_v37  ;;  %v2461_v63 = vpop.f32.mrf.mxu2 }
 0x230   : > { %v2738_v32 = vpack.c.bf16 %v2706_v35, %v2706_v35  ;;  %v2462_v27 = vadd.f32 %v2461_v63, %v2373_v30  ;;  %v2550_v3 = vpop.f32.mrf.mxu3  ;;  %v477_v30 = vunpack.c.l.bf16 %v474_v54  ;;  %v5144_v49 = vpack.c.bf16 %v479_v7, %v479_v7 }
 0x231   : > { %3204 = vst [vmem:[%s5089_s13 + $0x18] sm:$0xf] %v3108_v2  ;;  %v2374_v11 = vpop.f32.mrf.mxu1 }
 0x232   : > { %3205 = vst [vmem:[%s5089_s13 + $0x1c] sm:$0xf] %v3109_v14  ;;  %v2802_v18 = vunpack.c.l.b16 %v2738_v32  ;;  %v2551_v61 = vadd.f32 %v2550_v3, %v2462_v27  ;;  %v2375_v0 = vadd.f32 %v2374_v11, %v5401_v4  ;;  %v5404_v3 = vld [vmem:[#allocation33_spill] sm:$0xff]  ;;  %v5138_v11 = vpack.c.bf16 %v478_v23, %v478_v23 }
 0x233   : > { %v2641_v55 = vpop.f32.mrf.mxu0  ;;  %v3409_v6 = vrot.slane %v5404_v3, 9 }
 0x234   : > { %v2830_v51 = vpack.c.b16 %v2802_v18, %v2801_v22  ;;  %v2640_v48 = vadd.f32 %v2639_v62, %v2551_v61  ;;  %v1065_v61 = vrot.slane %v1063_v9, 4  ;;  %v1069_v47 = vshrl.u32 %v5138_v11, 16 }
 0x236   : > { %v2865_v46 = vshrl.u32 %v2830_v51, 16  ;;  %v2868_v40 = vshll.u32 %v2830_v51, 16  ;;  %v2707_v14 = vmax.f32 %v2640_v48, 0.0  ;;  %v1066_v48 = vrot.slane %v4937_v34, 5 }
 0x237   : > { %v2463_v19 = vpop.f32.mrf.mxu2  ;;  %v1078_v34 = vshll.u32 %v5144_v49, 16 }
 0x238   : > { %v2867_v53 = vrot.slane %v2865_v46, 7  ;;  %v2464_v59 = vadd.f32 %v2463_v19, %v2375_v0  ;;  %v2552_v37 = vpop.f32.mrf.mxu3  ;;  %v2739_v4 = vpack.c.bf16 %v2707_v14, %v2707_v14  ;;  %v1071_v14 = vrot.slane %v1069_v47, 4 }
 0x239   : > { %v2377_v35 = vpop.f32.mrf.mxu1  ;;  %v5164_v3 = vrot.slane %v1078_v34, 5  ;;  %v1097_v47 = vrot.slane %v5144_v49, 5 }
 0x23a   : > { %v2870_v2 = vor.u32 %v2868_v40, %v2867_v53  ;;  %v3009_v62 = vsel %vm5079_vm8, %v2867_v53, 0  ;;  %v2553_v63 = vadd.f32 %v2552_v37, %v2464_v59  ;;  %v1082_v59 = vshrl.u32 %v5144_v49, 16 }
 0x23b   : > { %v2644_v32 = vpop.f32.mrf.mxu0  ;;  %v3065_v27 = vunpack.c.l.b16 %v3009_v62  ;;  %v2803_v37 = vunpack.c.l.b16 %v2739_v4 }
 0x23c   : > { %v2993_v22 = vsel %vm5079_vm8, 0, %v2870_v2  ;;  %v2642_v18 = vadd.f32 %v2641_v55, %v2553_v63  ;;  %2416 = vmatmul.bf16.gmra.mxu1 %v4939_v58  ;;  %2505 = vmatmul.bf16.gmra.mxu2 %v4951_v24  ;;  %v2378_v58 = vadd.f32 %v2377_v35, %v4934_v29  ;;  %v480_v24 = vmul.f32 %v477_v30, %v5403_v60 }
 0x23d   : > { %v3063_v51 = vunpack.c.l.b16 %v2993_v22  ;;  %v3064_v28 = vunpack.c.h.b16 %v2993_v22  ;;  %v3113_v46 = vpack.c.b16 %v3065_v27, %v3065_v27  ;;  %2594 = vmatmul.bf16.gmra.mxu3 %v4941_v44  ;;  %v1072_v44 = vshll.u32 %v5138_v11, 16 }
 0x23e   : > { %2683 = vmatmul.bf16.gmra.mxu0 %v4968_v21  ;;  %v2708_v55 = vmax.f32 %v2642_v18, 0.0  ;;  %v1064_v60 = vsel %vm4225_vm5, %v3409_v6, %v1063_v9  ;;  %v1067_v2 = vsel %vm4225_vm5, %v1065_v61, %v1066_v48  ;;  %v5162_v62 = vpack.c.bf16 %v480_v24, %v480_v24 }
 0x23f   : > { %v3111_v0 = vpack.c.b16 %v3063_v51, %v3063_v51  ;;  %v3112_v54 = vpack.c.b16 %v3064_v28, %v3064_v28  ;;  %3209 = vst [vmem:[%s5089_s13 + $0x2c] sm:$0x1] %v3113_v46  ;;  %v2466_v19 = vpop.f32.mrf.mxu2  ;;  %v1074_v63 = vrot.slane %v1072_v44, 5  ;;  %v1084_v22 = vrot.slane %v1082_v59, 4 }
 0x240   : > { %v2740_v23 = vpack.c.bf16 %v2708_v55, %v2708_v55  ;;  %v2467_v53 = vadd.f32 %v2466_v19, %v2378_v58  ;;  %v2555_v40 = vpop.f32.mrf.mxu3  ;;  %v1302_v18 = vunpack.c.l.b16 %v1064_v60  ;;  %v1303_v51 = vunpack.c.l.b16 %v1067_v2 }
 0x241   : > { %3207 = vst [vmem:[%s5089_s13 + $0x24] sm:$0xf] %v3111_v0  ;;  %v2379_v29 = vpop.f32.mrf.mxu1  ;;  %v1075_v4 = vor.u32 %v1074_v63, %v1071_v14  ;;  %v1088_v55 = vshll.u32 %v5162_v62, 16  ;;  %v1085_v0 = vor.u32 %v1084_v22, %v5164_v3  ;;  %v3410_v59 = vrot.slane %v5138_v11, 9 }
 0x242   : > { %3208 = vst [vmem:[%s5089_s13 + $0x28] sm:$0xf] %v3112_v54  ;;  %v2804_v7 = vunpack.c.l.b16 %v2740_v23  ;;  %v2556_v35 = vadd.f32 %v2555_v40, %v2467_v53  ;;  %v2380_v6 = vadd.f32 %v2379_v29, %v4948_v57  ;;  %v5169_v19 = vpack.c.b16 %v1303_v51, %v1302_v18 }
 0x243   : > { %v2646_v30 = vpop.f32.mrf.mxu0  ;;  %v1090_v34 = vrot.slane %v1088_v55, 5  ;;  %v1099_v63 = vrot.slane %v1097_v47, 4 }
 0x244   : > { %v2831_v27 = vpack.c.b16 %v2804_v7, %v2803_v37  ;;  %v2645_v9 = vadd.f32 %v2644_v32, %v2556_v35  ;;  %v1076_v37 = vrot.slane %v1075_v4, 4  ;;  %v1086_v7 = vrot.slane %v1085_v0, 4 }
 0x245   : > { %v1306_v0 = vunpack.c.l.b16 %v5138_v11 }
 0x246   : > { %v2872_v28 = vshrl.u32 %v2831_v27, 16  ;;  %v2875_v61 = vshll.u32 %v2831_v27, 16  ;;  %v2709_v57 = vmax.f32 %v2645_v9, 0.0  ;;  %v1091_v4 = vsel %vm4219_vm4, %v1086_v7, %v1090_v34 }
 0x247   : > { %v2468_v46 = vpop.f32.mrf.mxu2 }
 0x248   : > { %v2874_v58 = vrot.slane %v2872_v28, 7  ;;  %v2469_v48 = vadd.f32 %v2468_v46, %v2380_v6  ;;  %v2557_v24 = vpop.f32.mrf.mxu3  ;;  %v2741_v27 = vpack.c.bf16 %v2709_v57, %v2709_v57 }
 0x249   : > { %v2382_v54 = vpop.f32.mrf.mxu1 }
 0x24a   : > { %v2877_v44 = vor.u32 %v2875_v61, %v2874_v58  ;;  %v3010_v32 = vsel %vm5079_vm8, %v2874_v58, 0  ;;  %v2558_v23 = vadd.f32 %v2557_v24, %v2469_v48 }
 0x24b   : > { %v2649_v53 = vpop.f32.mrf.mxu0  ;;  %v3068_v40 = vunpack.c.l.b16 %v3010_v32 }
 0x24c   : > { %v2994_v29 = vsel %vm5079_vm8, 0, %v2877_v44  ;;  %v2647_v60 = vadd.f32 %v2646_v30, %v2558_v23  ;;  %2421 = vmatmul.bf16.gmra.mxu1 %v4968_v21  ;;  %2510 = vmatmul.bf16.gmra.mxu2 %v4971_v16  ;;  %v2383_v30 = vadd.f32 %v2382_v54, %v4966_v43  ;;  %v1100_v21 = vrot.slane %v5162_v62, 5 }
 0x24d   : > { %v3066_v35 = vunpack.c.l.b16 %v2994_v29  ;;  %v3067_v2 = vunpack.c.h.b16 %v2994_v29  ;;  %v3116_v14 = vpack.c.b16 %v3068_v40, %v3068_v40  ;;  %2599 = vmatmul.bf16.gmra.mxu3 %v4973_v10  ;;  %v1081_v10 = vsel %vm4219_vm4, %v1076_v37, %v5164_v3 }
 0x24e   : > { %2688 = vmatmul.bf16.gmra.mxu0 %v5169_v19  ;;  %v2710_v22 = vmax.f32 %v2647_v60, 0.0  ;;  %v1098_v43 = vsel %vm4225_vm5, %v3410_v59, %v1097_v47  ;;  %v2805_v62 = vunpack.c.l.b16 %v2741_v27  ;;  %v1101_v48 = vsel %vm4225_vm5, %v1099_v63, %v1100_v21 }
 0x24f   : > { %v3114_v18 = vpack.c.b16 %v3066_v35, %v3066_v35  ;;  %v3115_v16 = vpack.c.b16 %v3067_v2, %v3067_v2  ;;  %3212 = vst [vmem:[%s5089_s13 + $0x38] sm:$0x1] %v3116_v14  ;;  %v2471_v51 = vpop.f32.mrf.mxu2  ;;  %v1307_v54 = vunpack.c.l.b16 %v5144_v49  ;;  %v1310_v3 = vunpack.c.l.b16 %v1081_v10 }
 0x250   : > { %v2742_v28 = vpack.c.bf16 %v2710_v22, %v2710_v22  ;;  %v2472_v9 = vadd.f32 %v2471_v51, %v2383_v30  ;;  %v2560_v6 = vpop.f32.mrf.mxu3  ;;  %v1311_v44 = vunpack.c.l.b16 %v1091_v4  ;;  %v1314_v45 = vunpack.c.l.b16 %v1098_v43 }
 0x251   : > { %3210 = vst [vmem:[%s5089_s13 + $0x30] sm:$0xf] %v3114_v18  ;;  %v2384_v46 = vpop.f32.mrf.mxu1  ;;  %v1315_v32 = vunpack.c.l.b16 %v1101_v48  ;;  %v1308_v50 = vpack.c.b16 %v1307_v54, %v1306_v0 }
 0x252   : > { %3211 = vst [vmem:[%s5089_s13 + $0x34] sm:$0xf] %v3115_v16  ;;  %v2806_v55 = vunpack.c.l.b16 %v2742_v28  ;;  %v2561_v58 = vadd.f32 %v2560_v6, %v2472_v9  ;;  %v2385_v47 = vadd.f32 %v2384_v46, %v4978_v38  ;;  %v1312_v7 = vpack.c.b16 %v1311_v44, %v1310_v3 }
 0x253   : > { %v2651_v61 = vpop.f32.mrf.mxu0  ;;  %v1316_v35 = vpack.c.b16 %v1315_v32, %v1314_v45 }
 0x254   : > { %v2832_v24 = vpack.c.b16 %v2806_v55, %v2805_v62  ;;  %v2650_v23 = vadd.f32 %v2649_v53, %v2561_v58 }
 0x256   : > { %v2879_v57 = vshrl.u32 %v2832_v24, 16  ;;  %v2882_v59 = vshll.u32 %v2832_v24, 16  ;;  %v2711_v2 = vmax.f32 %v2650_v23, 0.0 }
 0x257   : > { %v2473_v40 = vpop.f32.mrf.mxu2 }
 0x258   : > { %v2881_v34 = vrot.slane %v2879_v57, 7  ;;  %v2474_v29 = vadd.f32 %v2473_v40, %v2385_v47  ;;  %v2562_v60 = vpop.f32.mrf.mxu3  ;;  %v2743_v18 = vpack.c.bf16 %v2711_v2, %v2711_v2 }
 0x259   : > { %v2387_v37 = vpop.f32.mrf.mxu1 }
 0x25a   : > { %v2884_v11 = vor.u32 %v2882_v59, %v2881_v34  ;;  %v3011_v49 = vsel %vm5079_vm8, %v2881_v34, 0  ;;  %v2563_v14 = vadd.f32 %v2562_v60, %v2474_v29  ;;  %v2388_v51 = vadd.f32 %v2387_v37, %v4983_v15 }
 0x25b   : > { %v2654_v63 = vpop.f32.mrf.mxu0  ;;  %v3071_v53 = vunpack.c.l.b16 %v3011_v49  ;;  %v2807_v43 = vunpack.c.l.b16 %v2743_v18 }
 0x25c   : > { %v2995_v38 = vsel %vm5079_vm8, 0, %v2884_v11  ;;  %v2652_v27 = vadd.f32 %v2651_v61, %v2563_v14  ;;  %2426 = vmatmul.bf16.gmra.mxu1 %v5169_v19  ;;  %2515 = vmatmul.bf16.gmra.mxu2 %v1308_v50 }
 0x25d   : > { %v3069_v22 = vunpack.c.l.b16 %v2995_v38  ;;  %v3070_v30 = vunpack.c.h.b16 %v2995_v38  ;;  %v3119_v21 = vpack.c.b16 %v3071_v53, %v3071_v53  ;;  %2604 = vmatmul.bf16.gmra.mxu3 %v1312_v7 }
 0x25e   : > { %2693 = vmatmul.bf16.gmra.mxu0 %v1316_v35  ;;  %v2712_v16 = vmax.f32 %v2652_v27, 0.0 }
 0x25f   : > { %v3117_v28 = vpack.c.b16 %v3069_v22, %v3069_v22  ;;  %v3118_v9 = vpack.c.b16 %v3070_v30, %v3070_v30  ;;  %3215 = vst [vmem:[%s5089_s13 + $0x44] sm:$0x1] %v3119_v21  ;;  %v2476_v6 = vpop.f32.mrf.mxu2 }
 0x260   : > { %v2744_v46 = vpack.c.bf16 %v2712_v16, %v2712_v16  ;;  %v2477_v10 = vadd.f32 %v2476_v6, %v2388_v51  ;;  %v2565_v4 = vpop.f32.mrf.mxu3 }
 0x261   : > { %3213 = vst [vmem:[%s5089_s13 + $0x3c] sm:$0xf] %v3117_v28  ;;  %v2389_v19 = vpop.f32.mrf.mxu1 }
 0x262   : > { %3214 = vst [vmem:[%s5089_s13 + $0x40] sm:$0xf] %v3118_v9  ;;  %v2808_v62 = vunpack.c.l.b16 %v2744_v46  ;;  %v2566_v55 = vadd.f32 %v2565_v4, %v2477_v10  ;;  %v2390_v0 = vadd.f32 %v2389_v19, %v4988_v20 }
 0x263   : > { %v2656_v58 = vpop.f32.mrf.mxu0 }
 0x264   : > { %v2833_v61 = vpack.c.b16 %v2808_v62, %v2807_v43  ;;  %v2655_v24 = vadd.f32 %v2654_v63, %v2566_v55 }
 0x266   : > { %v2886_v48 = vshrl.u32 %v2833_v61, 16  ;;  %v2889_v3 = vshll.u32 %v2833_v61, 16  ;;  %v2713_v47 = vmax.f32 %v2655_v24, 0.0 }
 0x267   : > { %v2478_v15 = vpop.f32.mrf.mxu2 }
 0x268   : > { %v2888_v54 = vrot.slane %v2886_v48, 7  ;;  %v2479_v44 = vadd.f32 %v2478_v15, %v2390_v0  ;;  %v2567_v45 = vpop.f32.mrf.mxu3  ;;  %v2745_v7 = vpack.c.bf16 %v2713_v47, %v2713_v47 }
 0x269   : > { %v2392_v32 = vpop.f32.mrf.mxu1 }
 0x26a   : > { %v2891_v57 = vor.u32 %v2889_v3, %v2888_v54  ;;  %v3012_v23 = vsel %vm5079_vm8, %v2888_v54, 0  ;;  %v2568_v40 = vadd.f32 %v2567_v45, %v2479_v44  ;;  %v2393_v11 = vadd.f32 %v2392_v32, %v4993_v56 }
 0x26b   : > { %v2659_v34 = vpop.f32.mrf.mxu0  ;;  %v3074_v59 = vunpack.c.l.b16 %v3012_v23  ;;  %v2809_v22 = vunpack.c.l.b16 %v2745_v7 }
 0x26c   : > { %v2996_v29 = vsel %vm5079_vm8, 0, %v2891_v57  ;;  %v2657_v20 = vadd.f32 %v2656_v58, %v2568_v40 }
 0x26d   : > { %v3072_v60 = vunpack.c.l.b16 %v2996_v29  ;;  %v3073_v50 = vunpack.c.h.b16 %v2996_v29  ;;  %v3122_v37 = vpack.c.b16 %v3074_v59, %v3074_v59 }
 0x26e   : > { %v2714_v35 = vmax.f32 %v2657_v20, 0.0 }
 0x26f   : > { %v3120_v49 = vpack.c.b16 %v3072_v60, %v3072_v60  ;;  %v3121_v2 = vpack.c.b16 %v3073_v50, %v3073_v50  ;;  %3218 = vst [vmem:[%s5089_s13 + $0x50] sm:$0x1] %v3122_v37  ;;  %v2481_v14 = vpop.f32.mrf.mxu2 }
 0x270   : > { %v2746_v63 = vpack.c.bf16 %v2714_v35, %v2714_v35  ;;  %v2482_v53 = vadd.f32 %v2481_v14, %v2393_v11  ;;  %v2570_v38 = vpop.f32.mrf.mxu3 }
 0x271   : > { %3216 = vst [vmem:[%s5089_s13 + $0x48] sm:$0xf] %v3120_v49  ;;  %v2394_v27 = vpop.f32.mrf.mxu1 }
 0x272   : > { %3217 = vst [vmem:[%s5089_s13 + $0x4c] sm:$0xf] %v3121_v2  ;;  %v2810_v30 = vunpack.c.l.b16 %v2746_v63  ;;  %v2571_v21 = vadd.f32 %v2570_v38, %v2482_v53  ;;  %v2395_v9 = vadd.f32 %v2394_v27, %v4998_v5 }
 0x273   : > { %v2661_v18 = vpop.f32.mrf.mxu0 }
 0x274   : > { %v2834_v16 = vpack.c.b16 %v2810_v30, %v2809_v22  ;;  %v2660_v28 = vadd.f32 %v2659_v34, %v2571_v21 }
 0x276   : > { %v2893_v51 = vshrl.u32 %v2834_v16, 16  ;;  %v2896_v46 = vshll.u32 %v2834_v16, 16  ;;  %v2715_v55 = vmax.f32 %v2660_v28, 0.0 }
 0x277   : > { %v2483_v56 = vpop.f32.mrf.mxu2 }
 0x278   : > { %v2895_v6 = vrot.slane %v2893_v51, 7  ;;  %v2484_v10 = vadd.f32 %v2483_v56, %v2395_v9  ;;  %v2572_v4 = vpop.f32.mrf.mxu3  ;;  %v2747_v3 = vpack.c.bf16 %v2715_v55, %v2715_v55 }
 0x279   : > { %v2397_v19 = vpop.f32.mrf.mxu1 }
 0x27a   : > { %v2898_v43 = vor.u32 %v2896_v46, %v2895_v6  ;;  %v3013_v62 = vsel %vm5079_vm8, %v2895_v6, 0  ;;  %v2573_v58 = vadd.f32 %v2572_v4, %v2484_v10  ;;  %v2398_v45 = vadd.f32 %v2397_v19, %v5003_v52 }
 0x27b   : > { %v2664_v61 = vpop.f32.mrf.mxu0  ;;  %v3077_v48 = vunpack.c.l.b16 %v3013_v62  ;;  %v2811_v29 = vunpack.c.l.b16 %v2747_v3 }
 0x27c   : > { %v2997_v24 = vsel %vm5079_vm8, 0, %v2898_v43  ;;  %v2662_v5 = vadd.f32 %v2661_v18, %v2573_v58 }
 0x27d   : > { %v3075_v0 = vunpack.c.l.b16 %v2997_v24  ;;  %v3076_v15 = vunpack.c.h.b16 %v2997_v24  ;;  %v3125_v54 = vpack.c.b16 %v3077_v48, %v3077_v48 }
 0x27e   : > { %v2716_v44 = vmax.f32 %v2662_v5, 0.0 }
 0x27f   : > { %v3123_v32 = vpack.c.b16 %v3075_v0, %v3075_v0  ;;  %v3124_v57 = vpack.c.b16 %v3076_v15, %v3076_v15  ;;  %3221 = vst [vmem:[%s5089_s13 + $0x5c] sm:$0x1] %v3125_v54  ;;  %v2486_v23 = vpop.f32.mrf.mxu2 }
 0x280   : > { %v2748_v47 = vpack.c.bf16 %v2716_v44, %v2716_v44  ;;  %v2487_v40 = vadd.f32 %v2486_v23, %v2398_v45  ;;  %v2575_v34 = vpop.f32.mrf.mxu3 }
 0x281   : > { %3219 = vst [vmem:[%s5089_s13 + $0x54] sm:$0xf] %v3123_v32  ;;  %v2399_v59 = vpop.f32.mrf.mxu1 }
 0x282   : > { %3220 = vst [vmem:[%s5089_s13 + $0x58] sm:$0xf] %v3124_v57  ;;  %v2812_v20 = vunpack.c.l.b16 %v2748_v47  ;;  %v2576_v60 = vadd.f32 %v2575_v34, %v2487_v40  ;;  %v2400_v11 = vadd.f32 %v2399_v59, %v5008_v26 }
 0x283   : > { %v2666_v50 = vpop.f32.mrf.mxu0 }
 0x284   : > { %v2835_v37 = vpack.c.b16 %v2812_v20, %v2811_v29  ;;  %v2665_v35 = vadd.f32 %v2664_v61, %v2576_v60 }
 0x286   : > { %v2900_v7 = vshrl.u32 %v2835_v37, 16  ;;  %v2903_v2 = vshll.u32 %v2835_v37, 16  ;;  %v2717_v22 = vmax.f32 %v2665_v35, 0.0 }
 0x287   : > { %v2488_v52 = vpop.f32.mrf.mxu2 }
 0x288   : > { %v2902_v49 = vrot.slane %v2900_v7, 7  ;;  %v2489_v14 = vadd.f32 %v2488_v52, %v2400_v11  ;;  %v2577_v63 = vpop.f32.mrf.mxu3  ;;  %v2749_v56 = vpack.c.bf16 %v2717_v22, %v2717_v22 }
 0x289   : > { %v2402_v53 = vpop.f32.mrf.mxu1 }
 0x28a   : > { %v2905_v38 = vor.u32 %v2903_v2, %v2902_v49  ;;  %v3014_v27 = vsel %vm5079_vm8, %v2902_v49, 0  ;;  %v2578_v30 = vadd.f32 %v2577_v63, %v2489_v14  ;;  %v2403_v46 = vadd.f32 %v2402_v53, %v5013_v1 }
 0x28b   : > { %v2669_v21 = vpop.f32.mrf.mxu0  ;;  %v3080_v18 = vunpack.c.l.b16 %v3014_v27  ;;  %v2813_v61 = vunpack.c.l.b16 %v2749_v56 }
 0x28c   : > { %v2998_v16 = vsel %vm5079_vm8, 0, %v2905_v38  ;;  %v2667_v26 = vadd.f32 %v2666_v50, %v2578_v30 }
 0x28d   : > { %v3078_v51 = vunpack.c.l.b16 %v2998_v16  ;;  %v3079_v28 = vunpack.c.h.b16 %v2998_v16  ;;  %v3128_v9 = vpack.c.b16 %v3080_v18, %v3080_v18 }
 0x28e   : > { %v2718_v6 = vmax.f32 %v2667_v26, 0.0 }
 0x28f   : > { %v3126_v10 = vpack.c.b16 %v3078_v51, %v3078_v51  ;;  %v3127_v4 = vpack.c.b16 %v3079_v28, %v3079_v28  ;;  %3224 = vst [vmem:[%s5089_s13 + $0x68] sm:$0x1] %v3128_v9  ;;  %v2491_v19 = vpop.f32.mrf.mxu2 }
 0x290   : > { %v2750_v43 = vpack.c.bf16 %v2718_v6, %v2718_v6  ;;  %v2492_v62 = vadd.f32 %v2491_v19, %v2403_v46  ;;  %v2580_v55 = vpop.f32.mrf.mxu3 }
 0x291   : > { %3222 = vst [vmem:[%s5089_s13 + $0x60] sm:$0xf] %v3126_v10  ;;  %v2404_v58 = vpop.f32.mrf.mxu1 }
 0x292   : > { %3223 = vst [vmem:[%s5089_s13 + $0x64] sm:$0xf] %v3127_v4  ;;  %v2814_v48 = vunpack.c.l.b16 %v2750_v43  ;;  %v2581_v24 = vadd.f32 %v2580_v55, %v2492_v62  ;;  %v2405_v3 = vadd.f32 %v2404_v58, %v5018_v13 }
 0x293   : > { %v2671_v5 = vpop.f32.mrf.mxu0 }
 0x294   : > { %v2836_v0 = vpack.c.b16 %v2814_v48, %v2813_v61  ;;  %v2670_v54 = vadd.f32 %v2669_v21, %v2581_v24 }
 0x296   : > { %v2907_v15 = vshrl.u32 %v2836_v0, 16  ;;  %v2910_v45 = vshll.u32 %v2836_v0, 16  ;;  %v2719_v34 = vmax.f32 %v2670_v54, 0.0 }
 0x297   : > { %v2493_v1 = vpop.f32.mrf.mxu2 }
 0x298   : > { %v2909_v44 = vrot.slane %v2907_v15, 7  ;;  %v2494_v32 = vadd.f32 %v2493_v1, %v2405_v3  ;;  %v2582_v57 = vpop.f32.mrf.mxu3  ;;  %v2751_v35 = vpack.c.bf16 %v2719_v34, %v2719_v34 }
 0x299   : > { %v2407_v23 = vpop.f32.mrf.mxu1 }
 0x29a   : > { %v2912_v47 = vor.u32 %v2910_v45, %v2909_v44  ;;  %v3015_v40 = vsel %vm5079_vm8, %v2909_v44, 0  ;;  %v2583_v59 = vadd.f32 %v2582_v57, %v2494_v32  ;;  %v2408_v52 = vadd.f32 %v2407_v23, %v5023_v8 }
 0x29b   : > { %v2674_v29 = vpop.f32.mrf.mxu0  ;;  %v3083_v20 = vunpack.c.l.b16 %v3015_v40  ;;  %v2815_v22 = vunpack.c.l.b16 %v2751_v35 }
 0x29c   : > { %v2999_v60 = vsel %vm5079_vm8, 0, %v2912_v47  ;;  %v2672_v13 = vadd.f32 %v2671_v5, %v2583_v59 }
 0x29d   : > { %v3081_v50 = vunpack.c.l.b16 %v2999_v60  ;;  %v3082_v37 = vunpack.c.h.b16 %v2999_v60  ;;  %v3131_v7 = vpack.c.b16 %v3083_v20, %v3083_v20 }
 0x29e   : > { %v2720_v11 = vmax.f32 %v2672_v13, 0.0 }
 0x29f   : > { %v3129_v49 = vpack.c.b16 %v3081_v50, %v3081_v50  ;;  %v3130_v2 = vpack.c.b16 %v3082_v37, %v3082_v37  ;;  %3227 = vst [vmem:[%s5089_s13 + $0x74] sm:$0x1] %v3131_v7  ;;  %v2496_v14 = vpop.f32.mrf.mxu2 }
 0x2a0   : > { %v2752_v63 = vpack.c.bf16 %v2720_v11, %v2720_v11  ;;  %v2497_v53 = vadd.f32 %v2496_v14, %v2408_v52  ;;  %v2585_v38 = vpop.f32.mrf.mxu3 }
 0x2a1   : > { %3225 = vst [vmem:[%s5089_s13 + $0x6c] sm:$0xf] %v3129_v49  ;;  %v2409_v27 = vpop.f32.mrf.mxu1 }
 0x2a2   : > { %3226 = vst [vmem:[%s5089_s13 + $0x70] sm:$0xf] %v3130_v2  ;;  %v2816_v30 = vunpack.c.l.b16 %v2752_v63  ;;  %v2586_v21 = vadd.f32 %v2585_v38, %v2497_v53  ;;  %v2410_v28 = vadd.f32 %v2409_v27, %v5028_v25 }
 0x2a3   : > { %v2676_v18 = vpop.f32.mrf.mxu0 }
 0x2a4   : > { %v2837_v16 = vpack.c.b16 %v2816_v30, %v2815_v22  ;;  %v2675_v51 = vadd.f32 %v2674_v29, %v2586_v21 }
 0x2a6   : > { %v2914_v26 = vshrl.u32 %v2837_v16, 16  ;;  %v2917_v56 = vshll.u32 %v2837_v16, 16  ;;  %v2721_v43 = vmax.f32 %v2675_v51, 0.0 }
 0x2a7   : > { %v2498_v8 = vpop.f32.mrf.mxu2 }
 0x2a8   : > { %v2916_v9 = vrot.slane %v2914_v26, 7  ;;  %v2499_v6 = vadd.f32 %v2498_v8, %v2410_v28  ;;  %v2587_v46 = vpop.f32.mrf.mxu3  ;;  %v2753_v0 = vpack.c.bf16 %v2721_v43, %v2721_v43 }
 0x2a9   : > { %v2412_v10 = vpop.f32.mrf.mxu1 }
 0x2aa   : > { %v2919_v4 = vor.u32 %v2917_v56, %v2916_v9  ;;  %v3016_v19 = vsel %vm5079_vm8, %v2916_v9, 0  ;;  %v2588_v62 = vadd.f32 %v2587_v46, %v2499_v6  ;;  %v2413_v54 = vadd.f32 %v2412_v10, %v5033_v31 }
 0x2ab   : > { %v2679_v55 = vpop.f32.mrf.mxu0  ;;  %v3086_v58 = vunpack.c.l.b16 %v3016_v19  ;;  %v2817_v47 = vunpack.c.l.b16 %v2753_v0 }
 0x2ac   : > { %v3000_v61 = vsel %vm5079_vm8, 0, %v2919_v4  ;;  %v2677_v25 = vadd.f32 %v2676_v18, %v2588_v62 }
 0x2ad   : > { %v3084_v48 = vunpack.c.l.b16 %v3000_v61  ;;  %v3085_v24 = vunpack.c.h.b16 %v3000_v61  ;;  %v3134_v5 = vpack.c.b16 %v3086_v58, %v3086_v58 }
 0x2ae   : > { %v2722_v15 = vmax.f32 %v2677_v25, 0.0 }
 0x2af   : > { %v3132_v3 = vpack.c.b16 %v3084_v48, %v3084_v48  ;;  %v3133_v1 = vpack.c.b16 %v3085_v24, %v3085_v24  ;;  %3230 = vst [vmem:[%s5089_s13 + $0x80] sm:$0x1] %v3134_v5  ;;  %v2501_v44 = vpop.f32.mrf.mxu2 }
 0x2b0   : > { %v2754_v45 = vpack.c.bf16 %v2722_v15, %v2722_v15  ;;  %v2502_v32 = vadd.f32 %v2501_v44, %v2413_v54  ;;  %v2590_v57 = vpop.f32.mrf.mxu3 }
 0x2b1   : > { %3228 = vst [vmem:[%s5089_s13 + $0x78] sm:$0xf] %v3132_v3  ;;  %v2414_v23 = vpop.f32.mrf.mxu1 }
 0x2b2   : > { %3229 = vst [vmem:[%s5089_s13 + $0x7c] sm:$0xf] %v3133_v1  ;;  %v2818_v40 = vunpack.c.l.b16 %v2754_v45  ;;  %v2591_v34 = vadd.f32 %v2590_v57, %v2502_v32  ;;  %v2415_v13 = vadd.f32 %v2414_v23, %v5038_v36 }
 0x2b3   : > { %v2681_v59 = vpop.f32.mrf.mxu0 }
 0x2b4   : > { %v2838_v29 = vpack.c.b16 %v2818_v40, %v2817_v47  ;;  %v2680_v60 = vadd.f32 %v2679_v55, %v2591_v34 }
 0x2b6   : > { %v2921_v20 = vshrl.u32 %v2838_v29, 16  ;;  %v2924_v37 = vshll.u32 %v2838_v29, 16  ;;  %v2723_v2 = vmax.f32 %v2680_v60, 0.0 }
 0x2b7   : > { %v2503_v31 = vpop.f32.mrf.mxu2 }
 0x2b8   : > { %v2923_v50 = vrot.slane %v2921_v20, 7  ;;  %v2504_v7 = vadd.f32 %v2503_v31, %v2415_v13  ;;  %v2592_v35 = vpop.f32.mrf.mxu3  ;;  %v2755_v21 = vpack.c.bf16 %v2723_v2, %v2723_v2 }
 0x2b9   : > { %v2417_v11 = vpop.f32.mrf.mxu1 }
 0x2ba   : > { %v2926_v52 = vor.u32 %v2924_v37, %v2923_v50  ;;  %v3017_v49 = vsel %vm5079_vm8, %v2923_v50, 0  ;;  %v2593_v14 = vadd.f32 %v2592_v35, %v2504_v7  ;;  %v2418_v16 = vadd.f32 %v2417_v11, %v5043_v33 }
 0x2bb   : > { %v2684_v63 = vpop.f32.mrf.mxu0  ;;  %v3089_v53 = vunpack.c.l.b16 %v3017_v49  ;;  %v2819_v46 = vunpack.c.l.b16 %v2755_v21 }
 0x2bc   : > { %v3001_v38 = vsel %vm5079_vm8, 0, %v2926_v52  ;;  %v2682_v36 = vadd.f32 %v2681_v59, %v2593_v14 }
 0x2bd   : > { %v3087_v27 = vunpack.c.l.b16 %v3001_v38  ;;  %v3088_v22 = vunpack.c.h.b16 %v3001_v38  ;;  %v3137_v30 = vpack.c.b16 %v3089_v53, %v3089_v53 }
 0x2be   : > { %v2724_v18 = vmax.f32 %v2682_v36, 0.0 }
 0x2bf   : > { %v3135_v26 = vpack.c.b16 %v3087_v27, %v3087_v27  ;;  %v3136_v51 = vpack.c.b16 %v3088_v22, %v3088_v22  ;;  %3233 = vst [vmem:[%s5089_s13 + $0x8c] sm:$0x1] %v3137_v30  ;;  %v2506_v28 = vpop.f32.mrf.mxu2 }
 0x2c0   : > { %v2756_v8 = vpack.c.bf16 %v2724_v18, %v2724_v18  ;;  %v2507_v9 = vadd.f32 %v2506_v28, %v2418_v16  ;;  %v2595_v56 = vpop.f32.mrf.mxu3 }
 0x2c1   : > { %3231 = vst [vmem:[%s5089_s13 + $0x84] sm:$0xf] %v3135_v26  ;;  %v2419_v6 = vpop.f32.mrf.mxu1 }
 0x2c2   : > { %3232 = vst [vmem:[%s5089_s13 + $0x88] sm:$0xf] %v3136_v51  ;;  %v2820_v10 = vunpack.c.l.b16 %v2756_v8  ;;  %v2596_v4 = vadd.f32 %v2595_v56, %v2507_v9  ;;  %v2420_v58 = vadd.f32 %v2419_v6, %v5048_v12 }
 0x2c3   : > { %v2686_v19 = vpop.f32.mrf.mxu0 }
 0x2c4   : > { %v2839_v43 = vpack.c.b16 %v2820_v10, %v2819_v46  ;;  %v2685_v55 = vadd.f32 %v2684_v63, %v2596_v4 }
 0x2c6   : > { %v2928_v62 = vshrl.u32 %v2839_v43, 16  ;;  %v2931_v25 = vshll.u32 %v2839_v43, 16  ;;  %v2725_v54 = vmax.f32 %v2685_v55, 0.0 }
 0x2c7   : > { %v2508_v33 = vpop.f32.mrf.mxu2 }
 0x2c8   : > { %v2930_v61 = vrot.slane %v2928_v62, 7  ;;  %v2509_v48 = vadd.f32 %v2508_v33, %v2420_v58  ;;  %v2597_v24 = vpop.f32.mrf.mxu3  ;;  %v2757_v47 = vpack.c.bf16 %v2725_v54, %v2725_v54 }
 0x2c9   : > { %v2422_v5 = vpop.f32.mrf.mxu1 }
 0x2ca   : > { %v2933_v0 = vor.u32 %v2931_v25, %v2930_v61  ;;  %v3018_v15 = vsel %vm5079_vm8, %v2930_v61, 0  ;;  %v2598_v3 = vadd.f32 %v2597_v24, %v2509_v48  ;;  %v2423_v34 = vadd.f32 %v2422_v5, %v5053_v17 }
 0x2cb   : > { %v3092_v1 = vunpack.c.l.b16 %v3018_v15  ;;  %v2689_v23 = vpop.f32.mrf.mxu0  ;;  %v2821_v37 = vunpack.c.l.b16 %v2757_v47 }
 0x2cc   : > { %v3002_v44 = vsel %vm5079_vm8, 0, %v2933_v0  ;;  %v2687_v45 = vadd.f32 %v2686_v19, %v2598_v3  ;;  %v5405_v0 = vld [vmem:[#allocation3_spill] sm:$0xff] }
 0x2cd   : > { %v3090_v12 = vunpack.c.l.b16 %v3002_v44  ;;  %v3091_v32 = vunpack.c.h.b16 %v3002_v44  ;;  %v3140_v57 = vpack.c.b16 %v3092_v1, %v3092_v1 }
 0x2ce   : > { %v2726_v40 = vmax.f32 %v2687_v45, 0.0 }
 0x2cf   : > { %v3138_v59 = vpack.c.b16 %v3090_v12, %v3090_v12  ;;  %v3139_v29 = vpack.c.b16 %v3091_v32, %v3091_v32  ;;  %3236 = vst [vmem:[%s5089_s13 + $0x98] sm:$0x1] %v3140_v57  ;;  %v2511_v20 = vpop.f32.mrf.mxu2 }
 0x2d0   : > { %v2758_v60 = vpack.c.bf16 %v2726_v40, %v2726_v40  ;;  %v2512_v13 = vadd.f32 %v2511_v20, %v2423_v34  ;;  %v2600_v31 = vpop.f32.mrf.mxu3 }
 0x2d1   : > { %3234 = vst [vmem:[%s5089_s13 + $0x90] sm:$0xf] %v3138_v59  ;;  %v2424_v50 = vpop.f32.mrf.mxu1 }
 0x2d2   : > { %3235 = vst [vmem:[%s5089_s13 + $0x94] sm:$0xf] %v3139_v29  ;;  %v2822_v7 = vunpack.c.l.b16 %v2758_v60  ;;  %v2601_v35 = vadd.f32 %v2600_v31, %v2512_v13  ;;  %v2425_v2 = vadd.f32 %v2424_v50, %v5058_v42 }
 0x2d3   : > { %v2691_v14 = vpop.f32.mrf.mxu0 }
 0x2d4   : > { %v2840_v11 = vpack.c.b16 %v2822_v7, %v2821_v37  ;;  %v2690_v49 = vadd.f32 %v2689_v23, %v2601_v35 }
 0x2d6   : > { %v2935_v52 = vshrl.u32 %v2840_v11, 16  ;;  %v2938_v53 = vshll.u32 %v2840_v11, 16  ;;  %v2727_v21 = vmax.f32 %v2690_v49, 0.0 }
 0x2d7   : > { %v2513_v17 = vpop.f32.mrf.mxu2 }
 0x2d8   : > { %v2937_v63 = vrot.slane %v2935_v52, 7  ;;  %v2514_v38 = vadd.f32 %v2513_v17, %v2425_v2  ;;  %v2602_v36 = vpop.f32.mrf.mxu3  ;;  %v2759_v9 = vpack.c.bf16 %v2727_v21, %v2727_v21 }
 0x2d9   : > { %v2427_v27 = vpop.f32.mrf.mxu1 }
 0x2da   : > { %v2940_v22 = vor.u32 %v2938_v53, %v2937_v63  ;;  %v3019_v30 = vsel %vm5079_vm8, %v2937_v63, 0  ;;  %v2603_v18 = vadd.f32 %v2602_v36, %v2514_v38  ;;  %v2428_v6 = vadd.f32 %v2427_v27, %v5063_v41 }
 0x2db   : > { %v3095_v16 = vunpack.c.l.b16 %v3019_v30  ;;  %v2694_v55 = vpop.f32.mrf.mxu0  ;;  %v2823_v58 = vunpack.c.l.b16 %v2759_v9 }
 0x2dc   : > { %v3003_v26 = vsel %vm5079_vm8, 0, %v2940_v22  ;;  %v2692_v42 = vadd.f32 %v2691_v14, %v2603_v18 }
 0x2dd   : > { %v3093_v51 = vunpack.c.l.b16 %v3003_v26  ;;  %v3094_v28 = vunpack.c.h.b16 %v3003_v26  ;;  %v3143_v8 = vpack.c.b16 %v3095_v16, %v3095_v16 }
 0x2de   : > { %v2728_v56 = vmax.f32 %v2692_v42, 0.0 }
 0x2df   : > { %v3141_v46 = vpack.c.b16 %v3093_v51, %v3093_v51  ;;  %v3142_v10 = vpack.c.b16 %v3094_v28, %v3094_v28  ;;  %3239 = vst [vmem:[%s5089_s13 + $0xa4] sm:$0x1] %v3143_v8  ;;  %v2516_v4 = vpop.f32.mrf.mxu2 }
 0x2e0   : > { %v2760_v19 = vpack.c.bf16 %v2728_v56, %v2728_v56  ;;  %v2517_v43 = vadd.f32 %v2516_v4, %v2428_v6  ;;  %v2605_v62 = vpop.f32.mrf.mxu3 }
 0x2e1   : > { %3237 = vst [vmem:[%s5089_s13 + $0x9c] sm:$0xf] %v3141_v46  ;;  %v2429_v25 = vpop.f32.mrf.mxu1 }
 0x2e2   : > { %3238 = vst [vmem:[%s5089_s13 + $0xa0] sm:$0xf] %v3142_v10  ;;  %v2824_v33 = vunpack.c.l.b16 %v2760_v19  ;;  %v2606_v61 = vadd.f32 %v2605_v62, %v2517_v43  ;;  %v2430_v15 = vadd.f32 %v2429_v25, %v5405_v0 }
 0x2e3   : > { %v2696_v47 = vpop.f32.mrf.mxu0 }
 0x2e4   : > { %v2841_v48 = vpack.c.b16 %v2824_v33, %v2823_v58  ;;  %v2695_v5 = vadd.f32 %v2694_v55, %v2606_v61 }
 0x2e6   : > { %v2942_v24 = vshrl.u32 %v2841_v48, 16  ;;  %v2945_v3 = vshll.u32 %v2841_v48, 16  ;;  %v2729_v32 = vmax.f32 %v2695_v5, 0.0 }
 0x2e7   : > { %v2518_v41 = vpop.f32.mrf.mxu2 }
 0x2e8   : > { %v2944_v54 = vrot.slane %v2942_v24, 7  ;;  %v2519_v1 = vadd.f32 %v2518_v41, %v2430_v15  ;;  %v2607_v44 = vpop.f32.mrf.mxu3  ;;  %v2761_v60 = vpack.c.bf16 %v2729_v32, %v2729_v32 }
 0x2ea   : > { %v2947_v45 = vor.u32 %v2945_v3, %v2944_v54  ;;  %v3020_v12 = vsel %vm5079_vm8, %v2944_v54, 0  ;;  %v2608_v57 = vadd.f32 %v2607_v44, %v2519_v1  ;;  %v2825_v7 = vunpack.c.l.b16 %v2761_v60 }
 0x2eb   : > { %v3098_v23 = vunpack.c.l.b16 %v3020_v12 }
 0x2ec   : > { %v3004_v40 = vsel %vm5079_vm8, 0, %v2947_v45  ;;  %v2697_v34 = vadd.f32 %v2696_v47, %v2608_v57 }
 0x2ed   : > { %v3096_v59 = vunpack.c.l.b16 %v3004_v40  ;;  %v3097_v29 = vunpack.c.h.b16 %v3004_v40  ;;  %v3146_v20 = vpack.c.b16 %v3098_v23, %v3098_v23 }
 0x2ee   : > { %v2730_v13 = vmax.f32 %v2697_v34, 0.0 }
 0x2ef   : > { %v3144_v31 = vpack.c.b16 %v3096_v59, %v3096_v59  ;;  %v3145_v50 = vpack.c.b16 %v3097_v29, %v3097_v29  ;;  %3242 = vst [vmem:[%s5089_s13 + $0xb0] sm:$0x1] %v3146_v20 }
 0x2f0   : > { %v2762_v37 = vpack.c.bf16 %v2730_v13, %v2730_v13 }
 0x2f1   : > { %3240 = vst [vmem:[%s5089_s13 + $0xa8] sm:$0xf] %v3144_v31 }
 0x2f2   : > { %3241 = vst [vmem:[%s5089_s13 + $0xac] sm:$0xf] %v3145_v50  ;;  %v2826_v35 = vunpack.c.l.b16 %v2762_v37 }
 0x2f4   : > { %v2842_v11 = vpack.c.b16 %v2826_v35, %v2825_v7 }
 0x2f6   : > { %v2949_v52 = vshrl.u32 %v2842_v11, 16  ;;  %v2952_v2 = vshll.u32 %v2842_v11, 16 }
 0x2f8   : > { %v2951_v49 = vrot.slane %v2949_v52, 7 }
 0x2fa   : > { %v2954_v14 = vor.u32 %v2952_v2, %v2951_v49  ;;  %v3021_v17 = vsel %vm5079_vm8, %v2951_v49, 0 }
 0x2fb   : > { %v3101_v63 = vunpack.c.l.b16 %v3021_v17 }
 0x2fc   : > { %v3005_v53 = vsel %vm5079_vm8, 0, %v2954_v14 }
 0x2fd   : > { %v3099_v38 = vunpack.c.l.b16 %v3005_v53  ;;  %v3100_v36 = vunpack.c.h.b16 %v3005_v53  ;;  %v3149_v27 = vpack.c.b16 %v3101_v63, %v3101_v63 }
 0x2ff   : > { %v3147_v22 = vpack.c.b16 %v3099_v38, %v3099_v38  ;;  %v3148_v30 = vpack.c.b16 %v3100_v36, %v3100_v36  ;;  %3245 = vst [vmem:[%s5089_s13 + $0xbc] sm:$0x1] %v3149_v27 }
 0x301   : > { %3243 = vst [vmem:[%s5089_s13 + $0xb4] sm:$0xf] %v3147_v22 }
 0x302   : > { %3244 = vst [vmem:[%s5089_s13 + $0xb8] sm:$0xf] %v3148_v30 }
 0x303 PF: > { %s15_s20 = sadd.s32 1, %s3953_s20   ;;  %s5406_s18 = smov %s3949_s19 }
 0x304   : > { %p12_p5 = scmp.ge.s32.totalorder %s15_s20, 4   ;;  %s5407_s19 = smov %s5409_s21 }
 0x306   :  { %14 = sbr.rel (!%p12_p5) target bundleno = 2 (0x2), region = 76 }

</bundles_post_ra>
